<compile_context>
chip_gen: v7x
topology: tpu7x:2x2x1
jax: 0.10.0
libtpu: 0.0.40
codegen_flags: <defaults>
</compile_context>

<pallas_src>
import jax
import jax.numpy as jnp
from jax.experimental import pallas as pl
from jax.experimental.pallas import tpu as pltpu

K1, K2, K3 = 30, 15, 5
# PyTorch padding='same': total = K-1, left = total//2, right = total - left
PAD1_L, PAD1_R = (K1 - 1) // 2, (K1 - 1) - (K1 - 1) // 2   # 14, 15
PAD2_L, PAD2_R = (K2 - 1) // 2, (K2 - 1) - (K2 - 1) // 2   # 7, 7
PAD3_L, PAD3_R = (K3 - 1) // 2, (K3 - 1) - (K3 - 1) // 2   # 2, 2

HIGHEST = jax.lax.Precision.HIGHEST


def _elu(v):
    # nn.ELU(alpha=1.0)
    return jnp.where(v > 0, v, jnp.exp(jnp.minimum(v, 0.0)) - 1.0)


def spatial_network_kernel(x_ref, wband_ref, bias_ref, wfs_ref, wfm_ref, bf_ref,
                           out_ref):
    T = wfm_ref.shape[0]
    CT = x_ref.shape[1]
    C = CT // T

    h = x_ref[...]                                   # (TB, C*T) f32
    # Three depthwise conv + ELU layers, each one banded MXU matmul (padding is
    # encoded as zeros outside the band, so no scratch / no shifted loads).
    for l in range(3):
        h = jnp.dot(h, wband_ref[l],
                    preferred_element_type=jnp.float32,
                    precision=HIGHEST) + bias_ref[l:l + 1, :]
        h = _elu(h)

    # Channel max is the only nonlinear reduction; channel sum and mean (=sum/C)
    # are folded into wfs (the (C*T, 4) slab) on the host side.
    m = h[:, 0:T]
    for c in range(1, C):
        m = jnp.maximum(m, h[:, c * T:(c + 1) * T])

    logits = (jnp.dot(h, wfs_ref[...], preferred_element_type=jnp.float32,
                      precision=HIGHEST)
              + jnp.dot(m, wfm_ref[...], preferred_element_type=jnp.float32,
                        precision=HIGHEST)
              + bf_ref[...])                         # (TB, 4)

    # TODO(synk): nn.Dropout(0.5) after fc is stochastic in training mode;
    # implemented here with eval-mode (identity) semantics.

    z = logits - jnp.max(logits, axis=1, keepdims=True)
    e = jnp.exp(z)
    out_ref[...] = e * pl.reciprocal(jnp.sum(e, axis=1, keepdims=True),
                                     approx=False)


def _banded_depthwise_matrix(w, T, left):
    """Block-diagonal banded matrix M of shape (C*T, C*T) such that, for x laid
    out row-major as (B, C*T), (x @ M)[b, c*T + t] equals the PyTorch depthwise
    'same' Conv1d output y[b, c, t] = sum_k w[c, k] * x_pad[b, c, t + k]."""
    C, K = w.shape
    s = jnp.arange(T)[:, None]                       # input position (in-channel)
    t = jnp.arange(T)[None, :]                       # output position
    k = s - t + left                                 # tap index
    valid = (k >= 0) & (k < K)
    band = jnp.where(valid[None, :, :],
                     jnp.take(w, jnp.clip(k, 0, K - 1), axis=1),
                     0.0)                            # (C, T, T)
    eye = jnp.eye(C, dtype=w.dtype)
    # M[c*T+s, d*T+t] = eye[c,d] * band[c,s,t]
    return jnp.einsum('cd,cst->csdt', eye, band).reshape(C * T, C * T)


def pack_params(params, T):
    """One-time host-side precompute of kernel operands (keep out of hot path)."""
    w1, b1, w2, b2, w3, b3, wf, bf = params
    C = w1.shape[0]
    CT = C * T

    # NOTE: block-diagonal band is (C*T)^2 f32 per layer (256 KB at C*T=256);
    # for much larger C*T switch to per-channel (C, T, T) bands + batched dots.
    wband = jnp.stack([
        _banded_depthwise_matrix(w1, T, PAD1_L),
        _banded_depthwise_matrix(w2, T, PAD2_L),
        _banded_depthwise_matrix(w3, T, PAD3_L)], axis=0)          # (3, CT, CT)
    biases = jnp.stack([jnp.repeat(b1, T), jnp.repeat(b2, T),
                        jnp.repeat(b3, T)], axis=0)                # (3, CT)

    # fc weight (4, 3T) over [sum | max | mean] groups.  mean = sum / C, so fold
    # it into the sum slab; then fold the channel-sum itself by tiling the slab
    # over C so it contracts directly against h (B, C*T).
    wf_s = jnp.transpose(wf[:, 0 * T:1 * T])                       # (T, 4)
    wf_m = jnp.transpose(wf[:, 1 * T:2 * T])                       # (T, 4)
    wf_a = jnp.transpose(wf[:, 2 * T:3 * T])                       # (T, 4)
    wf_sum = jnp.tile(wf_s + wf_a * (1.0 / C), (C, 1))             # (CT, 4)
    return wband, biases, wf_sum, wf_m, bf.reshape(1, 4)


def spatial_network(x, packed):
    B, C, T = x.shape
    CT = C * T
    wband, biases, wf_sum, wf_m, bf2 = packed
    x2 = x.reshape(B, CT)                            # NCL -> (B, C*T), row-major

    TB = B if B <= 8 else 8                          # sublane-friendly batch tile
    grid = (pl.cdiv(B, TB),)

    return pl.pallas_call(
        spatial_network_kernel,
        out_shape=jax.ShapeDtypeStruct((B, 4), jnp.float32),
        grid=grid,
        in_specs=[
            pl.BlockSpec((TB, CT), lambda i: (i, 0)),              # x
            pl.BlockSpec((3, CT, CT), lambda i: (0, 0, 0)),        # banded convs
            pl.BlockSpec((3, CT), lambda i: (0, 0)),               # conv biases
            pl.BlockSpec((CT, 4), lambda i: (0, 0)),               # fc sum(+mean)
            pl.BlockSpec((T, 4), lambda i: (0, 0)),                # fc max
            pl.BlockSpec((1, 4), lambda i: (0, 0)),                # fc bias
        ],
        out_specs=pl.BlockSpec((TB, 4), lambda i: (i, 0)),
        compiler_params=pltpu.CompilerParams(
            dimension_semantics=("parallel",)),                    # v7x: 2 TCs
    )(x2, wband, biases, wf_sum, wf_m, bf2)


def reference(x, params):
    """Pure-JAX reference mirroring the PyTorch forward (eval mode), exact f32."""
    w1, b1, w2, b2, w3, b3, wf, bf = params
    B, C, T = x.shape

    def dwconv(x, w, b, left, right):
        xp = jnp.pad(x, ((0, 0), (0, 0), (left, right)))
        K = w.shape[1]
        acc = jnp.zeros_like(x)
        for k in range(K):
            acc = acc + xp[:, :, k:k + T] * w[:, k][None, :, None]
        return acc + b[None, :, None]

    h = _elu(dwconv(x, w1, b1, PAD1_L, PAD1_R))
    h = _elu(dwconv(h, w2, b2, PAD2_L, PAD2_R))
    h = _elu(dwconv(h, w3, b3, PAD3_L, PAD3_R))
    s = h.sum(axis=1)
    m = h.max(axis=1)
    feat = jnp.concatenate([s, m, s / C], axis=1)                  # (B, 3T)
    logits = jnp.dot(feat, wf.T, precision=HIGHEST) + bf
    return jax.nn.softmax(logits, axis=1)


def init_params(key, C, T):
    ks = jax.random.split(key, 8)
    w1 = jax.random.uniform(ks[0], (C, K1), jnp.float32, -0.3, 0.3)
    b1 = jax.random.uniform(ks[1], (C,), jnp.float32, -0.1, 0.1)
    w2 = jax.random.uniform(ks[2], (C, K2), jnp.float32, -0.3, 0.3)
    b2 = jax.random.uniform(ks[3], (C,), jnp.float32, -0.1, 0.1)
    w3 = jax.random.uniform(ks[4], (C, K3), jnp.float32, -0.3, 0.3)
    b3 = jax.random.uniform(ks[5], (C,), jnp.float32, -0.1, 0.1)
    wf = jax.random.uniform(ks[6], (4, 3 * T), jnp.float32, -0.1, 0.1)
    bf = jax.random.uniform(ks[7], (4,), jnp.float32, -0.1, 0.1)
    return (w1, b1, w2, b2, w3, b3, wf, bf)


if __name__ == "__main__":
    B, C, T = 2, 4, 64          # batch, in_channels, temporal_len
    key = jax.random.PRNGKey(0)
    kx, kp = jax.random.split(key)
    x = jax.random.normal(kx, (B, C, T), jnp.float32)
    params = init_params(kp, C, T)

    packed = pack_params(params, T)          # one-time host precompute
    out = jax.block_until_ready(spatial_network(x, packed))

    ref = jax.block_until_ready(reference(x, params))
    assert out.shape == (B, 4)
    assert jnp.allclose(out, ref, rtol=1e-4, atol=1e-4), (out, ref)
    print("KERNEL_OK")
</pallas_src>

<mosaic_0001>
module attributes {stable_mosaic.version = 11 : i64} {
  func.func @spatial_network_kernel(%arg0: i32, %arg1: memref<2x256xf32, #tpu.memory_space<vmem>>, %arg2: memref<3x256x256xf32, #tpu.memory_space<vmem>>, %arg3: memref<3x256xf32, #tpu.memory_space<vmem>>, %arg4: memref<256x4xf32, #tpu.memory_space<vmem>>, %arg5: memref<64x4xf32, #tpu.memory_space<vmem>>, %arg6: memref<1x4xf32, #tpu.memory_space<vmem>>, %arg7: memref<2x4xf32, #tpu.memory_space<vmem>>) attributes {dimension_semantics = [#tpu.dimension_semantics<parallel>], iteration_bounds = array<i64: 1>, scalar_prefetch = 0 : i64, scratch_operands = 0 : i64, tpu.core_type = #tpu.core_type<tc>, window_params = [{transform_indices = @transform_0, window_bounds = array<i64: 2, 256>}, {pipeline_mode = #tpu.pipeline_mode<synchronous>, transform_indices = @transform_1, window_bounds = array<i64: 3, 256, 256>}, {pipeline_mode = #tpu.pipeline_mode<synchronous>, transform_indices = @transform_2, window_bounds = array<i64: 3, 256>}, {pipeline_mode = #tpu.pipeline_mode<synchronous>, transform_indices = @transform_3, window_bounds = array<i64: 256, 4>}, {pipeline_mode = #tpu.pipeline_mode<synchronous>, transform_indices = @transform_4, window_bounds = array<i64: 64, 4>}, {pipeline_mode = #tpu.pipeline_mode<synchronous>, transform_indices = @transform_5, window_bounds = array<i64: 1, 4>}, {transform_indices = @transform_6, window_bounds = array<i64: 2, 4>}]} {
    %c0 = arith.constant 0 : index
    %c0_0 = arith.constant 0 : index
    %0 = vector.load %arg1[%c0, %c0_0] : memref<2x256xf32, #tpu.memory_space<vmem>>, vector<2x256xf32>
    %c0_1 = arith.constant 0 : index
    %c0_2 = arith.constant 0 : index
    %c0_3 = arith.constant 0 : index
    %1 = vector.load %arg2[%c0_1, %c0_2, %c0_3] : memref<3x256x256xf32, #tpu.memory_space<vmem>>, vector<1x256x256xf32>
    %2 = vector.shape_cast %1 : vector<1x256x256xf32> to vector<256x256xf32>
    %cst = arith.constant dense<0.000000e+00> : vector<2x256xf32>
    %3 = tpu.matmul %0, %2, %cst {dimension_numbers = #tpu.dot_dimension_numbers<[1], [0], [0], [1], [0, 0, 1, 1], [], []>, precision = #tpu.contract_precision<fp32>} : vector<2x256xf32>, vector<256x256xf32>, vector<2x256xf32> -> vector<2x256xf32>
    %c0_4 = arith.constant 0 : index
    %c0_5 = arith.constant 0 : index
    %4 = vector.load %arg3[%c0_4, %c0_5] : memref<3x256xf32, #tpu.memory_space<vmem>>, vector<1x256xf32>
    %5 = vector.broadcast %4 : vector<1x256xf32> to vector<2x256xf32>
    %6 = arith.addf %3, %5 : vector<2x256xf32>
    %cst_6 = arith.constant 0.000000e+00 : f32
    %7 = vector.broadcast %cst_6 : f32 to vector<2x256xf32>
    %8 = arith.cmpf ogt, %6, %7 : vector<2x256xf32>
    %cst_7 = arith.constant 0.000000e+00 : f32
    %9 = vector.broadcast %cst_7 : f32 to vector<2x256xf32>
    %10 = arith.minimumf %6, %9 : vector<2x256xf32>
    %11 = math.exp %10 : vector<2x256xf32>
    %cst_8 = arith.constant 1.000000e+00 : f32
    %12 = vector.broadcast %cst_8 : f32 to vector<2x256xf32>
    %13 = arith.subf %11, %12 : vector<2x256xf32>
    %14 = arith.select %8, %6, %13 : vector<2x256xi1>, vector<2x256xf32>
    %c1 = arith.constant 1 : index
    %c0_9 = arith.constant 0 : index
    %c0_10 = arith.constant 0 : index
    %15 = vector.load %arg2[%c1, %c0_9, %c0_10] : memref<3x256x256xf32, #tpu.memory_space<vmem>>, vector<1x256x256xf32>
    %16 = vector.shape_cast %15 : vector<1x256x256xf32> to vector<256x256xf32>
    %cst_11 = arith.constant dense<0.000000e+00> : vector<2x256xf32>
    %17 = tpu.matmul %14, %16, %cst_11 {dimension_numbers = #tpu.dot_dimension_numbers<[1], [0], [0], [1], [0, 0, 1, 1], [], []>, precision = #tpu.contract_precision<fp32>} : vector<2x256xf32>, vector<256x256xf32>, vector<2x256xf32> -> vector<2x256xf32>
    %c1_12 = arith.constant 1 : index
    %c0_13 = arith.constant 0 : index
    %18 = vector.load %arg3[%c1_12, %c0_13] : memref<3x256xf32, #tpu.memory_space<vmem>>, vector<1x256xf32>
    %19 = vector.broadcast %18 : vector<1x256xf32> to vector<2x256xf32>
    %20 = arith.addf %17, %19 : vector<2x256xf32>
    %cst_14 = arith.constant 0.000000e+00 : f32
    %21 = vector.broadcast %cst_14 : f32 to vector<2x256xf32>
    %22 = arith.cmpf ogt, %20, %21 : vector<2x256xf32>
    %cst_15 = arith.constant 0.000000e+00 : f32
    %23 = vector.broadcast %cst_15 : f32 to vector<2x256xf32>
    %24 = arith.minimumf %20, %23 : vector<2x256xf32>
    %25 = math.exp %24 : vector<2x256xf32>
    %cst_16 = arith.constant 1.000000e+00 : f32
    %26 = vector.broadcast %cst_16 : f32 to vector<2x256xf32>
    %27 = arith.subf %25, %26 : vector<2x256xf32>
    %28 = arith.select %22, %20, %27 : vector<2x256xi1>, vector<2x256xf32>
    %c2 = arith.constant 2 : index
    %c0_17 = arith.constant 0 : index
    %c0_18 = arith.constant 0 : index
    %29 = vector.load %arg2[%c2, %c0_17, %c0_18] : memref<3x256x256xf32, #tpu.memory_space<vmem>>, vector<1x256x256xf32>
    %30 = vector.shape_cast %29 : vector<1x256x256xf32> to vector<256x256xf32>
    %cst_19 = arith.constant dense<0.000000e+00> : vector<2x256xf32>
    %31 = tpu.matmul %28, %30, %cst_19 {dimension_numbers = #tpu.dot_dimension_numbers<[1], [0], [0], [1], [0, 0, 1, 1], [], []>, precision = #tpu.contract_precision<fp32>} : vector<2x256xf32>, vector<256x256xf32>, vector<2x256xf32> -> vector<2x256xf32>
    %c2_20 = arith.constant 2 : index
    %c0_21 = arith.constant 0 : index
    %32 = vector.load %arg3[%c2_20, %c0_21] : memref<3x256xf32, #tpu.memory_space<vmem>>, vector<1x256xf32>
    %33 = vector.broadcast %32 : vector<1x256xf32> to vector<2x256xf32>
    %34 = arith.addf %31, %33 : vector<2x256xf32>
    %cst_22 = arith.constant 0.000000e+00 : f32
    %35 = vector.broadcast %cst_22 : f32 to vector<2x256xf32>
    %36 = arith.cmpf ogt, %34, %35 : vector<2x256xf32>
    %cst_23 = arith.constant 0.000000e+00 : f32
    %37 = vector.broadcast %cst_23 : f32 to vector<2x256xf32>
    %38 = arith.minimumf %34, %37 : vector<2x256xf32>
    %39 = math.exp %38 : vector<2x256xf32>
    %cst_24 = arith.constant 1.000000e+00 : f32
    %40 = vector.broadcast %cst_24 : f32 to vector<2x256xf32>
    %41 = arith.subf %39, %40 : vector<2x256xf32>
    %42 = arith.select %36, %34, %41 : vector<2x256xi1>, vector<2x256xf32>
    %43 = vector.extract_strided_slice %42 {offsets = [0, 0], sizes = [2, 64], strides = [1, 1]} : vector<2x256xf32> to vector<2x64xf32>
    %44 = vector.extract_strided_slice %42 {offsets = [0, 64], sizes = [2, 64], strides = [1, 1]} : vector<2x256xf32> to vector<2x64xf32>
    %45 = arith.maximumf %43, %44 : vector<2x64xf32>
    %46 = vector.extract_strided_slice %42 {offsets = [0, 128], sizes = [2, 64], strides = [1, 1]} : vector<2x256xf32> to vector<2x64xf32>
    %47 = arith.maximumf %45, %46 : vector<2x64xf32>
    %48 = vector.extract_strided_slice %42 {offsets = [0, 192], sizes = [2, 64], strides = [1, 1]} : vector<2x256xf32> to vector<2x64xf32>
    %49 = arith.maximumf %47, %48 : vector<2x64xf32>
    %c0_25 = arith.constant 0 : index
    %c0_26 = arith.constant 0 : index
    %50 = vector.load %arg4[%c0_25, %c0_26] : memref<256x4xf32, #tpu.memory_space<vmem>>, vector<256x4xf32>
    %cst_27 = arith.constant dense<0.000000e+00> : vector<2x4xf32>
    %51 = tpu.matmul %42, %50, %cst_27 {dimension_numbers = #tpu.dot_dimension_numbers<[1], [0], [0], [1], [0, 0, 1, 1], [], []>, precision = #tpu.contract_precision<fp32>} : vector<2x256xf32>, vector<256x4xf32>, vector<2x4xf32> -> vector<2x4xf32>
    %c0_28 = arith.constant 0 : index
    %c0_29 = arith.constant 0 : index
    %52 = vector.load %arg5[%c0_28, %c0_29] : memref<64x4xf32, #tpu.memory_space<vmem>>, vector<64x4xf32>
    %cst_30 = arith.constant dense<0.000000e+00> : vector<2x4xf32>
    %53 = tpu.matmul %49, %52, %cst_30 {dimension_numbers = #tpu.dot_dimension_numbers<[1], [0], [0], [1], [0, 0, 1, 1], [], []>, precision = #tpu.contract_precision<fp32>} : vector<2x64xf32>, vector<64x4xf32>, vector<2x4xf32> -> vector<2x4xf32>
    %54 = arith.addf %51, %53 : vector<2x4xf32>
    %c0_31 = arith.constant 0 : index
    %c0_32 = arith.constant 0 : index
    %55 = vector.load %arg6[%c0_31, %c0_32] : memref<1x4xf32, #tpu.memory_space<vmem>>, vector<1x4xf32>
    %56 = vector.broadcast %55 : vector<1x4xf32> to vector<2x4xf32>
    %57 = arith.addf %54, %56 : vector<2x4xf32>
    %cst_33 = arith.constant dense<0xFF800000> : vector<2xf32>
    %58 = vector.multi_reduction <maximumf>, %57, %cst_33 [1] : vector<2x4xf32> to vector<2xf32>
    %59 = vector.shape_cast %58 : vector<2xf32> to vector<2x1xf32>
    %60 = vector.broadcast %59 : vector<2x1xf32> to vector<2x4xf32>
    %61 = arith.subf %57, %60 : vector<2x4xf32>
    %62 = math.exp %61 : vector<2x4xf32>
    %cst_34 = arith.constant dense<0.000000e+00> : vector<2xf32>
    %63 = vector.multi_reduction <add>, %62, %cst_34 [1] : vector<2x4xf32> to vector<2xf32>
    %64 = vector.shape_cast %63 : vector<2xf32> to vector<2x1xf32>
    %65 = tpu.reciprocal %64 : vector<2x1xf32> -> vector<2x1xf32>
    %66 = vector.broadcast %65 : vector<2x1xf32> to vector<2x4xf32>
    %67 = arith.mulf %62, %66 : vector<2x4xf32>
    %c0_35 = arith.constant 0 : index
    %c0_36 = arith.constant 0 : index
    %68 = vector.load %arg7[%c0_35, %c0_36] : memref<2x4xf32, #tpu.memory_space<vmem>>, vector<2x4xf32>
    tpu.vector_store %arg7[%c0_35, %c0_36], %67 {strides = array<i32>} : memref<2x4xf32, #tpu.memory_space<vmem>>, vector<2x4xf32>,
    return
  }
  func.func @transform_0(%arg0: i32) -> (i32, i32) {
    %c0_i32 = arith.constant 0 : i32
    %c0_i32_0 = arith.constant 0 : i32
    return %arg0, %c0_i32 : i32, i32
  }
  func.func @transform_1(%arg0: i32) -> (i32, i32, i32) {
    %c0_i32 = arith.constant 0 : i32
    %c0_i32_0 = arith.constant 0 : i32
    %c0_i32_1 = arith.constant 0 : i32
    %c0_i32_2 = arith.constant 0 : i32
    return %c0_i32, %c0_i32_0, %c0_i32_1 : i32, i32, i32
  }
  func.func @transform_2(%arg0: i32) -> (i32, i32) {
    %c0_i32 = arith.constant 0 : i32
    %c0_i32_0 = arith.constant 0 : i32
    %c0_i32_1 = arith.constant 0 : i32
    return %c0_i32, %c0_i32_0 : i32, i32
  }
  func.func @transform_3(%arg0: i32) -> (i32, i32) {
    %c0_i32 = arith.constant 0 : i32
    %c0_i32_0 = arith.constant 0 : i32
    %c0_i32_1 = arith.constant 0 : i32
    return %c0_i32, %c0_i32_0 : i32, i32
  }
  func.func @transform_4(%arg0: i32) -> (i32, i32) {
    %c0_i32 = arith.constant 0 : i32
    %c0_i32_0 = arith.constant 0 : i32
    %c0_i32_1 = arith.constant 0 : i32
    return %c0_i32, %c0_i32_0 : i32, i32
  }
  func.func @transform_5(%arg0: i32) -> (i32, i32) {
    %c0_i32 = arith.constant 0 : i32
    %c0_i32_0 = arith.constant 0 : i32
    %c0_i32_1 = arith.constant 0 : i32
    return %c0_i32, %c0_i32_0 : i32, i32
  }
  func.func @transform_6(%arg0: i32) -> (i32, i32) {
    %c0_i32 = arith.constant 0 : i32
    %c0_i32_0 = arith.constant 0 : i32
    return %arg0, %c0_i32 : i32, i32
  }
}

</mosaic_0001>

<bundles_post_ra>
// kernel: tpu_custom_call.1
= control target key start
LH: loop header
LB: loop body
LE: loop exit
PB: predicated region body
PF: predicated region fallthrough
CT: control target
= control target key end

     0   :  { %11 = vsyncpa [#allocation3], 0  ;;  %s11565_s0 = inlined_call_operand.vmem [shape: f32[2,256], index: 0, kind: input, shape index: {}]   ;;  %s11566_s1 = inlined_call_operand.hbm [shape: f32[3,256,256], index: 1, kind: input, shape index: {}]   ;;  %s11567_s2 = inlined_call_operand.vmem [shape: f32[3,256], index: 2, kind: input, shape index: {}]   ;;  %s11568_s3 = inlined_call_operand.vmem [shape: f32[256,4], index: 3, kind: input, shape index: {}]   ;;  %s11569_s4 = inlined_call_operand.vmem [shape: f32[64,4], index: 4, kind: input, shape index: {}]   ;;  %s11570_s5 = inlined_call_operand.vmem [shape: f32[1,4], index: 5, kind: input, shape index: {}]   ;;  %s11571_s6 = inlined_call_operand.hbm [shape: f32[2,4], index: 6, kind: output, shape index: {}]  }
   0x1   :  { %12 = vsyncpa [#allocation4], 0  ;;  %s7572_s21 = smov [#allocation2]   ;;  %s7524_s25 = scalar_lea.hbm %s11566_s1, 24576 }
   0x2   :  { %s20_s22 = sshll.u32 %s7572_s21, 4  ;;  %p7525_p0 = scmp.ne.s32.totalorder %s11566_s1, %s7524_s25  ;;  %s21_s22 = int_to_ptr.vmem [resolvable:$true] %s20_s22 }
   0x3   :  { %p7528_p1 = scmp.lt.u32.totalorder %s7524_s25, %s11566_s1 }
   0x5   :  { %p7530_p2 = pnand %p7528_p1, %p7525_p0 }
   0x7   :  { %7533 = shalt.err (!%p7530_p2)
}
   0x8   :  { %s7534_s30 = scalar_lea.vmem %s21_s22, 24576  ;;  %p7539_p4 = scmp.lt.s32.totalorder %s21_s22, %s21_s22 }
   0x9   :  { %p7535_p3 = scmp.ne.s32.totalorder %s21_s22, %s7534_s30  ;;  %p7540_p5 = scmp.lt.s32.totalorder %s7534_s30, %s7534_s30 }
   0xb   :  { %p7541_p6 = por %p7540_p5, %p7539_p4 }
   0xd   :  { %p7542_p7 = pnand %p7541_p6, %p7535_p3 }
   0xf   :  { %7545 = shalt.err (!%p7542_p7)
}
  0x10   :  { %s7573_s7 = smov 256   ;;  %s7574_s8 = smov 16  }
  0x11   :  { %26 = dma.hbm_to_vmem [thread:$0]  %s11566_s1, 24576, %s21_s22, [#allocation3], %s7573_s7, %s7573_s7, %s7574_s8  }
  0x12   :  { %7568 = dma.done.wait [#allocation3], 24576  }
  0x13   :  { %7569 = vsyncadd [#allocation3], 4294942720  ;;  %v7627_v0 = vld [vmem:[#allocation2 + $0x8] sm:$0xff]  ;;  %v7629_v1 = vld [vmem:[#allocation2 + $0x18] sm:$0xff]  ;;  %vm7576_vm4 = vmmov 0   ;;  %vm4221_vm7 = vcmask 523264  }
  0x14   :  { %12314 = vst [vmem:[#allocation8_spill] sm:$0xff] %v7627_v0  ;;  %12315 = vst [vmem:[#allocation9_spill] sm:$0xff] %v7629_v1  ;;  %v7631_v2 = vld [vmem:[#allocation2] sm:$0xff]  ;;  %v11614_v3 = vand.u32 4294901760, %v7627_v0  ;;  %v11612_v4 = vand.u32 4294901760, %v7629_v1  ;;  %v7635_v5 = vld [vmem:[#allocation2 + $0x10] sm:$0xff] }
  0x15   :  { %12316 = vst [vmem:[#allocation10_spill] sm:$0xff] %v7631_v2  ;;  %12317 = vst [vmem:[#allocation11_spill] sm:$0xff] %v7635_v5  ;;  %v11610_v6 = vand.u32 4294901760, %v7631_v2  ;;  %v7638_v7 = vld [vmem:[#allocation2 + $0x28] sm:$0xff]  ;;  %v7640_v8 = vld [vmem:[#allocation2 + $0x38] sm:$0xff]  ;;  %v11608_v9 = vand.u32 4294901760, %v7635_v5 }
  0x16   :  { %12318 = vst [vmem:[#allocation12_spill] sm:$0xff] %v7638_v7  ;;  %12319 = vst [vmem:[#allocation13_spill] sm:$0xff] %v7640_v8  ;;  %v11607_v10 = vand.u32 4294901760, %v7638_v7  ;;  %v11604_v11 = vand.u32 4294901760, %v7640_v8  ;;  %v7645_v12 = vld [vmem:[#allocation2 + $0x20] sm:$0xff]  ;;  %v7647_v13 = vld [vmem:[#allocation2 + $0x30] sm:$0xff]  ;;  %v7652_v14 = vsub.f32 %v7627_v0, %v11614_v3  ;;  %v7657_v15 = vsub.f32 %v7629_v1, %v11612_v4 }
  0x17   :  { %12320 = vst [vmem:[#allocation14_spill] sm:$0xff] %v7645_v12  ;;  %12321 = vst [vmem:[#allocation15_spill] sm:$0xff] %v7647_v13  ;;  %v7662_v16 = vsub.f32 %v7631_v2, %v11610_v6  ;;  %v11603_v17 = vand.u32 4294901760, %v7645_v12  ;;  %v7668_v18 = vsub.f32 %v7635_v5, %v11608_v9  ;;  %v11600_v21 = vand.u32 4294901760, %v7647_v13  ;;  %v7717_v38 = vld [vmem:[#allocation2 + $0x48] sm:$0xff]  ;;  %v7719_v39 = vld [vmem:[#allocation2 + $0x58] sm:$0xff] }
  0x18   :  { %12322 = vst [vmem:[#allocation16_spill] sm:$0xff] %v7652_v14  ;;  %12323 = vst [vmem:[#allocation17_spill] sm:$0xff] %v7657_v15  ;;  %v7673_v19 = vsub.f32 %v7638_v7, %v11607_v10  ;;  %v7678_v20 = vsub.f32 %v7640_v8, %v11604_v11  ;;  %v11582_v22 = vand.u32 4294901760, %v7652_v14  ;;  %v11581_v23 = vand.u32 4294901760, %v7657_v15  ;;  %v7724_v44 = vld [vmem:[#allocation2 + $0x40] sm:$0xff]  ;;  %v7729_v49 = vld [vmem:[#allocation2 + $0x50] sm:$0xff] }
  0x19   :  { %12324 = vst [vmem:[#allocation18_spill] sm:$0xff] %v7662_v16  ;;  %12325 = vst [vmem:[#allocation19_spill] sm:$0xff] %v7668_v18  ;;  %v11580_v24 = vand.u32 4294901760, %v7662_v16  ;;  %v7687_v25 = vsub.f32 %v7645_v12, %v11603_v17  ;;  %v11579_v26 = vand.u32 4294901760, %v7668_v18  ;;  %v7695_v29 = vsub.f32 %v7647_v13, %v11600_v21  ;;  %v7731_v50 = vld [vmem:[#allocation2 + $0x68] sm:$0xff]  ;;  %v7735_v55 = vld [vmem:[#allocation2 + $0x78] sm:$0xff] }
  0x1a   :  { %12326 = vst [vmem:[#allocation20_spill] sm:$0xff] %v7673_v19  ;;  %12327 = vst [vmem:[#allocation21_spill] sm:$0xff] %v7678_v20  ;;  %v11577_v27 = vand.u32 4294901760, %v7673_v19  ;;  %v11575_v28 = vand.u32 4294901760, %v7678_v20  ;;  %v274_v30 = vsub.f32 %v7652_v14, %v11582_v22  ;;  %v286_v31 = vsub.f32 %v7657_v15, %v11581_v23  ;;  %v7737_v56 = vld [vmem:[#allocation2 + $0x60] sm:$0xff]  ;;  %v7889_v17 = vld [vmem:[#allocation2 + $0xc8] sm:$0xff] }
  0x1b   :  { %12328 = vst [vmem:[#allocation22_spill] sm:$0xff] %v7687_v25  ;;  %12329 = vst [vmem:[#allocation23_spill] sm:$0xff] %v7695_v29  ;;  %v280_v32 = vsub.f32 %v7662_v16, %v11580_v24  ;;  %v11573_v33 = vand.u32 4294901760, %v7687_v25  ;;  %v292_v34 = vsub.f32 %v7668_v18, %v11579_v26  ;;  %v11572_v37 = vand.u32 4294901760, %v7695_v29  ;;  %v7811_v26 = vld [vmem:[#allocation2 + $0x98] sm:$0xff]  ;;  %v7820_v22 = vld [vmem:[#allocation2 + $0x80] sm:$0xff] }
  0x1c   :  { %v298_v35 = vsub.f32 %v7673_v19, %v11577_v27  ;;  %v310_v36 = vsub.f32 %v7678_v20, %v11575_v28  ;;  %12330 = vst [vmem:[#allocation24_spill] sm:$0xff] %v7717_v38  ;;  %12331 = vst [vmem:[#allocation25_spill] sm:$0xff] %v7719_v39  ;;  %v275_v40 = vand.u32 4294901760, %v274_v30  ;;  %v287_v41 = vand.u32 4294901760, %v286_v31  ;;  %v7752_v31 = vld [vmem:[#allocation2 + $0x70] sm:$0xff]  ;;  %v7803_v28 = vld [vmem:[#allocation2 + $0x88] sm:$0xff] }
  0x1d   :  { %v281_v42 = vand.u32 4294901760, %v280_v32  ;;  %v304_v43 = vsub.f32 %v7687_v25, %v11573_v33  ;;  %12332 = vst [vmem:[#allocation26_spill] sm:$0xff] %v7724_v44  ;;  %v293_v45 = vand.u32 4294901760, %v292_v34  ;;  %v316_v48 = vsub.f32 %v7695_v29, %v11572_v37  ;;  %12333 = vst [vmem:[#allocation27_spill] sm:$0xff] %v7729_v49  ;;  %v7913_v3 = vld [vmem:[#allocation2 + $0xc0] sm:$0xff]  ;;  %s7579_s15 = smov [#allocation5]  }
  0x1e   :  { %v299_v46 = vand.u32 4294901760, %v298_v35  ;;  %v311_v47 = vand.u32 4294901760, %v310_v36  ;;  %12334 = vst [vmem:[#allocation28_spill] sm:$0xff] %v7731_v50  ;;  %v6112_v51 = vpack.c.bf16 %v287_v41, %v275_v40  ;;  %v11599_v53 = vand.u32 4294901760, %v7717_v38  ;;  %12335 = vst [vmem:[#allocation29_spill] sm:$0xff] %v7735_v55  ;;  %s5651_s16 = sshll.u32 %s7579_s15, 4  ;;  %s5652_s16 = int_to_ptr.vmem [resolvable:$true] %s5651_s16 }
  0x1f   :  { %v305_v52 = vand.u32 4294901760, %v304_v43  ;;  %v11593_v54 = vand.u32 4294901760, %v7719_v39  ;;  %12336 = vst [vmem:[#allocation30_spill] sm:$0xff] %v7737_v56  ;;  %v6114_v57 = vpack.c.bf16 %v293_v45, %v281_v42  ;;  %v317_v59 = vand.u32 4294901760, %v316_v48  ;;  %12339 = vst [vmem:[#allocation33_spill] sm:$0xff] %v7752_v31  ;;  %p7551_p9 = scmp.lt.s32.totalorder %s5652_s16, %s5652_s16 }
  0x20   :  { %v6116_v58 = vpack.c.bf16 %v311_v47, %v299_v46  ;;  %v11592_v60 = vand.u32 4294901760, %v7724_v44  ;;  %6113 = vmatprep.subr.bf16.mxu0 %v6112_v51  ;;  %v7743_v61 = vsub.f32 %v7717_v38, %v11599_v53  ;;  %v11589_v63 = vand.u32 4294901760, %v7729_v49  ;;  %12346 = vst [vmem:[#allocation40_spill] sm:$0xff] %v7803_v28  ;;  %12347 = vst [vmem:[#allocation41_spill] sm:$0xff] %v7811_v26  ;;  %v8089_v38 = vld [vmem:[#allocation2 + $0x158] sm:$0xff] }
  0x21   :  { %v7748_v62 = vsub.f32 %v7719_v39, %v11593_v54  ;;  %v11588_v30 = vand.u32 4294901760, %v7731_v50  ;;  %6115 = vmatpush1.bf16.msra.mxu0 %v6114_v57  ;;  %v6118_v32 = vpack.c.bf16 %v317_v59, %v305_v52  ;;  %v11587_v35 = vand.u32 4294901760, %v7735_v55  ;;  %12348 = vst [vmem:[#allocation42_spill] sm:$0xff] %v7820_v22  ;;  %12360 = vst [vmem:[#allocation54_spill] sm:$0xff] %v7889_v17 }
  0x22   :  { %12337 = vst [vmem:[#allocation31_spill] sm:$0xff] %v7743_v61  ;;  %v7757_v34 = vsub.f32 %v7724_v44, %v11592_v60  ;;  %v11585_v36 = vand.u32 4294901760, %v7737_v56  ;;  %6117 = vmatprep.subr.bf16.mxu0 %v6116_v58  ;;  %v11574_v40 = vand.u32 4294901760, %v7743_v61  ;;  %v7766_v42 = vsub.f32 %v7729_v49, %v11589_v63  ;;  %v7831_v60 = vld [vmem:[#allocation2 + $0xb8] sm:$0xff]  ;;  %12362 = vst [vmem:[#allocation56_spill] sm:$0xff] %v7913_v3 }
  0x23   :  { %12338 = vst [vmem:[#allocation32_spill] sm:$0xff] %v7748_v62  ;;  %v11576_v41 = vand.u32 4294901760, %v7748_v62  ;;  %v7771_v43 = vsub.f32 %v7731_v50, %v11588_v30  ;;  %v7777_v46 = vsub.f32 %v7735_v55, %v11587_v35  ;;  %v11584_v47 = vand.u32 4294901760, %v7752_v31  ;;  %12351 = vst [vmem:[#allocation45_spill] sm:$0xff] %v7831_v60  ;;  %v8015_v50 = vld [vmem:[#allocation2 + $0x128] sm:$0xff] }
  0x24   :  { %12340 = vst [vmem:[#allocation34_spill] sm:$0xff] %v7757_v34  ;;  %12341 = vst [vmem:[#allocation35_spill] sm:$0xff] %v7766_v42  ;;  %v11578_v45 = vand.u32 4294901760, %v7757_v34  ;;  %v7783_v48 = vsub.f32 %v7737_v56, %v11585_v36  ;;  %v322_v51 = vsub.f32 %v7743_v61, %v11574_v40  ;;  %v11583_v57 = vand.u32 4294901760, %v7766_v42 }
  0x25   :  { %12342 = vst [vmem:[#allocation36_spill] sm:$0xff] %v7771_v43  ;;  %12343 = vst [vmem:[#allocation37_spill] sm:$0xff] %v7777_v46  ;;  %v334_v52 = vsub.f32 %v7748_v62, %v11576_v41  ;;  %v11586_v58 = vand.u32 4294901760, %v7771_v43  ;;  %6119 = vmatpush1.bf16.msra.mxu0 %v6118_v32  ;;  %v11590_v37 = vand.u32 4294901760, %v7777_v46  ;;  %v7801_v40 = vsub.f32 %v7752_v31, %v11584_v47 }
  0x26   :  { %12344 = vst [vmem:[#allocation38_spill] sm:$0xff] %v7783_v48  ;;  %v328_v59 = vsub.f32 %v7757_v34, %v11578_v45  ;;  %v11591_v33 = vand.u32 4294901760, %v7783_v48  ;;  %v323_v41 = vand.u32 4294901760, %v322_v51  ;;  %v340_v32 = vsub.f32 %v7766_v42, %v11583_v57  ;;  %v7822_v57 = vld [vmem:[#allocation2 + $0x90] sm:$0xff]  ;;  %12381 = vst [vmem:[#allocation68_spill] sm:$0xff] %v8015_v50 }
  0x27   :  { %12345 = vst [vmem:[#allocation39_spill] sm:$0xff] %v7801_v40  ;;  %v335_v27 = vand.u32 4294901760, %v334_v52  ;;  %v346_v45 = vsub.f32 %v7771_v43, %v11586_v58  ;;  %v358_v23 = vsub.f32 %v7777_v46, %v11590_v37  ;;  %v11594_v52 = vand.u32 4294901760, %v7801_v40  ;;  %12349 = vst [vmem:[#allocation43_spill] sm:$0xff] %v7822_v57 }
  0x28   :  { %v329_v24 = vand.u32 4294901760, %v328_v59  ;;  %v352_v51 = vsub.f32 %v7783_v48, %v11591_v33  ;;  %v341_v36 = vand.u32 4294901760, %v340_v32  ;;  %v11596_v35 = vand.u32 4294901760, %v7803_v28  ;;  %v7825_v59 = vld [vmem:[#allocation2 + $0xa8] sm:$0xff]  ;;  %12388 = vst [vmem:[#allocation73_spill] sm:$0xff] %v8089_v38 }
  0x29   :  { %v6120_v47 = vpack.c.bf16 %v335_v27, %v323_v41  ;;  %v347_v58 = vand.u32 4294901760, %v346_v45  ;;  %12350 = vst [vmem:[#allocation44_spill] sm:$0xff] %v7825_v59  ;;  %v359_v30 = vand.u32 4294901760, %v358_v23  ;;  %v364_v37 = vsub.f32 %v7801_v40, %v11594_v52  ;;  %v7840_v45 = vld [vmem:[#allocation2 + $0xa0] sm:$0xff]  ;;  %v8069_v48 = vld [vmem:[#allocation2 + $0x148] sm:$0xff] }
  0x2a   :  { %v353_v63 = vand.u32 4294901760, %v352_v51  ;;  %v11595_v33 = vand.u32 4294901760, %v7811_v26  ;;  %v6122_v54 = vpack.c.bf16 %v341_v36, %v329_v24  ;;  %v7836_v27 = vsub.f32 %v7803_v28, %v11596_v35  ;;  %12353 = vst [vmem:[#allocation47_spill] sm:$0xff] %v7840_v45  ;;  %12385 = vst [vmem:[#allocation72_spill] sm:$0xff] %v8069_v48 }
  0x2b   :  { %6121 = vmatprep.subr.bf16.mxu0 %v6120_v47  ;;  %v11597_v41 = vand.u32 4294901760, %v7820_v22  ;;  %v11598_v23 = vand.u32 4294901760, %v7822_v57  ;;  %v6124_v32 = vpack.c.bf16 %v359_v30, %v347_v58  ;;  %v365_v51 = vand.u32 4294901760, %v364_v37  ;;  %v7860_v58 = vld [vmem:[#allocation2 + $0xb0] sm:$0xff] }
  0x2c   :  { %12352 = vst [vmem:[#allocation46_spill] sm:$0xff] %v7836_v27  ;;  %v7845_v52 = vsub.f32 %v7811_v26, %v11595_v33  ;;  %v11601_v24 = vand.u32 4294901760, %v7825_v59  ;;  %6123 = vmatpush1.bf16.msra.mxu0 %v6122_v54  ;;  %v11602_v36 = vand.u32 4294901760, %v7836_v27  ;;  %v11605_v37 = vand.u32 4294901760, %v7831_v60  ;;  %12357 = vst [vmem:[#allocation51_spill] sm:$0xff] %v7860_v58 }
  0x2d   :  { %v7852_v47 = vsub.f32 %v7820_v22, %v11597_v41  ;;  %v7857_v30 = vsub.f32 %v7822_v57, %v11598_v23  ;;  %6125 = vmatprep.subr.bf16.mxu0 %v6124_v32  ;;  %v6126_v33 = vpack.c.bf16 %v365_v51, %v353_v63  ;;  %v11609_v41 = vand.u32 4294901760, %v7840_v45  ;;  %v7929_v22 = vld [vmem:[#allocation2 + $0xf8] sm:$0xff] }
  0x2e   :  { %12354 = vst [vmem:[#allocation48_spill] sm:$0xff] %v7845_v52  ;;  %v11606_v54 = vand.u32 4294901760, %v7845_v52  ;;  %v7866_v35 = vsub.f32 %v7825_v59, %v11601_v24  ;;  %v370_v23 = vsub.f32 %v7836_v27, %v11602_v36  ;;  %v7877_v63 = vsub.f32 %v7831_v60, %v11605_v37  ;;  %12367 = vst [vmem:[#allocation60_spill] sm:$0xff] %v7929_v22 }
  0x2f   :  { %12355 = vst [vmem:[#allocation49_spill] sm:$0xff] %v7852_v47  ;;  %12356 = vst [vmem:[#allocation50_spill] sm:$0xff] %v7857_v30  ;;  %v11611_v53 = vand.u32 4294901760, %v7852_v47  ;;  %v11613_v21 = vand.u32 4294901760, %v7857_v30  ;;  %v11618_v24 = vand.u32 4294901760, %v7860_v58  ;;  %v7887_v36 = vsub.f32 %v7840_v45, %v11609_v41 }
  0x30   :  { %12358 = vst [vmem:[#allocation52_spill] sm:$0xff] %v7866_v35  ;;  %12359 = vst [vmem:[#allocation53_spill] sm:$0xff] %v7877_v63  ;;  %v382_v32 = vsub.f32 %v7845_v52, %v11606_v54  ;;  %v11615_v51 = vand.u32 4294901760, %v7866_v35  ;;  %6127 = vmatpush1.bf16.msra.mxu0 %v6126_v33  ;;  %v371_v11 = vand.u32 4294901760, %v370_v23  ;;  %v11621_v10 = vand.u32 4294901760, %v7877_v63  ;;  %v7907_v23 = vld [vmem:[#allocation2 + $0xd8] sm:$0xff] }
  0x31   :  { %v376_v37 = vsub.f32 %v7852_v47, %v11611_v53  ;;  %v388_v54 = vsub.f32 %v7857_v30, %v11613_v21  ;;  %v7905_v33 = vsub.f32 %v7860_v58, %v11618_v24  ;;  %12361 = vst [vmem:[#allocation55_spill] sm:$0xff] %v7907_v23  ;;  %v12364_v60 = vand.u32 4294901760, %v7887_v36  ;;  %v8011_v30 = vld [vmem:[#allocation2 + $0x110] sm:$0xff] }
  0x32   :  { %v383_v9 = vand.u32 4294901760, %v382_v32  ;;  %v394_v41 = vsub.f32 %v7866_v35, %v11615_v51  ;;  %v406_v21 = vsub.f32 %v7877_v63, %v11621_v10  ;;  %v11624_v32 = vand.u32 4294901760, %v7889_v17  ;;  %v7915_v51 = vld [vmem:[#allocation2 + $0xd0] sm:$0xff]  ;;  %12380 = vst [vmem:[#allocation67_spill] sm:$0xff] %v8011_v30 }
  0x33   :  { %v377_v53 = vand.u32 4294901760, %v376_v37  ;;  %v389_v4 = vand.u32 4294901760, %v388_v54  ;;  %12363 = vst [vmem:[#allocation57_spill] sm:$0xff] %v7915_v51  ;;  %v400_v24 = vsub.f32 %v7887_v36, %v12364_v60  ;;  %v11625_v58 = vand.u32 4294901760, %v7905_v33  ;;  %v7921_v37 = vld [vmem:[#allocation2 + $0xe8] sm:$0xff] }
  0x34   :  { %v6128_v6 = vpack.c.bf16 %v383_v9, %v371_v11  ;;  %v395_v45 = vand.u32 4294901760, %v394_v41  ;;  %12365 = vst [vmem:[#allocation58_spill] sm:$0xff] %v7921_v37  ;;  %v407_v59 = vand.u32 4294901760, %v406_v21  ;;  %v11626_v10 = vand.u32 4294901760, %v7907_v23  ;;  %v7936_v21 = vld [vmem:[#allocation2 + $0xe0] sm:$0xff] }
  0x35   :  { %v6130_v54 = vpack.c.bf16 %v389_v4, %v377_v53  ;;  %v7927_v57 = vsub.f32 %v7889_v17, %v11624_v32  ;;  %v401_v9 = vand.u32 4294901760, %v400_v24  ;;  %v412_v11 = vsub.f32 %v7905_v33, %v11625_v58  ;;  %12368 = vst [vmem:[#allocation61_spill] sm:$0xff] %v7936_v21 }
  0x36   :  { %6129 = vmatprep.subr.bf16.mxu0 %v6128_v6  ;;  %v11627_v60 = vand.u32 4294901760, %v7913_v3  ;;  %v11629_v4 = vand.u32 4294901760, %v7915_v51  ;;  %v6132_v53 = vpack.c.bf16 %v407_v59, %v395_v45  ;;  %v7942_v32 = vsub.f32 %v7907_v23, %v11626_v10  ;;  %v7956_v45 = vld [vmem:[#allocation2 + $0xf0] sm:$0xff] }
  0x37   :  { %12366 = vst [vmem:[#allocation59_spill] sm:$0xff] %v7927_v57  ;;  %6131 = vmatpush1.bf16.msra.mxu0 %v6130_v54  ;;  %v11632_v41 = vand.u32 4294901760, %v7927_v57  ;;  %v11634_v6 = vand.u32 4294901760, %v7921_v37  ;;  %v413_v24 = vand.u32 4294901760, %v412_v11  ;;  %12370 = vst [vmem:[#allocation63_spill] sm:$0xff] %v7956_v45  ;;  %vm5632_vm8 = vcmask 25600  }
  0x38   :  { %12369 = vst [vmem:[#allocation62_spill] sm:$0xff] %v7942_v32  ;;  %v7948_v58 = vsub.f32 %v7913_v3, %v11627_v60  ;;  %v7953_v54 = vsub.f32 %v7915_v51, %v11629_v4  ;;  %6133 = vmatprep.subr.bf16.mxu0 %v6132_v53  ;;  %v12371_v53 = vand.u32 4294901760, %v7929_v22  ;;  %v12373_v17 = vand.u32 4294901760, %v7942_v32 }
  0x39   :  { %v418_v10 = vsub.f32 %v7927_v57, %v11632_v41  ;;  %v7965_v60 = vsub.f32 %v7921_v37, %v11634_v6  ;;  %v6134_v4 = vpack.c.bf16 %v413_v24, %v401_v9  ;;  %v7975_v41 = vld [vmem:[#allocation2 + $0x108] sm:$0xff] }
  0x3a   :  { %v11637_v51 = vand.u32 4294901760, %v7948_v58  ;;  %v11639_v59 = vand.u32 4294901760, %v7953_v54  ;;  %v7973_v23 = vsub.f32 %v7929_v22, %v12371_v53  ;;  %12372 = vst [vmem:[#allocation64_spill] sm:$0xff] %v7975_v41  ;;  %v430_v6 = vsub.f32 %v7942_v32, %v12373_v17  ;;  %v7994_v17 = vld [vmem:[#allocation2 + $0x118] sm:$0xff] }
  0x3b   :  { %v419_v11 = vand.u32 4294901760, %v418_v10  ;;  %6135 = vmatpush1.bf16.msra.mxu0 %v6134_v4  ;;  %v12374_v10 = vand.u32 4294901760, %v7936_v21  ;;  %12375 = vst [vmem:[#allocation65_spill] sm:$0xff] %v7994_v17  ;;  %v12376_v4 = vand.u32 4294901760, %v7965_v60 }
  0x3c   :  { %v424_v24 = vsub.f32 %v7948_v58, %v11637_v51  ;;  %v436_v53 = vsub.f32 %v7953_v54, %v11639_v59  ;;  %v431_v37 = vand.u32 4294901760, %v430_v6  ;;  %v12377_v51 = vand.u32 4294901760, %v7956_v45  ;;  %v8009_v6 = vld [vmem:[#allocation2 + $0x100] sm:$0xff] }
  0x3d   :  { %v7992_v22 = vsub.f32 %v7936_v21, %v12374_v10  ;;  %v442_v9 = vsub.f32 %v7965_v60, %v12376_v4  ;;  %v11651_v59 = vand.u32 4294901760, %v7975_v41  ;;  %v12378_v31 = vand.u32 4294901760, %v7973_v23  ;;  %12379 = vst [vmem:[#allocation66_spill] sm:$0xff] %v8009_v6 }
  0x3e   :  { %v8002_v26 = vsub.f32 %v7956_v45, %v12377_v51  ;;  %v425_v3 = vand.u32 4294901760, %v424_v24  ;;  %v437_v28 = vand.u32 4294901760, %v436_v53  ;;  %v6136_v4 = vpack.c.bf16 %v431_v37, %v419_v11 }
  0x3f   :  { %v454_v10 = vsub.f32 %v7973_v23, %v12378_v31  ;;  %v11650_v56 = vand.u32 4294901760, %v7992_v22  ;;  %v443_v47 = vand.u32 4294901760, %v442_v9  ;;  %v11656_v51 = vand.u32 4294901760, %v7994_v17  ;;  %v8035_v9 = vld [vmem:[#allocation2 + $0x138] sm:$0xff] }
  0x40   :  { %v11652_v55 = vand.u32 4294901760, %v8002_v26  ;;  %v6138_v24 = vpack.c.bf16 %v437_v28, %v425_v3  ;;  %v8023_v49 = vsub.f32 %v7975_v41, %v11651_v59  ;;  %6137 = vmatprep.subr.bf16.mxu0 %v6136_v4  ;;  %v11659_v3 = vand.u32 4294901760, %v8009_v6  ;;  %12382 = vst [vmem:[#allocation69_spill] sm:$0xff] %v8035_v9 }
  0x41   :  { %v455_v53 = vand.u32 4294901760, %v454_v10  ;;  %v448_v31 = vsub.f32 %v7992_v22, %v11650_v56  ;;  %v8031_v11 = vsub.f32 %v7994_v17, %v11656_v51  ;;  %v11660_v28 = vand.u32 4294901760, %v8011_v30  ;;  %v8037_v10 = vld [vmem:[#allocation2 + $0x120] sm:$0xff] }
  0x42   :  { %v460_v37 = vsub.f32 %v8002_v26, %v11652_v55  ;;  %12383 = vst [vmem:[#allocation70_spill] sm:$0xff] %v8037_v10  ;;  %6139 = vmatpush1.bf16.msra.mxu0 %v6138_v24  ;;  %v11665_v59 = vand.u32 4294901760, %v8023_v49  ;;  %v11667_v55 = vand.u32 4294901760, %v8015_v50  ;;  %v8045_v51 = vsub.f32 %v8009_v6, %v11659_v3  ;;  %v8052_v24 = vld [vmem:[#allocation2 + $0x130] sm:$0xff] }
  0x43   :  { %v6140_v56 = vpack.c.bf16 %v455_v53, %v443_v47  ;;  %v449_v4 = vand.u32 4294901760, %v448_v31  ;;  %v11668_v52 = vand.u32 4294901760, %v8031_v11  ;;  %v8050_v27 = vsub.f32 %v8011_v30, %v11660_v28  ;;  %12384 = vst [vmem:[#allocation71_spill] sm:$0xff] %v8052_v24  ;;  %v8104_v6 = vld [vmem:[#allocation2 + $0x150] sm:$0xff] }
  0x44   :  { %v461_v44 = vand.u32 4294901760, %v460_v37  ;;  %v466_v47 = vsub.f32 %v8023_v49, %v11665_v59  ;;  %v8061_v31 = vsub.f32 %v8015_v50, %v11667_v55  ;;  %v12386_v39 = vand.u32 4294901760, %v8035_v9  ;;  %12391 = vst [vmem:[#allocation75_spill] sm:$0xff] %v8104_v6 }
  0x45   :  { %6141 = vmatprep.subr.bf16.mxu0 %v6140_v56  ;;  %v478_v28 = vsub.f32 %v8031_v11, %v11668_v52  ;;  %v11670_v56 = vand.u32 4294901760, %v8045_v51  ;;  %v11671_v40 = vand.u32 4294901760, %v8050_v27 }
  0x46   :  { %v6142_v3 = vpack.c.bf16 %v461_v44, %v449_v4  ;;  %v467_v59 = vand.u32 4294901760, %v466_v47  ;;  %v8075_v55 = vsub.f32 %v8035_v9, %v12386_v39  ;;  %v11679_v44 = vand.u32 4294901760, %v8052_v24  ;;  %v8101_v9 = vld [vmem:[#allocation2 + $0x140] sm:$0xff] }
  0x47   :  { %v479_v4 = vand.u32 4294901760, %v478_v28  ;;  %v472_v52 = vsub.f32 %v8045_v51, %v11670_v56  ;;  %v484_v37 = vsub.f32 %v8050_v27, %v11671_v40  ;;  %v12387_v47 = vand.u32 4294901760, %v8037_v10  ;;  %12390 = vst [vmem:[#allocation74_spill] sm:$0xff] %v8101_v9 }
  0x48   :  { %6143 = vmatpush1.bf16.msra.mxu0 %v6142_v3  ;;  %v12389_v39 = vand.u32 4294901760, %v8061_v31  ;;  %v11681_v28 = vand.u32 4294901760, %v8075_v55  ;;  %v8098_v56 = vsub.f32 %v8052_v24, %v11679_v44  ;;  %v11686_v44 = vand.u32 4294901760, %v8089_v38  ;;  %v8111_v24 = vld [vmem:[#allocation2 + $0x168] sm:$0xff] }
  0x49   :  { %v8087_v53 = vsub.f32 %v8037_v10, %v12387_v47  ;;  %v6144_v50 = vpack.c.bf16 %v479_v4, %v467_v59  ;;  %v473_v47 = vand.u32 4294901760, %v472_v52  ;;  %v485_v10 = vand.u32 4294901760, %v484_v37  ;;  %12392 = vst [vmem:[#allocation76_spill] sm:$0xff] %v8111_v24 }
  0x4a   :  { %v490_v3 = vsub.f32 %v8061_v31, %v12389_v39  ;;  %v502_v39 = vsub.f32 %v8075_v55, %v11681_v28  ;;  %v11683_v41 = vand.u32 4294901760, %v8098_v56  ;;  %v12393_v59 = vand.u32 4294901760, %v8069_v48 }
  0x4b   :  { %v11682_v30 = vand.u32 4294901760, %v8087_v53  ;;  %6145 = vmatprep.subr.bf16.mxu0 %v6144_v50  ;;  %v6146_v40 = vpack.c.bf16 %v485_v10, %v473_v47  ;;  %v11688_v4 = vand.u32 4294901760, %v8101_v9  ;;  %v8128_v50 = vsub.f32 %v8089_v38, %v11686_v44  ;;  %v8131_v47 = vld [vmem:[#allocation2 + $0x178] sm:$0xff] }
  0x4c   :  { %v491_v17 = vand.u32 4294901760, %v490_v3  ;;  %v8119_v37 = vsub.f32 %v8069_v48, %v12393_v59  ;;  %v503_v3 = vand.u32 4294901760, %v502_v39  ;;  %v508_v28 = vsub.f32 %v8098_v56, %v11683_v41  ;;  %12394 = vst [vmem:[#allocation77_spill] sm:$0xff] %v8131_v47  ;;  %v8140_v48 = vld [vmem:[#allocation2 + $0x160] sm:$0xff] }
  0x4d   :  { %v496_v52 = vsub.f32 %v8087_v53, %v11682_v30  ;;  %v11690_v10 = vand.u32 4294901760, %v8104_v6  ;;  %6147 = vmatpush1.bf16.msra.mxu0 %v6146_v40  ;;  %v8137_v39 = vsub.f32 %v8101_v9, %v11688_v4  ;;  %v11694_v41 = vand.u32 4294901760, %v8111_v24  ;;  %12395 = vst [vmem:[#allocation78_spill] sm:$0xff] %v8140_v48  ;;  %v8165_v4 = vld [vmem:[#allocation2 + $0x188] sm:$0xff] }
  0x4e   :  { %v11692_v59 = vand.u32 4294901760, %v8119_v37  ;;  %v6148_v45 = vpack.c.bf16 %v503_v3, %v491_v17  ;;  %v509_v44 = vand.u32 4294901760, %v508_v28  ;;  %v11696_v38 = vand.u32 4294901760, %v8128_v50  ;;  %v8158_v28 = vld [vmem:[#allocation2 + $0x170] sm:$0xff]  ;;  %12398 = vst [vmem:[#allocation81_spill] sm:$0xff] %v8165_v4 }
  0x4f   :  { %v497_v30 = vand.u32 4294901760, %v496_v52  ;;  %v8146_v40 = vsub.f32 %v8104_v6, %v11690_v10  ;;  %v8156_v17 = vsub.f32 %v8111_v24, %v11694_v41  ;;  %12397 = vst [vmem:[#allocation80_spill] sm:$0xff] %v8158_v28  ;;  %v12399_v21 = vand.u32 4294901760, %v8137_v39 }
  0x50   :  { %v514_v52 = vsub.f32 %v8119_v37, %v11692_v59  ;;  %6149 = vmatprep.subr.bf16.mxu0 %v6148_v45  ;;  %v526_v10 = vsub.f32 %v8128_v50, %v11696_v38  ;;  %v12400_v45 = vand.u32 4294901760, %v8131_v47  ;;  %v12410_v46 = vand.u32 4294901760, %v8165_v4 }
  0x51   :  { %12396 = vst [vmem:[#allocation79_spill] sm:$0xff] %v8156_v17  ;;  %v6150_v3 = vpack.c.bf16 %v509_v44, %v497_v30  ;;  %v11700_v6 = vand.u32 4294901760, %v8146_v40  ;;  %v520_v41 = vsub.f32 %v8137_v39, %v12399_v21  ;;  %v8185_v21 = vld [vmem:[#allocation2 + $0x198] sm:$0xff]  ;;  %v12405_v12 = vand.u32 4294901760, %v8156_v17 }
  0x52   :  { %v515_v9 = vand.u32 4294901760, %v514_v52  ;;  %v8174_v30 = vsub.f32 %v8131_v47, %v12400_v45  ;;  %v527_v44 = vand.u32 4294901760, %v526_v10  ;;  %v12402_v52 = vand.u32 4294901760, %v8140_v48  ;;  %12404 = vst [vmem:[#allocation84_spill] sm:$0xff] %v8185_v21  ;;  %v8192_v47 = vld [vmem:[#allocation2 + $0x180] sm:$0xff] }
  0x53   :  { %6151 = vmatpush1.bf16.msra.mxu0 %v6150_v3  ;;  %v532_v38 = vsub.f32 %v8146_v40, %v11700_v6  ;;  %v521_v24 = vand.u32 4294901760, %v520_v41  ;;  %v538_v45 = vsub.f32 %v8156_v17, %v12405_v12  ;;  %12406 = vst [vmem:[#allocation85_spill] sm:$0xff] %v8192_v47  ;;  %v8200_v41 = vld [vmem:[#allocation2 + $0x190] sm:$0xff]  ;;  %v12413_v43 = vand.u32 4294901760, %v8185_v21  ;;  %v8236_v3 = vld [vmem:[#allocation2 + $0x1a0] sm:$0xff] }
  0x54   :  { %12401 = vst [vmem:[#allocation82_spill] sm:$0xff] %v8174_v30  ;;  %v8183_v13 = vsub.f32 %v8140_v48, %v12402_v52  ;;  %v11707_v10 = vand.u32 4294901760, %v8174_v30  ;;  %v6152_v6 = vpack.c.bf16 %v527_v44, %v515_v9  ;;  %v12407_v52 = vand.u32 4294901760, %v8158_v28  ;;  %12409 = vst [vmem:[#allocation87_spill] sm:$0xff] %v8200_v41  ;;  %v8211_v9 = vld [vmem:[#allocation2 + $0x1a8] sm:$0xff] }
  0x55   :  { %v533_v59 = vand.u32 4294901760, %v532_v38  ;;  %v539_v7 = vand.u32 4294901760, %v538_v45  ;;  %v8209_v38 = vsub.f32 %v8165_v4, %v12410_v46  ;;  %12412 = vst [vmem:[#allocation89_spill] sm:$0xff] %v8211_v9  ;;  %v8222_v46 = vsub.f32 %v8185_v21, %v12413_v43  ;;  %12417 = vst [vmem:[#allocation93_spill] sm:$0xff] %v8236_v3 }
  0x56   :  { %12403 = vst [vmem:[#allocation83_spill] sm:$0xff] %v8183_v13  ;;  %v11711_v8 = vand.u32 4294901760, %v8183_v13  ;;  %v8198_v48 = vsub.f32 %v8158_v28, %v12407_v52  ;;  %v550_v12 = vsub.f32 %v8174_v30, %v11707_v10  ;;  %6153 = vmatprep.subr.bf16.mxu0 %v6152_v6  ;;  %v11715_v28 = vand.u32 4294901760, %v8192_v47  ;;  %v8225_v6 = vld [vmem:[#allocation2 + $0x1b8] sm:$0xff] }
  0x57   :  { %12411 = vst [vmem:[#allocation88_spill] sm:$0xff] %v8209_v38  ;;  %v6154_v44 = vpack.c.bf16 %v533_v59, %v521_v24  ;;  %12414 = vst [vmem:[#allocation90_spill] sm:$0xff] %v8222_v46  ;;  %v12418_v4 = vand.u32 4294901760, %v8209_v38 }
  0x58   :  { %12408 = vst [vmem:[#allocation86_spill] sm:$0xff] %v8198_v48  ;;  %v544_v52 = vsub.f32 %v8183_v13, %v11711_v8  ;;  %v11713_v45 = vand.u32 4294901760, %v8198_v48  ;;  %v551_v10 = vand.u32 4294901760, %v550_v12  ;;  %12415 = vst [vmem:[#allocation91_spill] sm:$0xff] %v8225_v6  ;;  %v8233_v12 = vsub.f32 %v8192_v47, %v11715_v28  ;;  %v8261_v28 = vld [vmem:[#allocation2 + $0x1c8] sm:$0xff] }
  0x59   :  { %6155 = vmatpush1.bf16.msra.mxu0 %v6154_v44  ;;  %v11719_v8 = vand.u32 4294901760, %v8211_v9  ;;  %v562_v21 = vsub.f32 %v8209_v38, %v12418_v4  ;;  %v11723_v44 = vand.u32 4294901760, %v8222_v46  ;;  %12423 = vst [vmem:[#allocation97_spill] sm:$0xff] %v8261_v28  ;;  %v12435_v1 = vand.u32 4294901760, %v8261_v28 }
  0x5a   :  { %v545_v24 = vand.u32 4294901760, %v544_v52  ;;  %v556_v59 = vsub.f32 %v8198_v48, %v11713_v45  ;;  %12416 = vst [vmem:[#allocation92_spill] sm:$0xff] %v8233_v12  ;;  %v6156_v43 = vpack.c.bf16 %v551_v10, %v539_v7  ;;  %v12419_v52 = vand.u32 4294901760, %v8200_v41  ;;  %v8254_v10 = vld [vmem:[#allocation2 + $0x1b0] sm:$0xff] }
  0x5b   :  { %v8252_v7 = vsub.f32 %v8211_v9, %v11719_v8  ;;  %12422 = vst [vmem:[#allocation96_spill] sm:$0xff] %v8254_v10  ;;  %v563_v4 = vand.u32 4294901760, %v562_v21  ;;  %v574_v2 = vsub.f32 %v8222_v46, %v11723_v44 }
  0x5c   :  { %v8245_v45 = vsub.f32 %v8200_v41, %v12419_v52  ;;  %v557_v5 = vand.u32 4294901760, %v556_v59  ;;  %6157 = vmatprep.subr.bf16.mxu0 %v6156_v43  ;;  %v12424_v41 = vand.u32 4294901760, %v8233_v12  ;;  %v12425_v43 = vand.u32 4294901760, %v8225_v6 }
  0x5d   :  { %12421 = vst [vmem:[#allocation95_spill] sm:$0xff] %v8252_v7  ;;  %v575_v42 = vand.u32 4294901760, %v574_v2  ;;  %v12430_v34 = vand.u32 4294901760, %v8252_v7 }
  0x5e   :  { %12420 = vst [vmem:[#allocation94_spill] sm:$0xff] %v8245_v45  ;;  %v11727_v52 = vand.u32 4294901760, %v8245_v45  ;;  %v6158_v47 = vpack.c.bf16 %v557_v5, %v545_v24  ;;  %v568_v8 = vsub.f32 %v8233_v12, %v12424_v41  ;;  %v8270_v21 = vsub.f32 %v8225_v6, %v12425_v43  ;;  %v8281_v41 = vld [vmem:[#allocation2 + $0x1d8] sm:$0xff]  ;;  %v8332_v6 = vld [vmem:[#allocation2 + $0x1e0] sm:$0xff] }
  0x5f   :  { %v12427_v5 = vand.u32 4294901760, %v8236_v3  ;;  %12429 = vst [vmem:[#allocation100_spill] sm:$0xff] %v8281_v41  ;;  %v586_v43 = vsub.f32 %v8252_v7, %v12430_v34  ;;  %v6160_v59 = vpack.c.bf16 %v575_v42, %v563_v4  ;;  %v8305_v42 = vsub.f32 %v8261_v28, %v12435_v1  ;;  %12442 = vst [vmem:[#allocation109_spill] sm:$0xff] %v8332_v6 }
  0x60   :  { %12426 = vst [vmem:[#allocation98_spill] sm:$0xff] %v8270_v21  ;;  %v580_v44 = vsub.f32 %v8245_v45, %v11727_v52  ;;  %6159 = vmatpush1.bf16.msra.mxu0 %v6158_v47  ;;  %v569_v9 = vand.u32 4294901760, %v568_v8  ;;  %v11735_v2 = vand.u32 4294901760, %v8270_v21  ;;  %v8288_v52 = vld [vmem:[#allocation2 + $0x1c0] sm:$0xff]  ;;  %v8296_v8 = vld [vmem:[#allocation2 + $0x1d0] sm:$0xff]  ;;  %v12438_v0 = vand.u32 4294901760, %v8281_v41 }
  0x61   :  { %v8279_v24 = vsub.f32 %v8236_v3, %v12427_v5  ;;  %12431 = vst [vmem:[#allocation101_spill] sm:$0xff] %v8288_v52  ;;  %v12432_v5 = vand.u32 4294901760, %v8254_v10  ;;  %12434 = vst [vmem:[#allocation103_spill] sm:$0xff] %v8296_v8  ;;  %v587_v47 = vand.u32 4294901760, %v586_v43  ;;  %6161 = vmatprep.subr.bf16.mxu0 %v6160_v59  ;;  %v8321_v59 = vld [vmem:[#allocation2 + $0x1f8] sm:$0xff]  ;;  %v12443_v28 = vand.u32 4294901760, %v8305_v42 }
  0x62   :  { %v581_v62 = vand.u32 4294901760, %v580_v44  ;;  %v598_v34 = vsub.f32 %v8270_v21, %v11735_v2  ;;  %12436 = vst [vmem:[#allocation104_spill] sm:$0xff] %v8305_v42  ;;  %v8307_v44 = vld [vmem:[#allocation2 + $0x1e8] sm:$0xff]  ;;  %v8318_v1 = vsub.f32 %v8281_v41, %v12438_v0  ;;  %12440 = vst [vmem:[#allocation107_spill] sm:$0xff] %v8321_v59 }
  0x63   :  { %12428 = vst [vmem:[#allocation99_spill] sm:$0xff] %v8279_v24  ;;  %v11738_v61 = vand.u32 4294901760, %v8279_v24  ;;  %v8294_v3 = vsub.f32 %v8254_v10, %v12432_v5  ;;  %12437 = vst [vmem:[#allocation105_spill] sm:$0xff] %v8307_v44  ;;  %v11741_v10 = vand.u32 4294901760, %v8288_v52  ;;  %v610_v41 = vsub.f32 %v8305_v42, %v12443_v28 }
  0x64   :  { %v6162_v4 = vpack.c.bf16 %v581_v62, %v569_v9  ;;  %v599_v2 = vand.u32 4294901760, %v598_v34  ;;  %12439 = vst [vmem:[#allocation106_spill] sm:$0xff] %v8318_v1 }
  0x65   :  { %12433 = vst [vmem:[#allocation102_spill] sm:$0xff] %v8294_v3  ;;  %v592_v5 = vsub.f32 %v8279_v24, %v11738_v61  ;;  %v11740_v43 = vand.u32 4294901760, %v8294_v3  ;;  %v8329_v34 = vsub.f32 %v8288_v52, %v11741_v10  ;;  %v8346_v10 = vld.sshfl [vmem:[%s11565_s0] sm:$0x33 pattern:$0x76325410] }
  0x66   :  { %6163 = vmatpush1.bf16.msra.mxu0 %v6162_v4  ;;  %v6164_v0 = vpack.c.bf16 %v599_v2, %v587_v47  ;;  %12446 = vst [vmem:[#allocation111_spill] sm:$0xff] %v8346_v10  ;;  %v12447_v47 = vand.u32 4294901760, %v8307_v44  ;;  %v8355_v4 = vld [vmem:[#allocation2 + $0x1f0] sm:$0xff]  ;;  %v12532_v24 = vld [vmem:[#allocation80_spill] sm:$0xff] }
  0x67   :  { %v593_v62 = vand.u32 4294901760, %v592_v5  ;;  %v604_v9 = vsub.f32 %v8294_v3, %v11740_v43  ;;  %12441 = vst [vmem:[#allocation108_spill] sm:$0xff] %v8329_v34  ;;  %v12444_v5 = vand.u32 4294901760, %v8296_v8  ;;  %v12450_v2 = vand.u32 4294901760, %v8329_v34 }
  0x68   :  { %v8353_v28 = vsub.f32 %v8307_v44, %v12447_v47  ;;  %6165 = vmatprep.subr.bf16.mxu0 %v6164_v0  ;;  %v12451_v44 = vand.u32 4294901760, %v8321_v59 }
  0x69   :  { %v8341_v43 = vsub.f32 %v8296_v8, %v12444_v5  ;;  %v605_v61 = vand.u32 4294901760, %v604_v9  ;;  %v611_v5 = vand.u32 4294901760, %v610_v41  ;;  %v12449_v8 = vand.u32 4294901760, %v8318_v1 }
  0x6a   :  { %12448 = vst [vmem:[#allocation112_spill] sm:$0xff] %v8353_v28  ;;  %v11757_v9 = vand.u32 4294901760, %v8332_v6  ;;  %v616_v42 = vsub.f32 %v8329_v34, %v12450_v2  ;;  %v11758_v47 = vand.u32 4294901760, %v8353_v28  ;;  %v8369_v0 = vsub.f32 %v8321_v59, %v12451_v44  ;;  %v12502_v34 = vld [vmem:[#allocation67_spill] sm:$0xff] }
  0x6b   :  { %12445 = vst [vmem:[#allocation110_spill] sm:$0xff] %v8341_v43  ;;  %v622_v29 = vsub.f32 %v8318_v1, %v12449_v8  ;;  %v11754_v25 = vand.u32 4294901760, %v8341_v43  ;;  %v6166_v52 = vpack.c.bf16 %v605_v61, %v593_v62 }
  0x6c   :  { %12452 = vst [vmem:[#allocation113_spill] sm:$0xff] %v8369_v0  ;;  %v8378_v61 = vsub.f32 %v8332_v6, %v11757_v9  ;;  %v617_v62 = vand.u32 4294901760, %v616_v42  ;;  %v634_v2 = vsub.f32 %v8353_v28, %v11758_v47  ;;  %v11760_v44 = vand.u32 4294901760, %v8369_v0  ;;  %v12485_v28 = vld [vmem:[#allocation14_spill] sm:$0xff] }
  0x6d   :  { %v623_v41 = vand.u32 4294901760, %v622_v29  ;;  %v628_v8 = vsub.f32 %v8341_v43, %v11754_v25  ;;  %6167 = vmatpush1.bf16.msra.mxu0 %v6166_v52  ;;  %v123_v29 = vcombine.high %v8346_v10, %v8346_v10  ;;  %v12454_v43 = vand.u32 4294901760, %v8355_v4 }
  0x6e   :  { %12453 = vst [vmem:[#allocation114_spill] sm:$0xff] %v8378_v61  ;;  %v11761_v1 = vand.u32 4294901760, %v8378_v61  ;;  %v635_v52 = vand.u32 4294901760, %v634_v2  ;;  %v646_v42 = vsub.f32 %v8369_v0, %v11760_v44 }
  0x6f   :  { %v6168_v59 = vpack.c.bf16 %v623_v41, %v611_v5  ;;  %v629_v25 = vand.u32 4294901760, %v628_v8  ;;  %v8390_v9 = vsub.f32 %v8355_v4, %v12454_v43  ;;  %v8395_v47 = vand.u32 4294901760, %v123_v29 }
  0x70   :  { %v640_v5 = vsub.f32 %v8378_v61, %v11761_v1  ;;  %v647_v8 = vand.u32 4294901760, %v646_v42  ;;  %v6180_v42 = vpack.c.bf16 %v7678_v20, %v7673_v19  ;;  %v12473_v61 = vld [vmem:[#allocation10_spill] sm:$0xff] }
  0x71   :  { %12455 = vst [vmem:[#allocation115_spill] sm:$0xff] %v8390_v9  ;;  %12456 = vst [vmem:[#allocation116_spill] sm:$0xff] %v8395_v47  ;;  %6169 = vmatprep.subr.bf16.mxu0 %v6168_v59  ;;  %v6170_v6 = vpack.c.bf16 %v629_v25, %v617_v62  ;;  %v11762_v41 = vand.u32 4294901760, %v8390_v9  ;;  %656 = vmatprep.mubr.f32.mxu0 %v8395_v47  ;;  %v6176_v59 = vpack.c.bf16 %v7657_v15, %v7652_v14 }
  0x72   :  { %v641_v43 = vand.u32 4294901760, %v640_v5  ;;  %v6172_v44 = vpack.c.bf16 %v647_v8, %v635_v52  ;;  %v8408_v25 = vand.u32 4294901760, %v8346_v10  ;;  %v6178_v62 = vpack.c.bf16 %v7668_v18, %v7662_v16  ;;  %v12470_v5 = vld [vmem:[#allocation32_spill] sm:$0xff]  ;;  %v12512_v8 = vld [vmem:[#allocation71_spill] sm:$0xff] }
  0x73   :  { %6171 = vmatpush1.bf16.msra.mxu0 %v6170_v6  ;;  %v652_v2 = vsub.f32 %v8390_v9, %v11762_v41  ;;  %v12463_v41 = vld [vmem:[#allocation23_spill] sm:$0xff] }
  0x74   :  { %12457 = vst [vmem:[#allocation117_spill] sm:$0xff] %v8408_v25  ;;  %6173 = vmatprep.subr.bf16.mxu0 %v6172_v44  ;;  %v8459_v44 = vsub.f32 %v123_v29, %v8395_v47  ;;  %v12471_v29 = vld [vmem:[#allocation34_spill] sm:$0xff]  ;;  %v12472_v47 = vld [vmem:[#allocation35_spill] sm:$0xff] }
  0x75   :  { %v653_v1 = vand.u32 4294901760, %v652_v2  ;;  %v12466_v2 = vld [vmem:[#allocation9_spill] sm:$0xff]  ;;  %v6186_v14 = vpack.c.bf16 %v12472_v47, %v12471_v29  ;;  %v12475_v9 = vld [vmem:[#allocation11_spill] sm:$0xff] }
  0x76   :  { %12461 = vst [vmem:[#allocation118_spill] sm:$0xff] %v8459_v44  ;;  %v12467_v18 = vand.u32 4294901760, %v12466_v2  ;;  %v12476_v10 = vand.u32 4294901760, %v12475_v9  ;;  %v12492_v9 = vld [vmem:[#allocation63_spill] sm:$0xff] }
  0x77   :  { %v6174_v20 = vpack.c.bf16 %v653_v1, %v641_v43  ;;  %v12464_v1 = vld [vmem:[#allocation8_spill] sm:$0xff]  ;;  %v12469_v43 = vld [vmem:[#allocation31_spill] sm:$0xff] }
  0x78   :  { %v12465_v19 = vand.u32 4294901760, %v12464_v1  ;;  %v6184_v15 = vpack.c.bf16 %v12470_v5, %v12469_v43  ;;  %v12486_v5 = vand.u32 4294901760, %v12485_v28  ;;  %v12487_v43 = vld [vmem:[#allocation15_spill] sm:$0xff] }
  0x79   :  { %6175 = vmatpush1.bf16.msra.mxu0 %v6174_v20  ;;  %v12488_v0 = vand.u32 4294901760, %v12487_v43  ;;  %v12503_v43 = vand.u32 4294901760, %v12502_v34  ;;  %v12507_v20 = vld [vmem:[#allocation69_spill] sm:$0xff] }
  0x7a   :  { %6177 = vmatprep.subr.bf16.mxu0 %v6176_v59  ;;  %v12462_v59 = vld [vmem:[#allocation22_spill] sm:$0xff]  ;;  %v8469_v16 = vpack.c.bf16 %v12467_v18, %v12465_v19  ;;  %v12482_v18 = vld [vmem:[#allocation13_spill] sm:$0xff] }
  0x7b   :  { %v6182_v52 = vpack.c.bf16 %v12463_v41, %v12462_v59  ;;  %v12478_v59 = vld [vmem:[#allocation36_spill] sm:$0xff]  ;;  %v12483_v19 = vand.u32 4294901760, %v12482_v18  ;;  %v8493_v47 = vpack.c.bf16 %v12488_v0, %v12486_v5  ;;  %v12517_v34 = vld [vmem:[#allocation73_spill] sm:$0xff] }
  0x7c   :  { %658 = vmatmul.mubr.f32.vlgmr.msra.gmra.mrb[0].mxu0 %v8408_v25  ;;  %12468 = vst [vmem:[#allocation8_spill] sm:$0xff] %v8469_v16  ;;  %v12480_v25 = vld [vmem:[#allocation12_spill] sm:$0xff]  ;;  %6049 = vmatprep.subr.bf16.mxu1 %v8469_v16 }
  0x7d   :  { %6179 = vmatpush1.bf16.msra.mxu0 %v6178_v62  ;;  %858 = vmatprep.mubr.f32.mxu0 %v8459_v44  ;;  %v12474_v62 = vand.u32 4294901760, %v12473_v61  ;;  %v12479_v44 = vld [vmem:[#allocation37_spill] sm:$0xff]  ;;  %v12481_v2 = vand.u32 4294901760, %v12480_v25  ;;  %12489 = vst [vmem:[#allocation11_spill] sm:$0xff] %v8493_v47  ;;  %v12505_v5 = vld [vmem:[#allocation68_spill] sm:$0xff] }
  0x7e   :  { %6181 = vmatprep.subr.bf16.mxu0 %v6180_v42  ;;  %v6188_v1 = vpack.c.bf16 %v12479_v44, %v12478_v59  ;;  %v12490_v61 = vld [vmem:[#allocation61_spill] sm:$0xff]  ;;  %v12495_v44 = vld [vmem:[#allocation64_spill] sm:$0xff] }
  0x7f   :  { %v8479_v41 = vpack.c.bf16 %v12476_v10, %v12474_v62  ;;  %v8487_v42 = vpack.c.bf16 %v12483_v19, %v12481_v2  ;;  %v12491_v29 = vand.u32 4294901760, %v12490_v61  ;;  %v12493_v10 = vand.u32 4294901760, %v12492_v9  ;;  %v12497_v59 = vld [vmem:[#allocation65_spill] sm:$0xff]  ;;  %v12500_v19 = vld [vmem:[#allocation66_spill] sm:$0xff] }
  0x80   :  { %v12496_v25 = vand.u32 4294901760, %v12495_v44  ;;  %v12498_v18 = vand.u32 4294901760, %v12497_v59  ;;  %v12501_v28 = vand.u32 4294901760, %v12500_v19  ;;  %v12506_v61 = vand.u32 4294901760, %v12505_v5  ;;  %v12515_v59 = vld [vmem:[#allocation72_spill] sm:$0xff] }
  0x81   :  { %12477 = vst [vmem:[#allocation9_spill] sm:$0xff] %v8479_v41  ;;  %12484 = vst [vmem:[#allocation10_spill] sm:$0xff] %v8487_v42  ;;  %v8499_v62 = vpack.c.bf16 %v12493_v10, %v12491_v29  ;;  %v12508_v9 = vand.u32 4294901760, %v12507_v20  ;;  %v12510_v10 = vld [vmem:[#allocation70_spill] sm:$0xff]  ;;  %v12513_v44 = vand.u32 4294901760, %v12512_v8  ;;  %6051 = vmatpush1.bf16.msra.mxu1 %v8479_v41  ;;  %6183 = vmatpush1.bf16.msra.mxu0 %v6182_v52  ;;  %v12522_v20 = vld [vmem:[#allocation75_spill] sm:$0xff] }
  0x82   :  { %v8506_v2 = vpack.c.bf16 %v12498_v18, %v12496_v25  ;;  %v8512_v0 = vpack.c.bf16 %v12503_v43, %v12501_v28  ;;  %v12511_v16 = vand.u32 4294901760, %v12510_v10  ;;  %v12516_v25 = vand.u32 4294901760, %v12515_v59  ;;  %v12520_v28 = vld [vmem:[#allocation74_spill] sm:$0xff]  ;;  %v12527_v8 = vld [vmem:[#allocation77_spill] sm:$0xff]  ;;  %6185 = vmatprep.subr.bf16.mxu0 %v6184_v15  ;;  %6053 = vmatprep.subr.bf16.mxu1 %v8487_v42 }
  0x83   :  { %12494 = vst [vmem:[#allocation12_spill] sm:$0xff] %v8499_v62  ;;  %v8518_v29 = vpack.c.bf16 %v12508_v9, %v12506_v61  ;;  %v12518_v18 = vand.u32 4294901760, %v12517_v34  ;;  %v12521_v43 = vand.u32 4294901760, %v12520_v28  ;;  %v12523_v5 = vand.u32 4294901760, %v12522_v20  ;;  %v12525_v9 = vld [vmem:[#allocation76_spill] sm:$0xff]  ;;  %v12530_v41 = vld [vmem:[#allocation78_spill] sm:$0xff] }
  0x84   :  { %12499 = vst [vmem:[#allocation13_spill] sm:$0xff] %v8506_v2  ;;  %12504 = vst [vmem:[#allocation14_spill] sm:$0xff] %v8512_v0  ;;  %v8524_v6 = vpack.c.bf16 %v12513_v44, %v12511_v16  ;;  %v12526_v10 = vand.u32 4294901760, %v12525_v9  ;;  %v12528_v16 = vand.u32 4294901760, %v12527_v8  ;;  %v12531_v52 = vand.u32 4294901760, %v12530_v41  ;;  %v12542_v9 = vld [vmem:[#allocation87_spill] sm:$0xff] }
  0x85   :  { %12509 = vst [vmem:[#allocation15_spill] sm:$0xff] %v8518_v29  ;;  %v8531_v19 = vpack.c.bf16 %v12518_v18, %v12516_v25  ;;  %v8537_v61 = vpack.c.bf16 %v12523_v5, %v12521_v43  ;;  %v12533_v59 = vand.u32 4294901760, %v12532_v24  ;;  %v12535_v25 = vld [vmem:[#allocation81_spill] sm:$0xff]  ;;  %v12537_v18 = vld [vmem:[#allocation84_spill] sm:$0xff]  ;;  %v12543_v7 = vand.u32 4294901760, %v12542_v9  ;;  %v12547_v41 = vld [vmem:[#allocation91_spill] sm:$0xff]  ;;  %6055 = vmatpush1.bf16.msra.mxu1 %v8493_v47  ;;  %6187 = vmatpush1.bf16.msra.mxu0 %v6186_v14 }
  0x86   :  { %12514 = vst [vmem:[#allocation61_spill] sm:$0xff] %v8524_v6  ;;  %v8543_v44 = vpack.c.bf16 %v12528_v16, %v12526_v10  ;;  %v12536_v34 = vand.u32 4294901760, %v12535_v25  ;;  %v12538_v28 = vand.u32 4294901760, %v12537_v18  ;;  %v12540_v43 = vld [vmem:[#allocation85_spill] sm:$0xff]  ;;  %v12548_v21 = vand.u32 4294901760, %v12547_v41  ;;  %v12562_v9 = vld [vmem:[#allocation103_spill] sm:$0xff]  ;;  %6189 = vmatprep.subr.bf16.mxu0 %v6188_v1 }
  0x87   :  { %12519 = vst [vmem:[#allocation63_spill] sm:$0xff] %v8531_v19  ;;  %12524 = vst [vmem:[#allocation64_spill] sm:$0xff] %v8537_v61  ;;  %v8549_v3 = vpack.c.bf16 %v12533_v59, %v12531_v52  ;;  %v12541_v5 = vand.u32 4294901760, %v12540_v43  ;;  %v12545_v10 = vld [vmem:[#allocation89_spill] sm:$0xff]  ;;  %v12552_v59 = vld [vmem:[#allocation96_spill] sm:$0xff] }
  0x88   :  { %12529 = vst [vmem:[#allocation65_spill] sm:$0xff] %v8543_v44  ;;  %v8555_v20 = vpack.c.bf16 %v12538_v28, %v12536_v34  ;;  %v12546_v16 = vand.u32 4294901760, %v12545_v10  ;;  %v12550_v52 = vld [vmem:[#allocation93_spill] sm:$0xff]  ;;  %v12553_v25 = vand.u32 4294901760, %v12552_v59  ;;  %v12557_v28 = vld [vmem:[#allocation100_spill] sm:$0xff]  ;;  %v12563_v10 = vand.u32 4294901760, %v12562_v9 }
  0x89   :  { %12534 = vst [vmem:[#allocation66_spill] sm:$0xff] %v8549_v3  ;;  %v8561_v8 = vpack.c.bf16 %v12543_v7, %v12541_v5  ;;  %v12551_v15 = vand.u32 4294901760, %v12550_v52  ;;  %v12555_v34 = vld [vmem:[#allocation97_spill] sm:$0xff]  ;;  %v12558_v43 = vand.u32 4294901760, %v12557_v28  ;;  %v12567_v41 = vld [vmem:[#allocation107_spill] sm:$0xff]  ;;  %v12579_v9 = vld [vmem:[#allocation38_spill] sm:$0xff] }
  0x8a   :  { %12539 = vst [vmem:[#allocation67_spill] sm:$0xff] %v8555_v20  ;;  %v8567_v24 = vpack.c.bf16 %v12548_v21, %v12546_v16  ;;  %v12556_v18 = vand.u32 4294901760, %v12555_v34  ;;  %v12560_v7 = vld [vmem:[#allocation101_spill] sm:$0xff]  ;;  %v12568_v52 = vand.u32 4294901760, %v12567_v41  ;;  %v12582_v41 = vld [vmem:[#allocation48_spill] sm:$0xff] }
  0x8b   :  { %12544 = vst [vmem:[#allocation68_spill] sm:$0xff] %v8561_v8  ;;  %v8573_v12 = vpack.c.bf16 %v12553_v25, %v12551_v15  ;;  %v12561_v5 = vand.u32 4294901760, %v12560_v7  ;;  %v12565_v21 = vld [vmem:[#allocation105_spill] sm:$0xff]  ;;  %v12572_v25 = vand.u32 4294901760, %v8355_v4 }
  0x8c   :  { %12549 = vst [vmem:[#allocation69_spill] sm:$0xff] %v8567_v24  ;;  %v8579_v20 = vpack.c.bf16 %v12558_v43, %v12556_v18  ;;  %v12566_v16 = vand.u32 4294901760, %v12565_v21  ;;  %v12570_v15 = vld [vmem:[#allocation109_spill] sm:$0xff]  ;;  %v12574_v18 = vld [vmem:[#allocation24_spill] sm:$0xff] }
  0x8d   :  { %12554 = vst [vmem:[#allocation70_spill] sm:$0xff] %v8573_v12  ;;  %v8585_v8 = vpack.c.bf16 %v12563_v10, %v12561_v5  ;;  %v12571_v59 = vand.u32 4294901760, %v12570_v15  ;;  %v12575_v28 = vand.u32 4294901760, %v12574_v18  ;;  %v12576_v43 = vld [vmem:[#allocation25_spill] sm:$0xff]  ;;  %v12580_v10 = vld [vmem:[#allocation39_spill] sm:$0xff]  ;;  %v12588_v18 = vld [vmem:[#allocation28_spill] sm:$0xff] }
  0x8e   :  { %12559 = vst [vmem:[#allocation71_spill] sm:$0xff] %v8579_v20  ;;  %v8591_v24 = vpack.c.bf16 %v12568_v52, %v12566_v16  ;;  %v12577_v7 = vand.u32 4294901760, %v12576_v43  ;;  %v6190_v21 = vpack.c.bf16 %v12580_v10, %v12579_v9  ;;  %v12581_v16 = vld [vmem:[#allocation46_spill] sm:$0xff]  ;;  %v12590_v43 = vld [vmem:[#allocation29_spill] sm:$0xff] }
  0x8f   :  { %12564 = vst [vmem:[#allocation72_spill] sm:$0xff] %v8585_v8  ;;  %v8597_v34 = vpack.c.bf16 %v12572_v25, %v12571_v59  ;;  %v6192_v4 = vpack.c.bf16 %v12582_v41, %v12581_v16  ;;  %v12583_v52 = vld [vmem:[#allocation26_spill] sm:$0xff]  ;;  %v12585_v59 = vld [vmem:[#allocation27_spill] sm:$0xff]  ;;  %v12593_v1 = vld [vmem:[#allocation49_spill] sm:$0xff] }
  0x90   :  { %12569 = vst [vmem:[#allocation73_spill] sm:$0xff] %v8591_v24  ;;  %v8604_v5 = vpack.c.bf16 %v12577_v7, %v12575_v28  ;;  %v12584_v15 = vand.u32 4294901760, %v12583_v52  ;;  %v12586_v25 = vand.u32 4294901760, %v12585_v59  ;;  %v12589_v28 = vand.u32 4294901760, %v12588_v18  ;;  %6191 = vmatpush1.bf16.msra.mxu0 %v6190_v21  ;;  %v12594_v10 = vld [vmem:[#allocation50_spill] sm:$0xff]  ;;  %v12597_v59 = vld [vmem:[#allocation33_spill] sm:$0xff] }
  0x91   :  { %12573 = vst [vmem:[#allocation74_spill] sm:$0xff] %v8597_v34  ;;  %v12591_v7 = vand.u32 4294901760, %v12590_v43  ;;  %v6194_v41 = vpack.c.bf16 %v12594_v10, %v12593_v1  ;;  %6193 = vmatprep.subr.bf16.mxu0 %v6192_v4  ;;  %v12595_v52 = vld [vmem:[#allocation30_spill] sm:$0xff]  ;;  %v12600_v18 = vld [vmem:[#allocation40_spill] sm:$0xff]  ;;  %v12602_v43 = vld [vmem:[#allocation41_spill] sm:$0xff]  ;;  %v12605_v21 = vpack.c.bf16 %v7877_v63, %v7866_v35 }
  0x92   :  { %12578 = vst [vmem:[#allocation75_spill] sm:$0xff] %v8604_v5  ;;  %v8615_v42 = vpack.c.bf16 %v12586_v25, %v12584_v15  ;;  %6057 = vmatprep.subr.bf16.mxu1 %v8604_v5  ;;  %v12596_v15 = vand.u32 4294901760, %v12595_v52  ;;  %v12598_v25 = vand.u32 4294901760, %v12597_v59  ;;  %v12601_v9 = vand.u32 4294901760, %v12600_v18  ;;  %v12606_v4 = vld [vmem:[#allocation42_spill] sm:$0xff]  ;;  %v12608_v59 = vld [vmem:[#allocation43_spill] sm:$0xff] }
  0x93   :  { %v8622_v14 = vpack.c.bf16 %v12591_v7, %v12589_v28  ;;  %v12603_v28 = vand.u32 4294901760, %v12602_v43  ;;  %v12607_v52 = vand.u32 4294901760, %v12606_v4  ;;  %v12611_v18 = vld [vmem:[#allocation44_spill] sm:$0xff]  ;;  %v12613_v43 = vld [vmem:[#allocation45_spill] sm:$0xff]  ;;  %v12618_v4 = vld [vmem:[#allocation47_spill] sm:$0xff] }
  0x94   :  { %12587 = vst [vmem:[#allocation76_spill] sm:$0xff] %v8615_v42  ;;  %6059 = vmatpush1.bf16.msra.mxu1 %v8615_v42  ;;  %v8632_v16 = vpack.c.bf16 %v12598_v25, %v12596_v15  ;;  %6195 = vmatpush1.bf16.msra.mxu0 %v6194_v41  ;;  %v12609_v15 = vand.u32 4294901760, %v12608_v59  ;;  %v12612_v10 = vand.u32 4294901760, %v12611_v18  ;;  %v12616_v41 = vpack.c.bf16 %v7905_v33, %v7887_v36  ;;  %v12620_v59 = vld [vmem:[#allocation51_spill] sm:$0xff] }
  0x95   :  { %12592 = vst [vmem:[#allocation77_spill] sm:$0xff] %v8622_v14  ;;  %6061 = vmatprep.subr.bf16.mxu1 %v8622_v14  ;;  %v8638_v7 = vpack.c.bf16 %v12603_v28, %v12601_v9  ;;  %6197 = vmatprep.subr.bf16.mxu0 %v12605_v21  ;;  %v12614_v9 = vand.u32 4294901760, %v12613_v43  ;;  %v12617_v21 = vpack.c.bf16 %v7942_v32, %v7927_v57 }
  0x96   :  { %12599 = vst [vmem:[#allocation78_spill] sm:$0xff] %v8632_v16  ;;  %v8649_v25 = vpack.c.bf16 %v12609_v15, %v12607_v52  ;;  %v12619_v52 = vand.u32 4294901760, %v12618_v4  ;;  %v12621_v15 = vand.u32 4294901760, %v12620_v59  ;;  %v12630_v4 = vld [vmem:[#allocation56_spill] sm:$0xff]  ;;  %v12632_v59 = vld [vmem:[#allocation57_spill] sm:$0xff] }
  0x97   :  { %12604 = vst [vmem:[#allocation80_spill] sm:$0xff] %v8638_v7  ;;  %v8655_v28 = vpack.c.bf16 %v12614_v9, %v12612_v10  ;;  %v12623_v10 = vld [vmem:[#allocation54_spill] sm:$0xff]  ;;  %v12625_v9 = vld [vmem:[#allocation55_spill] sm:$0xff] }
  0x98   :  { %6063 = vmatpush1.bf16.msra.mxu1 %v8632_v16  ;;  %12610 = vst [vmem:[#allocation81_spill] sm:$0xff] %v8649_v25  ;;  %6199 = vmatpush1.bf16.msra.mxu0 %v12616_v41  ;;  %v8669_v18 = vpack.c.bf16 %v12621_v15, %v12619_v52  ;;  %v12624_v43 = vand.u32 4294901760, %v12623_v10  ;;  %v12626_v63 = vand.u32 4294901760, %v12625_v9  ;;  %v12628_v41 = vpack.c.bf16 %v7953_v54, %v7948_v58  ;;  %v12637_v9 = vld [vmem:[#allocation60_spill] sm:$0xff] }
  0x99   :  { %6065 = vmatprep.subr.bf16.mxu1 %v8638_v7  ;;  %12615 = vst [vmem:[#allocation84_spill] sm:$0xff] %v8655_v28  ;;  %6201 = vmatprep.subr.bf16.mxu0 %v12617_v21  ;;  %v12629_v21 = vpack.c.bf16 %v7973_v23, %v7965_v60  ;;  %v12631_v52 = vand.u32 4294901760, %v12630_v4  ;;  %v12633_v15 = vand.u32 4294901760, %v12632_v59  ;;  %v12638_v32 = vand.u32 4294901760, %v12637_v9 }
  0x9a   :  { %12622 = vst [vmem:[#allocation85_spill] sm:$0xff] %v8669_v18  ;;  %v8675_v35 = vpack.c.bf16 %v12626_v63, %v12624_v43  ;;  %v12635_v63 = vld [vmem:[#allocation58_spill] sm:$0xff]  ;;  %v12642_v4 = vpack.c.bf16 %v8050_v27, %v8045_v51  ;;  %v12645_v59 = vpack.c.bf16 %v8128_v50, %v8119_v37  ;;  %v12649_v9 = vpack.c.bf16 %v8222_v46, %v8209_v38  ;;  %v12660_v46 = vld [vmem:[#allocation69_spill] sm:$0xff]  ;;  %v12662_v38 = vld [vmem:[#allocation104_spill] sm:$0xff] }
  0x9b   :  { %v8689_v10 = vpack.c.bf16 %v12633_v15, %v12631_v52  ;;  %v12636_v43 = vand.u32 4294901760, %v12635_v63  ;;  %v12644_v52 = vpack.c.bf16 %v8098_v56, %v8087_v53  ;;  %v12646_v15 = vpack.c.bf16 %v8146_v40, %v8137_v39 }
  0x9c   :  { %6067 = vmatpush1.bf16.msra.mxu1 %v8649_v25  ;;  %12627 = vst [vmem:[#allocation87_spill] sm:$0xff] %v8675_v35  ;;  %6203 = vmatpush1.bf16.msra.mxu0 %v12628_v41  ;;  %v12640_v41 = vpack.c.bf16 %v8002_v26, %v7992_v22  ;;  %v12647_v63 = vpack.c.bf16 %v8174_v30, %v8156_v17  ;;  %v12672_v30 = vld [vmem:[#allocation115_spill] sm:$0xff] }
  0x9d   :  { %6069 = vmatprep.subr.bf16.mxu1 %v8655_v28  ;;  %6205 = vmatprep.subr.bf16.mxu0 %v12629_v21  ;;  %12634 = vst [vmem:[#allocation89_spill] sm:$0xff] %v8689_v10  ;;  %v8695_v57 = vpack.c.bf16 %v12638_v32, %v12636_v43  ;;  %v12641_v21 = vpack.c.bf16 %v8031_v11, %v8023_v49 }
  0x9e   :  { %v12643_v32 = vpack.c.bf16 %v8075_v55, %v8061_v31  ;;  %v12648_v43 = vpack.c.bf16 %v8198_v48, %v8183_v13 }
  0x9f   :  { %12639 = vst [vmem:[#allocation91_spill] sm:$0xff] %v8695_v57 }
  0xa0   :  { %6071 = vmatpush1.bf16.msra.mxu1 %v8669_v18  ;;  %6207 = vmatpush1.bf16.msra.mxu0 %v12640_v41  ;;  %v12650_v41 = vld [vmem:[#allocation92_spill] sm:$0xff] }
  0xa1   :  { %6073 = vmatprep.subr.bf16.mxu1 %v8675_v35  ;;  %6209 = vmatprep.subr.bf16.mxu0 %v12641_v21  ;;  %v12651_v21 = vpack.c.bf16 %v8245_v45, %v12650_v41  ;;  %v12665_v45 = vld [vmem:[#allocation108_spill] sm:$0xff] }
  0xa4   :  { %6075 = vmatpush1.bf16.msra.mxu1 %v8689_v10  ;;  %6211 = vmatpush1.bf16.msra.mxu0 %v12642_v4  ;;  %v12652_v4 = vld [vmem:[#allocation67_spill] sm:$0xff] }
  0xa5   :  { %6077 = vmatprep.subr.bf16.mxu1 %v8695_v57  ;;  %6213 = vmatprep.subr.bf16.mxu0 %v12643_v32  ;;  %v12653_v32 = vld [vmem:[#allocation98_spill] sm:$0xff] }
  0xa8   :  { %6079 = vmatpush1.bf16.msra.mxu1 %v8499_v62  ;;  %6215 = vmatpush1.bf16.msra.mxu0 %v12644_v52  ;;  %v12654_v52 = vld [vmem:[#allocation95_spill] sm:$0xff] }
  0xa9   :  { %6081 = vmatprep.subr.bf16.mxu1 %v8506_v2  ;;  %6217 = vmatprep.subr.bf16.mxu0 %v12645_v59  ;;  %v12655_v59 = vpack.c.bf16 %v12653_v32, %v12654_v52  ;;  %v12668_v32 = vld [vmem:[#allocation112_spill] sm:$0xff] }
  0xac   :  { %6083 = vmatpush1.bf16.msra.mxu1 %v8512_v0  ;;  %6219 = vmatpush1.bf16.msra.mxu0 %v12646_v15  ;;  %v12656_v15 = vld [vmem:[#allocation68_spill] sm:$0xff] }
  0xad   :  { %6085 = vmatprep.subr.bf16.mxu1 %v8518_v29  ;;  %6221 = vmatprep.subr.bf16.mxu0 %v12647_v63  ;;  %v12657_v63 = vld [vmem:[#allocation102_spill] sm:$0xff] }
  0xb0   :  { %6087 = vmatpush1.bf16.msra.mxu1 %v8524_v6  ;;  %6223 = vmatpush1.bf16.msra.mxu0 %v12648_v43  ;;  %v12658_v43 = vld [vmem:[#allocation99_spill] sm:$0xff] }
  0xb1   :  { %6089 = vmatprep.subr.bf16.mxu1 %v8531_v19  ;;  %6225 = vmatprep.subr.bf16.mxu0 %v12649_v9  ;;  %v12659_v48 = vpack.c.bf16 %v12657_v63, %v12658_v43  ;;  %v12661_v9 = vld [vmem:[#allocation106_spill] sm:$0xff]  ;;  %v12670_v63 = vld [vmem:[#allocation117_spill] sm:$0xff] }
  0xb2   :  { %v12663_v13 = vpack.c.bf16 %v12661_v9, %v12662_v38  ;;  %v12673_v9 = vld [vmem:[#allocation114_spill] sm:$0xff] }
  0xb3   :  { %v12675_v38 = vld [vmem:[#allocation118_spill] sm:$0xff] }
  0xb4   :  { %6091 = vmatpush1.bf16.msra.mxu1 %v8537_v61  ;;  %6227 = vmatpush1.bf16.msra.mxu0 %v12651_v21  ;;  %v12664_v21 = vld [vmem:[#allocation110_spill] sm:$0xff]  ;;  %v256_v17 = vand.u32 4294901760, %v12675_v38 }
  0xb5   :  { %6093 = vmatprep.subr.bf16.mxu1 %v8543_v44  ;;  %6229 = vmatprep.subr.bf16.mxu0 %v12655_v59  ;;  %v12666_v41 = vpack.c.bf16 %v12664_v21, %v12665_v45  ;;  %v12667_v59 = vld [vmem:[#allocation113_spill] sm:$0xff] }
  0xb6   :  { %v12669_v52 = vpack.c.bf16 %v12667_v59, %v12668_v32  ;;  %v12677_v59 = vld [vmem:[#allocation9_spill] sm:$0xff] }
  0xb8   :  { %6095 = vmatpush1.bf16.msra.mxu1 %v8549_v3  ;;  %6231 = vmatpush1.bf16.msra.mxu0 %v12659_v48  ;;  %v12671_v48 = vld [vmem:[#allocation111_spill] sm:$0xff] }
  0xb9   :  { %6097 = vmatprep.subr.bf16.mxu1 %v12652_v4  ;;  %6233 = vmatprep.subr.bf16.mxu0 %v12663_v13  ;;  %v261_v43 = vsub.f32 %v12671_v48, %v12670_v63  ;;  %v12674_v13 = vpack.c.bf16 %v12672_v30, %v12673_v9 }
  0xbb   :  { %v262_v48 = vand.u32 4294901760, %v261_v43 }
  0xbc   :  { %6099 = vmatpush1.bf16.msra.mxu1 %v12656_v15  ;;  %6235 = vmatpush1.bf16.msra.mxu0 %v12666_v41  ;;  %v12676_v41 = vld [vmem:[#allocation8_spill] sm:$0xff] }
  0xbd   :  { %6101 = vmatprep.subr.bf16.mxu1 %v12660_v46  ;;  %6237 = vmatprep.subr.bf16.mxu0 %v12669_v52  ;;  %v12678_v52 = vld [vmem:[#allocation10_spill] sm:$0xff] }
  0xc0   :  { %6103 = vmatpush1.bf16.msra.mxu1 %v8573_v12  ;;  %6239 = vmatpush1.bf16.msra.mxu0 %v12674_v13  ;;  %v257_v13 = vsub.f32 %v12675_v38, %v256_v17  ;;  %v12687_v38 = vld [vmem:[#allocation20_spill] sm:$0xff] }
  0xc1   :  { %6105 = vmatprep.subr.bf16.mxu1 %v8579_v20  ;;  %6241 = vmatprep.subr.bf16.mxu0 %v12676_v41 }
  0xc3   :  { %861 = vmatmul.mubr.f32.vlgmr.msra.gmra.mrb[0].mxu0 %v261_v43 }
  0xc4   :  { %6107 = vmatpush1.bf16.msra.mxu1 %v8585_v8  ;;  %6243 = vmatpush1.bf16.msra.mxu0 %v12677_v59 }
  0xc5   :  { %6109 = vmatprep.subr.bf16.mxu1 %v8591_v24  ;;  %998 = vmatprep.mubr.f32.mxu0 %v256_v17 }
  0xc6   :  { %6245 = vmatprep.subr.bf16.mxu0 %v12678_v52 }
  0xc8   :  { %6111 = vmatpush1.bf16.msra.mxu1 %v8597_v34  ;;  %6247 = vmatpush1.bf16.msra.mxu0 %v8493_v47  ;;  %v1436_v47 = vld [vmem:[#allocation2 + $0x268] sm:$0xff] }
  0xc9   :  { %6249 = vmatprep.subr.bf16.mxu0 %v8604_v5 }
  0xcc   :  { %6251 = vmatpush1.bf16.msra.mxu0 %v8615_v42  ;;  %v1433_v42 = vld [vmem:[#allocation2 + $0x250] sm:$0xff] }
  0xcd   :  { %6253 = vmatprep.subr.bf16.mxu0 %v8622_v14 }
  0xd0   :  { %6255 = vmatpush1.bf16.msra.mxu0 %v8632_v16 }
  0xd1   :  { %6257 = vmatprep.subr.bf16.mxu0 %v8638_v7 }
  0xd4   :  { %6259 = vmatpush1.bf16.msra.mxu0 %v8649_v25 }
  0xd5   :  { %6261 = vmatprep.subr.bf16.mxu0 %v8655_v28  ;;  %v1432_v28 = vld [vmem:[#allocation2 + $0x248] sm:$0xff] }
  0xd8   :  { %6263 = vmatpush1.bf16.msra.mxu0 %v8669_v18 }
  0xd9   :  { %6265 = vmatprep.subr.bf16.mxu0 %v8675_v35 }
  0xdc   :  { %6267 = vmatpush1.bf16.msra.mxu0 %v8689_v10  ;;  %v12714_v10 = vld [vmem:[#allocation48_spill] sm:$0xff] }
  0xdd   :  { %6269 = vmatprep.subr.bf16.mxu0 %v8695_v57  ;;  %v12715_v35 = vand.u32 4294901760, %v12714_v10 }
  0xe0   :  { %6271 = vmatpush1.bf16.msra.mxu0 %v8499_v62 }
  0xe1   :  { %6273 = vmatprep.subr.bf16.mxu0 %v8506_v2  ;;  %v12697_v2 = vld [vmem:[#allocation32_spill] sm:$0xff] }
  0xe4   :  { %6275 = vmatpush1.bf16.msra.mxu0 %v8512_v0 }
  0xe5   :  { %6277 = vmatprep.subr.bf16.mxu0 %v8518_v29 }
  0xe8   :  { %6279 = vmatpush1.bf16.msra.mxu0 %v8524_v6 }
  0xe9   :  { %6281 = vmatprep.subr.bf16.mxu0 %v8531_v19  ;;  %v12681_v19 = vld [vmem:[#allocation17_spill] sm:$0xff] }
  0xec   :  { %6283 = vmatpush1.bf16.msra.mxu0 %v8537_v61  ;;  %v263_v61 = vsub.f32 %v261_v43, %v262_v48  ;;  %v12688_v43 = vand.u32 4294901760, %v12687_v38  ;;  %v12703_v38 = vld [vmem:[#allocation36_spill] sm:$0xff] }
  0xed   :  { %6285 = vmatprep.subr.bf16.mxu0 %v8543_v44  ;;  %v12679_v44 = vld [vmem:[#allocation16_spill] sm:$0xff]  ;;  %v12704_v57 = vand.u32 4294901760, %v12703_v38 }
  0xee   :  { %v264_v29 = vand.u32 4294901760, %v263_v61  ;;  %v1428_v38 = vld [vmem:[#allocation2 + $0x228] sm:$0xff] }
  0xef   :  { %v1508_v18 = vand.u32 4294901760, %v1428_v38 }
  0xf0   :  { %6287 = vmatpush1.bf16.msra.mxu0 %v8549_v3  ;;  %v12680_v3 = vand.u32 4294901760, %v12679_v44 }
  0xf1   :  { %6289 = vmatprep.subr.bf16.mxu0 %v12652_v4  ;;  %v12682_v4 = vand.u32 4294901760, %v12681_v19  ;;  %v12691_v19 = vld [vmem:[#allocation22_spill] sm:$0xff]  ;;  %v8860_v5 = vsub.f32 %v1428_v38, %v1508_v18 }
  0xf3   :  { %v6304_v6 = vpack.c.bf16 %v12682_v4, %v12680_v3  ;;  %v12692_v3 = vand.u32 4294901760, %v12691_v19  ;;  %v12693_v4 = vld [vmem:[#allocation23_spill] sm:$0xff]  ;;  %12723 = vst [vmem:[#allocation107_spill] sm:$0xff] %v8860_v5 }
  0xf4   :  { %6291 = vmatpush1.bf16.msra.mxu0 %v12656_v15  ;;  %v258_v15 = vand.u32 4294901760, %v257_v13  ;;  %v12694_v61 = vand.u32 4294901760, %v12693_v4  ;;  %v12695_v13 = vld [vmem:[#allocation31_spill] sm:$0xff] }
  0xf5   :  { %6293 = vmatprep.subr.bf16.mxu0 %v12660_v46  ;;  %v12685_v46 = vld [vmem:[#allocation19_spill] sm:$0xff] }
  0xf6   :  { %259 = vmatprep.mubr.f32.mxu1 %v258_v15  ;;  %v12686_v0 = vand.u32 4294901760, %v12685_v46  ;;  %v6310_v15 = vpack.c.bf16 %v12694_v61, %v12692_v3  ;;  %v12699_v46 = vld [vmem:[#allocation34_spill] sm:$0xff]  ;;  %v1423_v4 = vld [vmem:[#allocation2 + $0x200] sm:$0xff] }
  0xf7   :  { %265 = vmatmul.mubr.f32.vlgmr.msra.gmra.mrb[0].mxu1 %v264_v29  ;;  %v12701_v29 = vld [vmem:[#allocation35_spill] sm:$0xff]  ;;  %v12707_v3 = vld [vmem:[#allocation38_spill] sm:$0xff] }
  0xf8   :  { %6295 = vmatpush1.bf16.msra.mxu0 %v8573_v12  ;;  %v12683_v12 = vld [vmem:[#allocation18_spill] sm:$0xff]  ;;  %v12708_v61 = vand.u32 4294901760, %v12707_v3 }
  0xf9   :  { %6297 = vmatprep.subr.bf16.mxu0 %v8579_v20  ;;  %v12684_v20 = vand.u32 4294901760, %v12683_v12  ;;  %v12698_v12 = vand.u32 4294901760, %v12697_v2  ;;  %v1426_v19 = vld [vmem:[#allocation2 + $0x218] sm:$0xff] }
  0xfb   :  { %v6306_v17 = vpack.c.bf16 %v12686_v0, %v12684_v20  ;;  %v12700_v0 = vand.u32 4294901760, %v12699_v46 }
  0xfc   :  { %6299 = vmatpush1.bf16.msra.mxu0 %v8585_v8 }
  0xfd   :  { %6301 = vmatprep.subr.bf16.mxu0 %v8591_v24  ;;  %v12689_v24 = vld [vmem:[#allocation21_spill] sm:$0xff] }
  0xfe   :  { %v12690_v8 = vand.u32 4294901760, %v12689_v24  ;;  %v12705_v24 = vld [vmem:[#allocation37_spill] sm:$0xff] }
 0x100   :  { %6303 = vmatpush1.bf16.msra.mxu0 %v8597_v34  ;;  %v6308_v44 = vpack.c.bf16 %v12690_v8, %v12688_v43  ;;  %v12696_v34 = vand.u32 4294901760, %v12695_v13  ;;  %v12706_v8 = vand.u32 4294901760, %v12705_v24  ;;  %v1424_v43 = vld [vmem:[#allocation2 + $0x208] sm:$0xff]  ;;  %v12709_v13 = vld [vmem:[#allocation39_spill] sm:$0xff] }
 0x101   :  { %6305 = vmatprep.subr.bf16.mxu0 %v6304_v6  ;;  %v12702_v6 = vand.u32 4294901760, %v12701_v29  ;;  %v12710_v2 = vand.u32 4294901760, %v12709_v13  ;;  %v1500_v46 = vand.u32 4294901760, %v1424_v43  ;;  %v1425_v29 = vld [vmem:[#allocation2 + $0x210] sm:$0xff]  ;;  %v1430_v24 = vld [vmem:[#allocation2 + $0x238] sm:$0xff] }
 0x102   :  { %v6312_v62 = vpack.c.bf16 %v12698_v12, %v12696_v34  ;;  %v12711_v12 = vld [vmem:[#allocation116_spill] sm:$0xff]  ;;  %v1506_v3 = vand.u32 4294901760, %v1425_v29  ;;  %v1512_v13 = vand.u32 4294901760, %v1430_v24 }
 0x103   :  { %1002 = vmatmul.mubr.f32.vlgmr.msra.gmra.mrb[0].mxu0 %v262_v48  ;;  %v6314_v20 = vpack.c.bf16 %v12702_v6, %v12700_v0  ;;  %v8831_v48 = vpack.c.bf16 %v12706_v8, %v12704_v57  ;;  %v8837_v34 = vpack.c.bf16 %v12710_v2, %v12708_v61  ;;  %v1504_v0 = vand.u32 4294901760, %v1426_v19  ;;  %v12712_v57 = vld [vmem:[#allocation46_spill] sm:$0xff]  ;;  %v1427_v61 = vld [vmem:[#allocation2 + $0x220] sm:$0xff] }
 0x104   :  { %6307 = vmatpush1.bf16.msra.mxu0 %v6306_v17  ;;  %1265 = vmatprep.mubr.f32.mxu0 %v12711_v12  ;;  %v1502_v6 = vand.u32 4294901760, %v1423_v4  ;;  %v12713_v8 = vand.u32 4294901760, %v12712_v57  ;;  %v1429_v2 = vld [vmem:[#allocation2 + $0x230] sm:$0xff]  ;;  %v8848_v7 = vsub.f32 %v1424_v43, %v1500_v46  ;;  %v1431_v57 = vld [vmem:[#allocation2 + $0x240] sm:$0xff]  ;;  %v8863_v43 = vsub.f32 %v1430_v24, %v1512_v13 }
 0x105   :  { %6309 = vmatprep.subr.bf16.mxu0 %v6308_v44  ;;  %v8846_v25 = vpack.c.bf16 %v1504_v0, %v1500_v46  ;;  %v8850_v16 = vsub.f32 %v1426_v19, %v1504_v0  ;;  %v1434_v44 = vld [vmem:[#allocation2 + $0x258] sm:$0xff]  ;;  %v1510_v19 = vand.u32 4294901760, %v1427_v61  ;;  %v1516_v46 = vand.u32 4294901760, %v1432_v28 }
 0x106   :  { %v8844_v17 = vpack.c.bf16 %v12715_v35, %v12713_v8  ;;  %12717 = vst [vmem:[#allocation96_spill] sm:$0xff] %v8848_v7  ;;  %v8852_v14 = vsub.f32 %v1423_v4, %v1502_v6  ;;  %v8854_v10 = vpack.c.bf16 %v1506_v3, %v1502_v6  ;;  %v8856_v35 = vsub.f32 %v1425_v29, %v1506_v3  ;;  %v1438_v0 = vld [vmem:[#allocation2 + $0x278] sm:$0xff] }
 0x107   :  { %12716 = vst [vmem:[#allocation93_spill] sm:$0xff] %v8846_v25  ;;  %12718 = vst [vmem:[#allocation97_spill] sm:$0xff] %v8850_v16  ;;  %v8858_v8 = vpack.c.bf16 %v1512_v13, %v1508_v18  ;;  %6433 = vmatprep.subr.bf16.mxu1 %v8846_v25  ;;  %v1514_v4 = vand.u32 4294901760, %v1429_v2  ;;  %v1520_v6 = vand.u32 4294901760, %v1434_v44  ;;  %v1518_v29 = vand.u32 4294901760, %v1431_v57  ;;  %v1437_v18 = vld [vmem:[#allocation2 + $0x270] sm:$0xff] }
 0x108   :  { %12719 = vst [vmem:[#allocation100_spill] sm:$0xff] %v8852_v14  ;;  %12720 = vst [vmem:[#allocation101_spill] sm:$0xff] %v8854_v10  ;;  %6311 = vmatpush1.bf16.msra.mxu0 %v6310_v15  ;;  %6435 = vmatpush1.bf16.msra.mxu1 %v8854_v10  ;;  %v1522_v3 = vand.u32 4294901760, %v1433_v42  ;;  %v1435_v14 = vld [vmem:[#allocation2 + $0x260] sm:$0xff]  ;;  %v8869_v38 = vsub.f32 %v1427_v61, %v1510_v19  ;;  %v8873_v13 = vsub.f32 %v1432_v28, %v1516_v46  ;;  %v1440_v25 = vld [vmem:[#allocation2 + $0x288] sm:$0xff] }
 0x109   :  { %12721 = vst [vmem:[#allocation103_spill] sm:$0xff] %v8856_v35  ;;  %12722 = vst [vmem:[#allocation105_spill] sm:$0xff] %v8858_v8  ;;  %6313 = vmatprep.subr.bf16.mxu0 %v6312_v62  ;;  %v1524_v35 = vand.u32 4294901760, %v1436_v47  ;;  %6437 = vmatprep.subr.bf16.mxu1 %v8858_v8  ;;  %v8867_v15 = vpack.c.bf16 %v1514_v4, %v1510_v19  ;;  %v8871_v24 = vsub.f32 %v1429_v2, %v1514_v4  ;;  %v1442_v62 = vld [vmem:[#allocation2 + $0x298] sm:$0xff]  ;;  %v1441_v8 = vld [vmem:[#allocation2 + $0x290] sm:$0xff] }
 0x10a   :  { %12724 = vst [vmem:[#allocation109_spill] sm:$0xff] %v8863_v43  ;;  %12726 = vst [vmem:[#allocation25_spill] sm:$0xff] %v8869_v38  ;;  %v8875_v43 = vld [vmem:[#allocation2 + $0x280] sm:$0xff]  ;;  %v8877_v10 = vpack.c.bf16 %v1520_v6, %v1516_v46  ;;  %v8879_v5 = vsub.f32 %v1434_v44, %v1520_v6  ;;  %v8881_v16 = vpack.c.bf16 %v1522_v3, %v1518_v29  ;;  %v1528_v2 = vand.u32 4294901760, %v1438_v0 }
 0x10b   :  { %12725 = vst [vmem:[#allocation24_spill] sm:$0xff] %v8867_v15  ;;  %12727 = vst [vmem:[#allocation26_spill] sm:$0xff] %v8871_v24  ;;  %v8883_v7 = vsub.f32 %v1431_v57, %v1518_v29  ;;  %v8885_v61 = vsub.f32 %v1433_v42, %v1522_v3  ;;  %v8887_v19 = vsub.f32 %v1436_v47, %v1524_v35  ;;  %v1526_v28 = vand.u32 4294901760, %v1435_v14  ;;  %v1444_v29 = vld [vmem:[#allocation2 + $0x2a8] sm:$0xff]  ;;  %v1446_v3 = vld [vmem:[#allocation2 + $0x2b8] sm:$0xff] }
 0x10c   :  { %12728 = vst [vmem:[#allocation27_spill] sm:$0xff] %v8873_v13  ;;  %12729 = vst [vmem:[#allocation28_spill] sm:$0xff] %v8877_v10  ;;  %6315 = vmatpush1.bf16.msra.mxu0 %v6314_v20  ;;  %6439 = vmatpush1.bf16.msra.mxu1 %v8867_v15  ;;  %v1530_v4 = vand.u32 4294901760, %v1437_v18  ;;  %v1532_v46 = vand.u32 4294901760, %v1440_v25  ;;  %v1536_v44 = vand.u32 4294901760, %v1442_v62  ;;  %v1534_v6 = vand.u32 4294901760, %v8875_v43 }
 0x10d   :  { %12730 = vst [vmem:[#allocation29_spill] sm:$0xff] %v8879_v5  ;;  %12731 = vst [vmem:[#allocation49_spill] sm:$0xff] %v8881_v16  ;;  %6317 = vmatprep.subr.bf16.mxu0 %v8831_v48  ;;  %6441 = vmatprep.subr.bf16.mxu1 %v8877_v10  ;;  %v8893_v57 = vpack.c.bf16 %v1528_v2, %v1524_v35  ;;  %v8895_v20 = vsub.f32 %v1438_v0, %v1528_v2  ;;  %v1538_v47 = vand.u32 4294901760, %v1441_v8  ;;  %v12741_v13 = vld [vmem:[#allocation52_spill] sm:$0xff] }
 0x10e   :  { %12732 = vst [vmem:[#allocation30_spill] sm:$0xff] %v8883_v7  ;;  %12733 = vst [vmem:[#allocation33_spill] sm:$0xff] %v8885_v61  ;;  %v8897_v42 = vsub.f32 %v1435_v14, %v1526_v28  ;;  %v12738_v48 = vand.u32 4294901760, %v12593_v1  ;;  %v12742_v61 = vand.u32 4294901760, %v12741_v13  ;;  %v12743_v7 = vld [vmem:[#allocation53_spill] sm:$0xff]  ;;  %v8907_v10 = vsub.f32 %v1437_v18, %v1530_v4  ;;  %v1443_v0 = vld [vmem:[#allocation2 + $0x2a0] sm:$0xff] }
 0x10f   :  { %12734 = vst [vmem:[#allocation40_spill] sm:$0xff] %v8887_v19  ;;  %12735 = vst [vmem:[#allocation41_spill] sm:$0xff] %v8893_v57  ;;  %v12739_v19 = vld [vmem:[#allocation50_spill] sm:$0xff]  ;;  %v12744_v24 = vand.u32 4294901760, %v12743_v7  ;;  %v8909_v35 = vsub.f32 %v1440_v25, %v1532_v46  ;;  %v1448_v2 = vld [vmem:[#allocation2 + $0x2c8] sm:$0xff]  ;;  %v12748_v1 = vand.u32 4294901760, %v7905_v33  ;;  %v8919_v13 = vsub.f32 %v8875_v43, %v1534_v6 }
 0x110   :  { %12736 = vst [vmem:[#allocation42_spill] sm:$0xff] %v8895_v20  ;;  %12737 = vst [vmem:[#allocation43_spill] sm:$0xff] %v8897_v42  ;;  %v12740_v15 = vand.u32 4294901760, %v12739_v19  ;;  %v1445_v14 = vld [vmem:[#allocation2 + $0x2b0] sm:$0xff]  ;;  %6319 = vmatpush1.bf16.msra.mxu0 %v8837_v34  ;;  %v12747_v20 = vand.u32 4294901760, %v7887_v36  ;;  %v8921_v7 = vsub.f32 %v1441_v8, %v1538_v47  ;;  %v1450_v18 = vld [vmem:[#allocation2 + $0x2d8] sm:$0xff]  ;;  %6443 = vmatpush1.bf16.msra.mxu1 %v8881_v16 }
 0x111   :  { %v6324_v38 = vpack.c.bf16 %v12744_v24, %v12742_v61  ;;  %12745 = vst [vmem:[#allocation44_spill] sm:$0xff] %v8907_v10  ;;  %12746 = vst [vmem:[#allocation45_spill] sm:$0xff] %v8909_v35  ;;  %v1447_v25 = vld [vmem:[#allocation2 + $0x2c0] sm:$0xff]  ;;  %6321 = vmatprep.subr.bf16.mxu0 %v8844_v17  ;;  %v8929_v36 = vpack.c.bf16 %v1530_v4, %v1526_v28  ;;  %v1540_v33 = vand.u32 4294901760, %v1444_v29  ;;  %6445 = vmatprep.subr.bf16.mxu1 %v8893_v57  ;;  %v1452_v17 = vld [vmem:[#allocation2 + $0x2e8] sm:$0xff] }
 0x112   :  { %v6322_v5 = vpack.c.bf16 %v12740_v15, %v12738_v48  ;;  %v6326_v19 = vpack.c.bf16 %v12748_v1, %v12747_v20  ;;  %v8916_v15 = vsub.f32 %v1442_v62, %v1536_v44  ;;  %12750 = vst [vmem:[#allocation51_spill] sm:$0xff] %v8919_v13  ;;  %12751 = vst [vmem:[#allocation54_spill] sm:$0xff] %v8921_v7  ;;  %v12752_v24 = vld [vmem:[#allocation59_spill] sm:$0xff]  ;;  %v12754_v48 = vld [vmem:[#allocation62_spill] sm:$0xff]  ;;  %v1544_v62 = vand.u32 4294901760, %v1446_v3 }
 0x113   :  { %v12753_v61 = vand.u32 4294901760, %v12752_v24  ;;  %v12755_v34 = vand.u32 4294901760, %v12754_v48  ;;  %12756 = vst [vmem:[#allocation55_spill] sm:$0xff] %v8929_v36  ;;  %v1449_v20 = vld [vmem:[#allocation2 + $0x2d0] sm:$0xff]  ;;  %v8932_v8 = vpack.c.bf16 %v1536_v44, %v1532_v46  ;;  %v1542_v43 = vand.u32 4294901760, %v1443_v0 }
 0x114   :  { %12749 = vst [vmem:[#allocation47_spill] sm:$0xff] %v8916_v15  ;;  %v1546_v1 = vand.u32 4294901760, %v1445_v14  ;;  %v1548_v7 = vand.u32 4294901760, %v1448_v2  ;;  %v8934_v13 = vsub.f32 %v1444_v29, %v1540_v33  ;;  %v8936_v24 = vsub.f32 %v1446_v3, %v1544_v62  ;;  %6323 = vmatpush1.bf16.msra.mxu0 %v6322_v5  ;;  %6447 = vmatpush1.bf16.msra.mxu1 %v8929_v36 }
 0x115   :  { %v6328_v35 = vpack.c.bf16 %v12755_v34, %v12753_v61  ;;  %12757 = vst [vmem:[#allocation56_spill] sm:$0xff] %v8932_v8  ;;  %v1552_v61 = vand.u32 4294901760, %v1450_v18  ;;  %v1550_v48 = vand.u32 4294901760, %v1447_v25  ;;  %v1454_v34 = vld [vmem:[#allocation2 + $0x2f8] sm:$0xff]  ;;  %v8938_v28 = vsub.f32 %v1443_v0, %v1542_v43  ;;  %6325 = vmatprep.subr.bf16.mxu0 %v6324_v38  ;;  %6449 = vmatprep.subr.bf16.mxu1 %v8932_v8 }
 0x116   :  { %12758 = vst [vmem:[#allocation57_spill] sm:$0xff] %v8934_v13  ;;  %12759 = vst [vmem:[#allocation58_spill] sm:$0xff] %v8936_v24  ;;  %v8940_v4 = vsub.f32 %v1445_v14, %v1546_v1  ;;  %v8942_v16 = vsub.f32 %v1448_v2, %v1548_v7  ;;  %v1554_v46 = vand.u32 4294901760, %v1449_v20  ;;  %v8945_v44 = vpack.c.bf16 %v1538_v47, %v1534_v6 }
 0x117   :  { %12760 = vst [vmem:[#allocation60_spill] sm:$0xff] %v8938_v28  ;;  %v8947_v29 = vsub.f32 %v1450_v18, %v1552_v61  ;;  %v8949_v3 = vsub.f32 %v1447_v25, %v1550_v48  ;;  %v1556_v57 = vand.u32 4294901760, %v1452_v17  ;;  %v8952_v5 = vpack.c.bf16 %v1544_v62, %v1540_v33 }
 0x118   :  { %12761 = vst [vmem:[#allocation110_spill] sm:$0xff] %v8940_v4  ;;  %12762 = vst [vmem:[#allocation108_spill] sm:$0xff] %v8942_v16  ;;  %v8954_v0 = vsub.f32 %v1449_v20, %v1554_v46  ;;  %v1560_v14 = vand.u32 4294901760, %v1454_v34  ;;  %6327 = vmatpush1.bf16.msra.mxu0 %v6326_v19  ;;  %v12769_v38 = vand.u32 4294901760, %v7948_v58  ;;  %v12770_v6 = vand.u32 4294901760, %v7953_v54  ;;  %6451 = vmatpush1.bf16.msra.mxu1 %v8945_v44 }
 0x119   :  { %12763 = vst [vmem:[#allocation112_spill] sm:$0xff] %v8945_v44  ;;  %12764 = vst [vmem:[#allocation117_spill] sm:$0xff] %v8947_v29  ;;  %v8956_v2 = vsub.f32 %v1452_v17, %v1556_v57  ;;  %6329 = vmatprep.subr.bf16.mxu0 %v6328_v35  ;;  %v12772_v25 = vand.u32 4294901760, %v7965_v60  ;;  %v12773_v8 = vand.u32 4294901760, %v7973_v23  ;;  %v8969_v62 = vpack.c.bf16 %v1546_v1, %v1542_v43 }
 0x11a   :  { %12765 = vst [vmem:[#allocation111_spill] sm:$0xff] %v8949_v3  ;;  %12766 = vst [vmem:[#allocation115_spill] sm:$0xff] %v8952_v5  ;;  %v6330_v47 = vpack.c.bf16 %v12770_v6, %v12769_v38  ;;  %v8962_v18 = vsub.f32 %v1454_v34, %v1560_v14  ;;  %6453 = vmatprep.subr.bf16.mxu1 %v8952_v5  ;;  %v8972_v19 = vpack.c.bf16 %v1552_v61, %v1548_v7  ;;  %v12794_v38 = vld [vmem:[#allocation82_spill] sm:$0xff]  ;;  %v1479_v5 = vld [vmem:[#allocation2 + $0x3c0] sm:$0xff] }
 0x11b   :  { %12767 = vst [vmem:[#allocation114_spill] sm:$0xff] %v8954_v0  ;;  %12768 = vst [vmem:[#allocation118_spill] sm:$0xff] %v8956_v2  ;;  %v6332_v33 = vpack.c.bf16 %v12773_v8, %v12772_v25  ;;  %v12776_v58 = vand.u32 4294901760, %v7992_v22  ;;  %v12777_v54 = vand.u32 4294901760, %v8002_v26  ;;  %v12778_v60 = vand.u32 4294901760, %v8023_v49  ;;  %v12798_v25 = vld [vmem:[#allocation86_spill] sm:$0xff] }
 0x11c   :  { %12771 = vst [vmem:[#allocation8_spill] sm:$0xff] %v8962_v18  ;;  %12774 = vst [vmem:[#allocation9_spill] sm:$0xff] %v8969_v62  ;;  %6331 = vmatpush1.bf16.msra.mxu0 %v6330_v47  ;;  %v12779_v23 = vand.u32 4294901760, %v8031_v11  ;;  %6455 = vmatpush1.bf16.msra.mxu1 %v8969_v62  ;;  %v8983_v8 = vpack.c.bf16 %v1554_v46, %v1550_v48  ;;  %v8986_v7 = vpack.c.bf16 %v1560_v14, %v1556_v57  ;;  %v12792_v46 = vld [vmem:[#allocation79_spill] sm:$0xff] }
 0x11d   :  { %12775 = vst [vmem:[#allocation10_spill] sm:$0xff] %v8972_v19  ;;  %v6334_v20 = vpack.c.bf16 %v12777_v54, %v12776_v58  ;;  %6333 = vmatprep.subr.bf16.mxu0 %v6332_v33  ;;  %6457 = vmatprep.subr.bf16.mxu1 %v8972_v19  ;;  %v12782_v22 = vand.u32 4294901760, %v8045_v51  ;;  %v12783_v26 = vand.u32 4294901760, %v8050_v27  ;;  %v12784_v49 = vand.u32 4294901760, %v8061_v31  ;;  %v12802_v54 = vld [vmem:[#allocation90_spill] sm:$0xff] }
 0x11e   :  { %v6336_v35 = vpack.c.bf16 %v12779_v23, %v12778_v60  ;;  %12780 = vst [vmem:[#allocation16_spill] sm:$0xff] %v8983_v8  ;;  %12781 = vst [vmem:[#allocation17_spill] sm:$0xff] %v8986_v7  ;;  %v12785_v11 = vand.u32 4294901760, %v8075_v55  ;;  %v12786_v57 = vand.u32 4294901760, %v8087_v53  ;;  %v12787_v17 = vand.u32 4294901760, %v8098_v56  ;;  %v12796_v56 = vld [vmem:[#allocation83_spill] sm:$0xff] }
 0x11f   :  { %v6338_v43 = vpack.c.bf16 %v12783_v26, %v12782_v22  ;;  %v12788_v27 = vand.u32 4294901760, %v8119_v37  ;;  %v12789_v51 = vand.u32 4294901760, %v8128_v50  ;;  %v12790_v55 = vand.u32 4294901760, %v8137_v39  ;;  %v12800_v50 = vld [vmem:[#allocation88_spill] sm:$0xff]  ;;  %v12806_v23 = vld [vmem:[#allocation94_spill] sm:$0xff]  ;;  %v12808_v26 = vld [vmem:[#allocation95_spill] sm:$0xff] }
 0x120   :  { %6335 = vmatpush1.bf16.msra.mxu0 %v6334_v20  ;;  %v6340_v1 = vpack.c.bf16 %v12785_v11, %v12784_v49  ;;  %6459 = vmatpush1.bf16.msra.mxu1 %v8983_v8  ;;  %v6342_v61 = vpack.c.bf16 %v12787_v17, %v12786_v57  ;;  %v12791_v31 = vand.u32 4294901760, %v8146_v40  ;;  %v12793_v14 = vand.u32 4294901760, %v12792_v46  ;;  %v12804_v40 = vld [vmem:[#allocation92_spill] sm:$0xff]  ;;  %v12810_v49 = vld [vmem:[#allocation98_spill] sm:$0xff]  ;;  %v12812_v57 = vld [vmem:[#allocation99_spill] sm:$0xff] }
 0x121   :  { %6337 = vmatprep.subr.bf16.mxu0 %v6336_v35  ;;  %6461 = vmatprep.subr.bf16.mxu1 %v8986_v7  ;;  %v6344_v48 = vpack.c.bf16 %v12789_v51, %v12788_v27  ;;  %v12795_v53 = vand.u32 4294901760, %v12794_v38  ;;  %v12797_v47 = vand.u32 4294901760, %v12796_v56  ;;  %v12799_v37 = vand.u32 4294901760, %v12798_v25  ;;  %v12823_v56 = vld [vmem:[#allocation113_spill] sm:$0xff]  ;;  %v1482_v8 = vld [vmem:[#allocation2 + $0x3d8] sm:$0xff] }
 0x122   :  { %v6346_v34 = vpack.c.bf16 %v12791_v31, %v12790_v55  ;;  %v12801_v58 = vand.u32 4294901760, %v12800_v50  ;;  %v12803_v39 = vand.u32 4294901760, %v12802_v54  ;;  %v12805_v60 = vand.u32 4294901760, %v12804_v40  ;;  %v12818_v31 = vld [vmem:[#allocation106_spill] sm:$0xff]  ;;  %v1451_v54 = vld [vmem:[#allocation2 + $0x2e0] sm:$0xff]  ;;  %v1480_v7 = vld [vmem:[#allocation2 + $0x3c8] sm:$0xff] }
 0x123   :  { %v6348_v6 = vpack.c.bf16 %v12795_v53, %v12793_v14  ;;  %v6350_v33 = vpack.c.bf16 %v12799_v37, %v12797_v47  ;;  %v12807_v35 = vand.u32 4294901760, %v12806_v23  ;;  %v12811_v11 = vand.u32 4294901760, %v12810_v49  ;;  %v12838_v23 = vld [vmem:[#allocation85_spill] sm:$0xff] }
 0x124   :  { %6339 = vmatpush1.bf16.msra.mxu0 %v6338_v43  ;;  %v6352_v20 = vpack.c.bf16 %v12803_v39, %v12801_v58  ;;  %v12809_v43 = vand.u32 4294901760, %v12808_v26  ;;  %v12813_v17 = vand.u32 4294901760, %v12812_v57  ;;  %v12820_v14 = vand.u32 4294901760, %v12665_v45  ;;  %v12827_v45 = vld [vmem:[#allocation11_spill] sm:$0xff]  ;;  %v12832_v58 = vld [vmem:[#allocation80_spill] sm:$0xff]  ;;  %v12843_v49 = vld [vmem:[#allocation13_spill] sm:$0xff] }
 0x125   :  { %6341 = vmatprep.subr.bf16.mxu0 %v6340_v1  ;;  %v6354_v22 = vpack.c.bf16 %v12807_v35, %v12805_v60  ;;  %v12821_v38 = vand.u32 4294901760, %v12664_v21  ;;  %v12824_v47 = vand.u32 4294901760, %v12823_v56  ;;  %v12825_v37 = vand.u32 4294901760, %v12673_v9  ;;  %v12829_v9 = vld [vmem:[#allocation76_spill] sm:$0xff]  ;;  %v12831_v21 = vld [vmem:[#allocation78_spill] sm:$0xff]  ;;  %v12839_v35 = vld [vmem:[#allocation87_spill] sm:$0xff] }
 0x126   :  { %v6356_v1 = vpack.c.bf16 %v12811_v11, %v12809_v43  ;;  %v12834_v39 = vld [vmem:[#allocation84_spill] sm:$0xff]  ;;  %v12841_v26 = vld [vmem:[#allocation91_spill] sm:$0xff]  ;;  %v12844_v11 = vld [vmem:[#allocation14_spill] sm:$0xff]  ;;  %v1612_v19 = vand.u32 4294901760, %v1480_v7  ;;  %v1616_v62 = vand.u32 4294901760, %v1482_v8  ;;  %v1614_v44 = vand.u32 4294901760, %v1479_v5 }
 0x127   :  { %v6362_v53 = vpack.c.bf16 %v12821_v38, %v12820_v14  ;;  %v12842_v43 = vld [vmem:[#allocation12_spill] sm:$0xff]  ;;  %v12846_v57 = vld [vmem:[#allocation61_spill] sm:$0xff]  ;;  %v9094_v56 = vld [vmem:[#allocation2 + $0x318] sm:$0xff] }
 0x128   :  { %6343 = vmatpush1.bf16.msra.mxu0 %v6342_v61  ;;  %v12814_v61 = vld [vmem:[#allocation102_spill] sm:$0xff]  ;;  %v12856_v14 = vld [vmem:[#allocation72_spill] sm:$0xff]  ;;  %v12857_v38 = vld [vmem:[#allocation73_spill] sm:$0xff]  ;;  %v12873_v18 = vand.u32 4294901760, %v9094_v56 }
 0x129   :  { %6345 = vmatprep.subr.bf16.mxu0 %v6344_v48  ;;  %v12815_v27 = vand.u32 4294901760, %v12814_v61  ;;  %v12816_v48 = vld [vmem:[#allocation104_spill] sm:$0xff] }
 0x12a   :  { %v12817_v55 = vand.u32 4294901760, %v12816_v48  ;;  %v12848_v61 = vld [vmem:[#allocation64_spill] sm:$0xff]  ;;  %v12851_v48 = vld [vmem:[#allocation67_spill] sm:$0xff]  ;;  %v9202_v2 = vsub.f32 %v9094_v56, %v12873_v18 }
 0x12b   :  { %v6358_v51 = vpack.c.bf16 %v12815_v27, %v12813_v17  ;;  %v12847_v17 = vld [vmem:[#allocation63_spill] sm:$0xff]  ;;  %v12849_v27 = vld [vmem:[#allocation65_spill] sm:$0xff] }
 0x12c   :  { %6347 = vmatpush1.bf16.msra.mxu0 %v6346_v34  ;;  %v12819_v34 = vand.u32 4294901760, %v12818_v31  ;;  %v12853_v31 = vld [vmem:[#allocation69_spill] sm:$0xff]  ;;  %12874 = vst [vmem:[#allocation48_spill] sm:$0xff] %v9202_v2 }
 0x12d   :  { %6349 = vmatprep.subr.bf16.mxu0 %v6348_v6  ;;  %v12822_v6 = vand.u32 4294901760, %v12668_v32  ;;  %v12828_v32 = vld [vmem:[#allocation75_spill] sm:$0xff] }
 0x12e   :  { %v6360_v46 = vpack.c.bf16 %v12819_v34, %v12817_v55  ;;  %v12852_v55 = vld [vmem:[#allocation68_spill] sm:$0xff]  ;;  %v12854_v34 = vld [vmem:[#allocation70_spill] sm:$0xff] }
 0x12f   :  { %v6364_v25 = vpack.c.bf16 %v12824_v47, %v12822_v6  ;;  %v9092_v6 = vld [vmem:[#allocation2 + $0x308] sm:$0xff] }
 0x130   :  { %6351 = vmatpush1.bf16.msra.mxu0 %v6350_v33  ;;  %v12826_v33 = vand.u32 4294901760, %v12672_v30  ;;  %v12830_v30 = vld [vmem:[#allocation77_spill] sm:$0xff]  ;;  %v11889_v47 = vand.u32 4294901760, %v9092_v6 }
 0x131   :  { %6353 = vmatprep.subr.bf16.mxu0 %v6352_v20 }
 0x132   :  { %v6366_v50 = vpack.c.bf16 %v12826_v33, %v12825_v37  ;;  %v9098_v37 = vld [vmem:[#allocation2 + $0x300] sm:$0xff]  ;;  %v9100_v33 = vld [vmem:[#allocation2 + $0x310] sm:$0xff] }
 0x133   :  { %v12876_v0 = vand.u32 4294901760, %v9098_v37  ;;  %v12878_v3 = vand.u32 4294901760, %v9100_v33 }
 0x134   :  { %6355 = vmatpush1.bf16.msra.mxu0 %v6354_v22  ;;  %v12840_v22 = vld [vmem:[#allocation89_spill] sm:$0xff] }
 0x135   :  { %6357 = vmatprep.subr.bf16.mxu0 %v6356_v1  ;;  %v12845_v1 = vld [vmem:[#allocation15_spill] sm:$0xff]  ;;  %v9214_v29 = vsub.f32 %v9100_v33, %v12878_v3 }
 0x137   :  { %12879 = vst [vmem:[#allocation53_spill] sm:$0xff] %v9214_v29 }
 0x138   :  { %6359 = vmatpush1.bf16.msra.mxu0 %v6358_v51  ;;  %v12850_v51 = vld [vmem:[#allocation66_spill] sm:$0xff] }
 0x139   :  { %6361 = vmatprep.subr.bf16.mxu0 %v6360_v46  ;;  %v12855_v46 = vld [vmem:[#allocation71_spill] sm:$0xff] }
 0x13c   :  { %6363 = vmatpush1.bf16.msra.mxu0 %v6362_v53  ;;  %v12858_v53 = vld [vmem:[#allocation74_spill] sm:$0xff] }
 0x13d   :  { %6365 = vmatprep.subr.bf16.mxu0 %v6364_v25  ;;  %v11888_v25 = vand.u32 4294901760, %v9094_v56 }
 0x140   :  { %6367 = vmatpush1.bf16.msra.mxu0 %v6366_v50 }
 0x141   :  { %6369 = vmatprep.subr.bf16.mxu0 %v12676_v41  ;;  %v12833_v41 = vld [vmem:[#allocation81_spill] sm:$0xff] }
 0x143   :  { %1267 = vmatmul.mubr.f32.vlgmr.msra.gmra.mrb[0].mxu0 %v12670_v63 }
 0x144   :  { %6371 = vmatpush1.bf16.msra.mxu0 %v12677_v59  ;;  %1402 = vmatprep.mubr.f32.mxu0 %v12711_v12  ;;  %v1453_v59 = vld [vmem:[#allocation2 + $0x2f0] sm:$0xff]  ;;  %v1558_v12 = vand.u32 4294901760, %v1451_v54 }
 0x145   :  { %6373 = vmatprep.subr.bf16.mxu0 %v12678_v52  ;;  %v1562_v52 = vand.u32 4294901760, %v1453_v59 }
 0x146   :  { %v9065_v40 = vsub.f32 %v1451_v54, %v1558_v12 }
 0x147   :  { %v9063_v20 = vpack.c.bf16 %v1562_v52, %v1558_v12  ;;  %v9067_v60 = vsub.f32 %v1453_v59, %v1562_v52  ;;  %v9127_v59 = vld [vmem:[#allocation2 + $0x320] sm:$0xff] }
 0x148   :  { %6375 = vmatpush1.bf16.msra.mxu0 %v12827_v45  ;;  %12836 = vst [vmem:[#allocation19_spill] sm:$0xff] %v9065_v40  ;;  %v11887_v45 = vand.u32 4294901760, %v9098_v37  ;;  %v11883_v12 = vand.u32 4294901760, %v9127_v59 }
 0x149   :  { %6377 = vmatprep.subr.bf16.mxu0 %v12828_v32  ;;  %12835 = vst [vmem:[#allocation18_spill] sm:$0xff] %v9063_v20  ;;  %12837 = vst [vmem:[#allocation20_spill] sm:$0xff] %v9067_v60  ;;  %6463 = vmatpush1.bf16.msra.mxu1 %v9063_v20  ;;  %v11886_v32 = vand.u32 4294901760, %v9100_v33  ;;  %v9192_v60 = vpack.c.bf16 %v1616_v62, %v1612_v19 }
 0x14b   :  { %12871 = vst [vmem:[#allocation46_spill] sm:$0xff] %v9192_v60 }
 0x14c   :  { %6379 = vmatpush1.bf16.msra.mxu0 %v12829_v9 }
 0x14d   :  { %6381 = vmatprep.subr.bf16.mxu0 %v12830_v30  ;;  %v9118_v30 = vpack.c.bf16 %v11886_v32, %v11887_v45 }
 0x14f   :  { %12860 = vst [vmem:[#allocation22_spill] sm:$0xff] %v9118_v30 }
 0x150   :  { %6383 = vmatpush1.bf16.msra.mxu0 %v12831_v21  ;;  %v9120_v21 = vld [vmem:[#allocation2 + $0x328] sm:$0xff] }
 0x151   :  { %6385 = vmatprep.subr.bf16.mxu0 %v12832_v58  ;;  %v9122_v58 = vld [vmem:[#allocation2 + $0x338] sm:$0xff] }
 0x152   :  { %v11884_v54 = vand.u32 4294901760, %v9122_v58  ;;  %v12882_v18 = vand.u32 4294901760, %v9122_v58 }
 0x154   :  { %6387 = vmatpush1.bf16.msra.mxu0 %v12833_v41  ;;  %v11885_v41 = vand.u32 4294901760, %v9120_v21  ;;  %v9224_v56 = vsub.f32 %v9122_v58, %v12882_v18 }
 0x155   :  { %6389 = vmatprep.subr.bf16.mxu0 %v12834_v39  ;;  %v9129_v39 = vld [vmem:[#allocation2 + $0x330] sm:$0xff] }
 0x156   :  { %v11880_v52 = vand.u32 4294901760, %v9129_v39  ;;  %12883 = vst [vmem:[#allocation62_spill] sm:$0xff] %v9224_v56  ;;  %v12885_v3 = vand.u32 4294901760, %v9129_v39 }
 0x158   :  { %6391 = vmatpush1.bf16.msra.mxu0 %v12838_v23  ;;  %v9138_v23 = vpack.c.bf16 %v11884_v54, %v11885_v41  ;;  %v1473_v54 = vld [vmem:[#allocation2 + $0x390] sm:$0xff]  ;;  %v9235_v33 = vsub.f32 %v9129_v39, %v12885_v3 }
 0x159   :  { %6393 = vmatprep.subr.bf16.mxu0 %v12839_v35  ;;  %v9144_v35 = vpack.c.bf16 %v11880_v52, %v11883_v12  ;;  %v1474_v52 = vld [vmem:[#allocation2 + $0x398] sm:$0xff]  ;;  %v1471_v12 = vld [vmem:[#allocation2 + $0x380] sm:$0xff]  ;;  %v1602_v32 = vand.u32 4294901760, %v1473_v54 }
 0x15a   :  { %12861 = vst [vmem:[#allocation23_spill] sm:$0xff] %v9138_v23  ;;  %v1598_v41 = vand.u32 4294901760, %v1471_v12 }
 0x15b   :  { %12862 = vst [vmem:[#allocation31_spill] sm:$0xff] %v9144_v35 }
 0x15c   :  { %6395 = vmatpush1.bf16.msra.mxu0 %v12840_v22  ;;  %v9146_v22 = vld [vmem:[#allocation2 + $0x348] sm:$0xff] }
 0x15d   :  { %6397 = vmatprep.subr.bf16.mxu0 %v12841_v26  ;;  %v9148_v26 = vld [vmem:[#allocation2 + $0x358] sm:$0xff] }
 0x15e   :  { %v12887_v58 = vand.u32 4294901760, %v9148_v26 }
 0x160   :  { %6399 = vmatpush1.bf16.msra.mxu0 %v12842_v43  ;;  %v11879_v43 = vand.u32 4294901760, %v9146_v22  ;;  %v9245_v18 = vsub.f32 %v9148_v26, %v12887_v58 }
 0x161   :  { %6401 = vmatprep.subr.bf16.mxu0 %v12843_v49  ;;  %v11878_v49 = vand.u32 4294901760, %v9148_v26 }
 0x162   :  { %12888 = vst [vmem:[#allocation79_spill] sm:$0xff] %v9245_v18  ;;  %v1484_v18 = vld [vmem:[#allocation2 + $0x3e8] sm:$0xff] }
 0x164   :  { %6403 = vmatpush1.bf16.msra.mxu0 %v12844_v11  ;;  %v9153_v11 = vld [vmem:[#allocation2 + $0x340] sm:$0xff] }
 0x165   :  { %6405 = vmatprep.subr.bf16.mxu0 %v12845_v1  ;;  %v9155_v1 = vld [vmem:[#allocation2 + $0x350] sm:$0xff] }
 0x166   :  { %v12891_v39 = vand.u32 4294901760, %v9155_v1 }
 0x168   :  { %6407 = vmatpush1.bf16.msra.mxu0 %v12846_v57  ;;  %v11882_v57 = vand.u32 4294901760, %v9153_v11  ;;  %v9256_v3 = vsub.f32 %v9155_v1, %v12891_v39  ;;  %v12909_v39 = vld [vmem:[#allocation109_spill] sm:$0xff] }
 0x169   :  { %6409 = vmatprep.subr.bf16.mxu0 %v12847_v17  ;;  %v11881_v17 = vand.u32 4294901760, %v9155_v1 }
 0x16c   :  { %6411 = vmatpush1.bf16.msra.mxu0 %v12848_v61  ;;  %v9164_v61 = vpack.c.bf16 %v11878_v49, %v11879_v43  ;;  %v1472_v43 = vld [vmem:[#allocation2 + $0x388] sm:$0xff] }
 0x16d   :  { %6413 = vmatprep.subr.bf16.mxu0 %v12849_v27  ;;  %v9170_v27 = vpack.c.bf16 %v11881_v17, %v11882_v57  ;;  %v1596_v17 = vand.u32 4294901760, %v1472_v43  ;;  %v1600_v57 = vand.u32 4294901760, %v1474_v52 }
 0x16e   :  { %12863 = vst [vmem:[#allocation32_spill] sm:$0xff] %v9164_v61 }
 0x16f   :  { %12864 = vst [vmem:[#allocation34_spill] sm:$0xff] %v9170_v27  ;;  %v9180_v45 = vpack.c.bf16 %v1600_v57, %v1596_v17  ;;  %v9266_v58 = vsub.f32 %v1472_v43, %v1596_v17  ;;  %v9282_v43 = vsub.f32 %v1480_v7, %v1612_v19 }
 0x170   :  { %6415 = vmatpush1.bf16.msra.mxu0 %v12850_v51  ;;  %v1468_v51 = vld [vmem:[#allocation2 + $0x368] sm:$0xff] }
 0x171   :  { %6417 = vmatprep.subr.bf16.mxu0 %v12851_v48  ;;  %v1470_v48 = vld [vmem:[#allocation2 + $0x378] sm:$0xff]  ;;  %12867 = vst [vmem:[#allocation37_spill] sm:$0xff] %v9180_v45 }
 0x174   :  { %6419 = vmatpush1.bf16.msra.mxu0 %v12852_v55  ;;  %v1588_v55 = vand.u32 4294901760, %v1468_v51 }
 0x175   :  { %6421 = vmatprep.subr.bf16.mxu0 %v12853_v31  ;;  %v1592_v31 = vand.u32 4294901760, %v1470_v48 }
 0x178   :  { %6423 = vmatpush1.bf16.msra.mxu0 %v12854_v34  ;;  %v1467_v34 = vld [vmem:[#allocation2 + $0x360] sm:$0xff] }
 0x179   :  { %6425 = vmatprep.subr.bf16.mxu0 %v12855_v46  ;;  %v1469_v46 = vld [vmem:[#allocation2 + $0x370] sm:$0xff] }
 0x17c   :  { %6427 = vmatpush1.bf16.msra.mxu0 %v12856_v14  ;;  %v1590_v14 = vand.u32 4294901760, %v1467_v34 }
 0x17d   :  { %6429 = vmatprep.subr.bf16.mxu0 %v12857_v38  ;;  %v1594_v38 = vand.u32 4294901760, %v1469_v46 }
 0x17f   :  { %v9176_v49 = vpack.c.bf16 %v1594_v38, %v1590_v14  ;;  %v9264_v26 = vsub.f32 %v1469_v46, %v1594_v38  ;;  %v12907_v46 = vld [vmem:[#allocation103_spill] sm:$0xff] }
 0x180   :  { %6431 = vmatpush1.bf16.msra.mxu0 %v12858_v53  ;;  %v9174_v53 = vpack.c.bf16 %v1592_v31, %v1588_v55  ;;  %v12908_v38 = vld [vmem:[#allocation107_spill] sm:$0xff] }
 0x181   :  { %12866 = vst [vmem:[#allocation36_spill] sm:$0xff] %v9176_v49  ;;  %12892 = vst [vmem:[#allocation83_spill] sm:$0xff] %v9264_v26 }
 0x182   :  { %12865 = vst [vmem:[#allocation35_spill] sm:$0xff] %v9174_v53 }
 0x183   :  { %1404 = vmatmul.mubr.f32.vlgmr.msra.gmra.mrb[0].mxu0 %v12670_v63  ;;  %v9112_v63 = vpack.c.bf16 %v11888_v25, %v11889_v47  ;;  %v9182_v25 = vpack.c.bf16 %v1602_v32, %v1598_v41  ;;  %v1476_v47 = vld [vmem:[#allocation2 + $0x3a8] sm:$0xff] }
 0x185   :  { %12859 = vst [vmem:[#allocation21_spill] sm:$0xff] %v9112_v63  ;;  %6465 = vmatprep.subr.bf16.mxu1 %v9112_v63  ;;  %12868 = vst [vmem:[#allocation38_spill] sm:$0xff] %v9182_v25 }
 0x186   :  { %6467 = vmatpush1.bf16.msra.mxu1 %v9118_v30 }
 0x187   :  { %6469 = vmatprep.subr.bf16.mxu1 %v9138_v23  ;;  %v1475_v23 = vld [vmem:[#allocation2 + $0x3a0] sm:$0xff] }
 0x188   :  { %v1606_v30 = vand.u32 4294901760, %v1475_v23 }
 0x18a   :  { %6471 = vmatpush1.bf16.msra.mxu1 %v9144_v35 }
 0x18b   :  { %6473 = vmatprep.subr.bf16.mxu1 %v9164_v61  ;;  %v1604_v61 = vand.u32 4294901760, %v1476_v47 }
 0x18d   :  { %v9274_v1 = vsub.f32 %v1476_v47, %v1604_v61 }
 0x18e   :  { %6475 = vmatpush1.bf16.msra.mxu1 %v9170_v27  ;;  %v1478_v27 = vld [vmem:[#allocation2 + $0x3b8] sm:$0xff] }
 0x18f   :  { %6477 = vmatprep.subr.bf16.mxu1 %v9174_v53  ;;  %v1608_v35 = vand.u32 4294901760, %v1478_v27  ;;  %v1477_v53 = vld [vmem:[#allocation2 + $0x3b0] sm:$0xff] }
 0x190   :  { %v1610_v63 = vand.u32 4294901760, %v1477_v53 }
 0x191   :  { %v9186_v20 = vpack.c.bf16 %v1608_v35, %v1604_v61  ;;  %v12899_v61 = vld [vmem:[#allocation97_spill] sm:$0xff] }
 0x192   :  { %6479 = vmatpush1.bf16.msra.mxu1 %v9176_v49  ;;  %v9188_v49 = vpack.c.bf16 %v1610_v63, %v1606_v30 }
 0x193   :  { %6481 = vmatprep.subr.bf16.mxu1 %v9180_v45  ;;  %12869 = vst [vmem:[#allocation39_spill] sm:$0xff] %v9186_v20  ;;  %v1481_v45 = vld [vmem:[#allocation2 + $0x3d0] sm:$0xff] }
 0x194   :  { %12870 = vst [vmem:[#allocation116_spill] sm:$0xff] %v9188_v49  ;;  %v1618_v36 = vand.u32 4294901760, %v1481_v45 }
 0x196   :  { %6483 = vmatpush1.bf16.msra.mxu1 %v9182_v25  ;;  %v12872_v25 = vand.u32 4294901760, %v9092_v6 }
 0x197   :  { %6485 = vmatprep.subr.bf16.mxu1 %v9186_v20  ;;  %v9204_v20 = vpack.c.bf16 %v1618_v36, %v1614_v44 }
 0x198   :  { %v9197_v40 = vsub.f32 %v9092_v6, %v12872_v25  ;;  %v12880_v6 = vand.u32 4294901760, %v9120_v21 }
 0x199   :  { %12875 = vst [vmem:[#allocation50_spill] sm:$0xff] %v9204_v20 }
 0x19a   :  { %6487 = vmatpush1.bf16.msra.mxu1 %v9188_v49  ;;  %v9209_v49 = vsub.f32 %v9098_v37, %v12876_v0  ;;  %v9219_v25 = vsub.f32 %v9120_v21, %v12880_v6  ;;  %v12884_v0 = vand.u32 4294901760, %v9127_v59  ;;  %v12886_v21 = vand.u32 4294901760, %v9146_v22 }
 0x19b   :  { %6489 = vmatprep.subr.bf16.mxu1 %v9192_v60  ;;  %v9258_v60 = vsub.f32 %v1468_v51, %v1588_v55  ;;  %v9276_v51 = vsub.f32 %v1478_v27, %v1608_v35  ;;  %v1485_v55 = vld [vmem:[#allocation2 + $0x3f0] sm:$0xff]  ;;  %v12898_v35 = vld [vmem:[#allocation96_spill] sm:$0xff]  ;;  %v11943_v27 = vand.u32 4294901760, %v12899_v61 }
 0x19c   :  { %12877 = vst [vmem:[#allocation52_spill] sm:$0xff] %v9209_v49  ;;  %12881 = vst [vmem:[#allocation59_spill] sm:$0xff] %v9219_v25  ;;  %v9230_v37 = vsub.f32 %v9127_v59, %v12884_v0  ;;  %v9240_v6 = vsub.f32 %v9146_v22, %v12886_v21  ;;  %v12889_v59 = vand.u32 4294901760, %v9153_v11  ;;  %v9260_v22 = vsub.f32 %v1470_v48, %v1592_v31  ;;  %v1483_v48 = vld [vmem:[#allocation2 + $0x3e0] sm:$0xff] }
 0x19d   :  { %v9262_v21 = vsub.f32 %v1467_v34, %v1590_v14  ;;  %v9278_v31 = vsub.f32 %v1475_v23, %v1606_v30  ;;  %v9280_v34 = vsub.f32 %v1477_v53, %v1610_v63  ;;  %v1622_v47 = vand.u32 4294901760, %v1483_v48 }
 0x19e   :  { %6491 = vmatpush1.bf16.msra.mxu1 %v9204_v20  ;;  %v9251_v0 = vsub.f32 %v9153_v11, %v12889_v59  ;;  %v9268_v20 = vsub.f32 %v1474_v52, %v1600_v57  ;;  %v1486_v11 = vld [vmem:[#allocation2 + $0x3f8] sm:$0xff]  ;;  %v9270_v59 = vsub.f32 %v1471_v12, %v1598_v41  ;;  %v9284_v52 = vsub.f32 %v1482_v8, %v1616_v62  ;;  %v12903_v62 = vld [vmem:[#allocation100_spill] sm:$0xff] }
 0x19f   :  { %12894 = vst [vmem:[#allocation88_spill] sm:$0xff] %v9280_v34  ;;  %v9286_v57 = vsub.f32 %v1479_v5, %v1614_v44  ;;  %v9288_v41 = vsub.f32 %v1481_v45, %v1618_v36  ;;  %v1626_v12 = vand.u32 4294901760, %v1485_v55  ;;  %v11945_v17 = vand.u32 4294901760, %v12898_v35 }
 0x1a0   :  { %12890 = vst [vmem:[#allocation82_spill] sm:$0xff] %v9251_v0  ;;  %v9272_v0 = vsub.f32 %v1473_v54, %v1602_v32  ;;  %12895 = vst [vmem:[#allocation90_spill] sm:$0xff] %v9284_v52  ;;  %v1620_v32 = vand.u32 4294901760, %v1484_v18  ;;  %v1624_v54 = vand.u32 4294901760, %v1486_v11  ;;  %v11944_v8 = vand.u32 4294901760, %v12903_v62 }
 0x1a1   :  { %12896 = vst [vmem:[#allocation92_spill] sm:$0xff] %v9286_v57  ;;  %12897 = vst [vmem:[#allocation94_spill] sm:$0xff] %v9288_v41  ;;  %v9299_v44 = vpack.c.bf16 %v1626_v12, %v1622_v47  ;;  %v9301_v36 = vsub.f32 %v1483_v48, %v1622_v47  ;;  %v9303_v5 = vsub.f32 %v1485_v55, %v1626_v12  ;;  %v11950_v14 = vand.u32 4294901760, %v12907_v46  ;;  %v12910_v48 = vld [vmem:[#allocation25_spill] sm:$0xff] }
 0x1a2   :  { %12893 = vst [vmem:[#allocation86_spill] sm:$0xff] %v9272_v0  ;;  %v9292_v30 = vpack.c.bf16 %v1624_v54, %v1620_v32  ;;  %v9294_v63 = vsub.f32 %v1484_v18, %v1620_v32  ;;  %v9296_v19 = vsub.f32 %v1486_v11, %v1624_v54  ;;  %v1648_v7 = vsub.f32 %v12898_v35, %v11945_v17  ;;  %v12911_v32 = vld [vmem:[#allocation26_spill] sm:$0xff] }
 0x1a3   :  { %12904 = vst [vmem:[#allocation102_spill] sm:$0xff] %v9299_v44  ;;  %12905 = vst [vmem:[#allocation104_spill] sm:$0xff] %v9301_v36  ;;  %v1660_v45 = vsub.f32 %v12899_v61, %v11943_v27  ;;  %v1654_v23 = vsub.f32 %v12903_v62, %v11944_v8  ;;  %v11953_v53 = vand.u32 4294901760, %v12908_v38  ;;  %v11956_v11 = vand.u32 4294901760, %v12909_v39 }
 0x1a4   :  { %12900 = vst [vmem:[#allocation95_spill] sm:$0xff] %v9292_v30  ;;  %12901 = vst [vmem:[#allocation98_spill] sm:$0xff] %v9294_v63  ;;  %6493 = vmatprep.subr.bf16.mxu1 %v9292_v30  ;;  %v1649_v18 = vand.u32 4294901760, %v1648_v7  ;;  %v11959_v55 = vand.u32 4294901760, %v12910_v48  ;;  %v11964_v54 = vand.u32 4294901760, %v12911_v32  ;;  %v1666_v27 = vsub.f32 %v12907_v46, %v11950_v14 }
 0x1a5   :  { %12902 = vst [vmem:[#allocation99_spill] sm:$0xff] %v9296_v19  ;;  %12906 = vst [vmem:[#allocation106_spill] sm:$0xff] %v9303_v5  ;;  %6495 = vmatpush1.bf16.msra.mxu1 %v9299_v44  ;;  %v1661_v47 = vand.u32 4294901760, %v1660_v45  ;;  %v1655_v12 = vand.u32 4294901760, %v1654_v23  ;;  %v1672_v8 = vsub.f32 %v12908_v38, %v11953_v53  ;;  %v1684_v7 = vsub.f32 %v12909_v39, %v11956_v11  ;;  %v12912_v19 = vld [vmem:[#allocation30_spill] sm:$0xff]  ;;  %v12913_v11 = vld [vmem:[#allocation33_spill] sm:$0xff] }
 0x1a6   :  { %v1678_v17 = vsub.f32 %v12910_v48, %v11959_v55  ;;  %v1690_v45 = vsub.f32 %v12911_v32, %v11964_v54  ;;  %v1667_v44 = vand.u32 4294901760, %v1666_v27  ;;  %v11963_v63 = vand.u32 4294901760, %v12912_v19 }
 0x1a7   :  { %v6496_v23 = vpack.c.bf16 %v1661_v47, %v1649_v18  ;;  %v1673_v30 = vand.u32 4294901760, %v1672_v8  ;;  %v1685_v14 = vand.u32 4294901760, %v1684_v7  ;;  %v11962_v41 = vand.u32 4294901760, %v12913_v11 }
 0x1a8   :  { %v1679_v5 = vand.u32 4294901760, %v1678_v17  ;;  %v1691_v36 = vand.u32 4294901760, %v1690_v45  ;;  %v9336_v53 = vpack.c.bf16 %v1667_v44, %v1655_v12  ;;  %v1702_v18 = vsub.f32 %v12912_v19, %v11963_v63 }
 0x1a9   :  { %6497 = vmatprep.subr.bf16.mxu1 %v6496_v23  ;;  %v9340_v57 = vpack.c.bf16 %v1685_v14, %v1673_v30  ;;  %v1714_v17 = vsub.f32 %v12913_v11, %v11962_v41  ;;  %v11961_v27 = vand.u32 4294901760, %v8897_v42  ;;  %v11960_v8 = vand.u32 4294901760, %v8907_v10  ;;  %v12923_v11 = vld [vmem:[#allocation45_spill] sm:$0xff] }
 0x1aa   :  { %v9342_v55 = vpack.c.bf16 %v1691_v36, %v1679_v5  ;;  %v1703_v44 = vand.u32 4294901760, %v1702_v18 }
 0x1ab   :  { %v1715_v47 = vand.u32 4294901760, %v1714_v17  ;;  %v1726_v30 = vsub.f32 %v8897_v42, %v11961_v27  ;;  %v1738_v36 = vsub.f32 %v8907_v10, %v11960_v8 }
 0x1ad   :  { %v9358_v5 = vpack.c.bf16 %v1715_v47, %v1703_v44  ;;  %v1727_v14 = vand.u32 4294901760, %v1726_v30  ;;  %v1739_v12 = vand.u32 4294901760, %v1738_v36  ;;  %v105_v30 = vlaneseq }
 0x1af   :  { %v9360_v7 = vpack.c.bf16 %v1739_v12, %v1727_v14  ;;  %v106_v36 = vshrl.u32 %v105_v30, 7  ;;  %v103_v12 = vld [vmem:[%s11567_s2] ss:$4 sm:$0x3] }
 0x1b1   :  { %v9374_v14 = vsub.s32 0, %v106_v36  ;;  %v9379_v8 = vsub.s32 1, %v106_v36 }
 0x1b3   :  { %12914 = vst [vmem:[#allocation113_spill] sm:$0xff] %v9374_v14  ;;  %12915 = vst [vmem:[#allocation11_spill] sm:$0xff] %v9379_v8  ;;  %v108_v27 = vrot.slane %v103_v12, %v9374_v14  ;;  %v112_v41 = vrot.slane %v103_v12, %v9379_v8 }
 0x1ca   :  { %v9102_v50 = vpop.f32.mrb[0].mxu1 }
 0x1cb   :  { %v9106_v9 = vpop.f32.mrb[1].mxu1  ;;  %v267_v63 = vadd.f32 %v9102_v50, %v108_v27 }
 0x1cc   :  { %v269_v54 = vadd.f32 %v9106_v9, %v112_v41 }
 0x256   :  { %v1405_v44 = vpop.f32.mrb[0].mxu0 }
 0x257   :  { %v7465_v47 = vadd.f32 %v1405_v44, %v267_v63  ;;  %v1407_v17 = vpop.f32.mrb[1].mxu0  ;;  %v12918_v63 = vld [vmem:[#allocation27_spill] sm:$0xff] }
 0x258   :  { %v7467_v30 = vadd.f32 %v1407_v17, %v269_v54  ;;  %v11975_v54 = vand.u32 4294901760, %v12918_v63 }
 0x259   :  { %v1412_v18 = vmin.f32 %v7465_v47, 0.0  ;;  %vm1410_vm0 = vcmp.gt.f32.partialorder %v7465_v47, 0.0 }
 0x25a   :  { %v1413_v23 = vmin.f32 %v7467_v30, 0.0  ;;  %vm1411_vm1 = vcmp.gt.f32.partialorder %v7467_v30, 0.0 }
 0x25b   :  { %v1414_v45 = vmul.f32 1.442695, %v1412_v18 }
 0x25c   :  { %v1416_v42 = vmul.f32 1.442695, %v1413_v23  ;;  %v12920_v23 = vld [vmem:[#allocation29_spill] sm:$0xff] }
 0x25d   :  { %7508 = vpow2.f32 %v1414_v45  ;;  %v11979_v45 = vand.u32 4294901760, %v12920_v23 }
 0x25e   :  { %7510 = vpow2.f32 %v1416_v42 }
 0x25f   :  { %v1708_v44 = vsub.f32 %v12920_v23, %v11979_v45  ;;  %v12924_v23 = vld [vmem:[#allocation51_spill] sm:$0xff] }
 0x267   :  { %v7509_v36 = vpop.eup %7508 }
 0x268   :  { %v7511_v10 = vpop.eup %7510  ;;  %v5661_v19 = vadd.f32 -1.0, %v7509_v36 }
 0x269   :  { %v5662_v14 = vadd.f32 -1.0, %v7511_v10 }
 0x26a   :  { %v1420_v12 = vsel %vm1410_vm0, %v7465_v47, %v5661_v19  ;;  %v1696_v19 = vsub.f32 %v12918_v63, %v11975_v54  ;;  %v12921_v47 = vld [vmem:[#allocation40_spill] sm:$0xff]  ;;  %v11987_v54 = vand.u32 4294901760, %v12923_v11  ;;  %v11991_v63 = vand.u32 4294901760, %v12924_v23 }
 0x26b   :  { %v9385_v50 = vand.u32 4294901760, %v1420_v12  ;;  %v1421_v9 = vsel %vm1411_vm1, %v7467_v30, %v5662_v14  ;;  %v11986_v14 = vand.u32 4294901760, %v12921_v47  ;;  %v12922_v30 = vld [vmem:[#allocation42_spill] sm:$0xff] }
 0x26c   :  { %v9387_v41 = vand.u32 4294901760, %v1421_v9  ;;  %v11985_v36 = vand.u32 4294901760, %v12922_v30  ;;  %v1697_v8 = vand.u32 4294901760, %v1696_v19  ;;  %v11994_v19 = vand.u32 4294901760, %v8934_v13 }
 0x26d   :  { %12916 = vst [vmem:[#allocation75_spill] sm:$0xff] %v9385_v50  ;;  %v9391_v27 = vsub.f32 %v1420_v12, %v9385_v50  ;;  %v1720_v45 = vsub.f32 %v12921_v47, %v11986_v14  ;;  %v1750_v48 = vsub.f32 %v12924_v23, %v11991_v63  ;;  %v12928_v63 = vld [vmem:[#allocation117_spill] sm:$0xff] }
 0x26e   :  { %12917 = vst [vmem:[#allocation76_spill] sm:$0xff] %v9387_v41  ;;  %v9395_v42 = vsub.f32 %v1421_v9, %v9387_v41 }
 0x26f   :  { %12919 = vst [vmem:[#allocation77_spill] sm:$0xff] %v9391_v27  ;;  %v11978_v18 = vand.u32 4294901760, %v9391_v27  ;;  %v1751_v23 = vand.u32 4294901760, %v1750_v48 }
 0x270   :  { %v11984_v10 = vand.u32 4294901760, %v9395_v42 }
 0x271   :  { %v1637_v17 = vsub.f32 %v9391_v27, %v11978_v18  ;;  %v1709_v18 = vand.u32 4294901760, %v1708_v44  ;;  %v1732_v27 = vsub.f32 %v12922_v30, %v11985_v36  ;;  %v12926_v44 = vand.u32 4294901760, %v8916_v15 }
 0x272   :  { %v1631_v12 = vsub.f32 %v9395_v42, %v11984_v10  ;;  %v12925_v10 = vld [vmem:[#allocation54_spill] sm:$0xff] }
 0x273   :  { %v1638_v32 = vand.u32 4294901760, %v1637_v17  ;;  %v1744_v17 = vsub.f32 %v12923_v11, %v11987_v54  ;;  %v6504_v36 = vpack.c.bf16 %v1709_v18, %v1697_v8  ;;  %v1733_v14 = vand.u32 4294901760, %v1732_v27  ;;  %v12930_v11 = vld [vmem:[#allocation114_spill] sm:$0xff] }
 0x274   :  { %v1632_v9 = vand.u32 4294901760, %v1631_v12  ;;  %v11990_v12 = vand.u32 4294901760, %v12925_v10  ;;  %v1768_v54 = vsub.f32 %v8934_v13, %v11994_v19  ;;  %v12929_v13 = vld [vmem:[#allocation111_spill] sm:$0xff]  ;;  %v12931_v8 = vand.u32 4294901760, %v8938_v28 }
 0x275   :  { %v1745_v27 = vand.u32 4294901760, %v1744_v17  ;;  %v12932_v17 = vand.u32 4294901760, %v8940_v4 }
 0x276   :  { %1633 = vmatprep.mubr.f32.mxu1 %v1632_v9  ;;  %v1756_v9 = vsub.f32 %v8916_v15, %v12926_v44  ;;  %v12007_v15 = vand.u32 4294901760, %v12929_v13 }
 0x277   :  { %1639 = vmatmul.mubr.f32.vlgmr.msra.gmra.mrb[2].mxu1 %v1638_v32  ;;  %v1721_v32 = vand.u32 4294901760, %v1720_v45 }
 0x278   :  { %6499 = vmatpush1.bf16.msra.mxu1 %v9336_v53  ;;  %2030 = vmatprep.mubr.f32.mxu1 %v9387_v41  ;;  %v1762_v53 = vsub.f32 %v12925_v10, %v11990_v12  ;;  %v12927_v41 = vand.u32 4294901760, %v8936_v24  ;;  %v1757_v45 = vand.u32 4294901760, %v1756_v9  ;;  %v12002_v12 = vand.u32 4294901760, %v8942_v16  ;;  %v12933_v9 = vld [vmem:[#allocation118_spill] sm:$0xff] }
 0x279   :  { %6501 = vmatprep.subr.bf16.mxu1 %v9340_v57  ;;  %v6508_v18 = vpack.c.bf16 %v1733_v14, %v1721_v32  ;;  %v12003_v10 = vand.u32 4294901760, %v12928_v63  ;;  %v1786_v14 = vsub.f32 %v8940_v4, %v12932_v17  ;;  %v12937_v4 = vand.u32 4294901760, %v12933_v9 }
 0x27a   :  { %v1780_v44 = vsub.f32 %v8936_v24, %v12927_v41  ;;  %v1763_v19 = vand.u32 4294901760, %v1762_v53  ;;  %v12011_v41 = vand.u32 4294901760, %v12930_v11  ;;  %v1769_v24 = vand.u32 4294901760, %v1768_v54  ;;  %v12934_v53 = vld [vmem:[#allocation8_spill] sm:$0xff] }
 0x27b   :  { %v1792_v48 = vsub.f32 %v8942_v16, %v12002_v12  ;;  %v1804_v54 = vsub.f32 %v12928_v63, %v12003_v10  ;;  %v1787_v17 = vand.u32 4294901760, %v1786_v14  ;;  %v12935_v12 = vld [vmem:[#allocation19_spill] sm:$0xff]  ;;  %v12936_v63 = vld [vmem:[#allocation20_spill] sm:$0xff]  ;;  %v12015_v14 = vand.u32 4294901760, %v9214_v29 }
 0x27c   :  { %6503 = vmatpush1.bf16.msra.mxu1 %v9342_v55  ;;  %v1781_v57 = vand.u32 4294901760, %v1780_v44  ;;  %v1774_v55 = vsub.f32 %v8938_v28, %v12931_v8  ;;  %v1798_v8 = vsub.f32 %v12929_v13, %v12007_v15  ;;  %v12012_v10 = vand.u32 4294901760, %v12935_v12 }
 0x27d   :  { %6505 = vmatprep.subr.bf16.mxu1 %v6504_v36  ;;  %v6512_v36 = vpack.c.bf16 %v1757_v45, %v1745_v27  ;;  %v6514_v27 = vpack.c.bf16 %v1763_v19, %v1751_v23  ;;  %v12013_v32 = vand.u32 4294901760, %v12936_v63  ;;  %v12014_v44 = vand.u32 4294901760, %v9197_v40 }
 0x27e   :  { %v6516_v45 = vpack.c.bf16 %v1781_v57, %v1769_v24  ;;  %v1793_v15 = vand.u32 4294901760, %v1792_v48  ;;  %v1805_v13 = vand.u32 4294901760, %v1804_v54  ;;  %v1816_v23 = vsub.f32 %v12933_v9, %v12937_v4 }
 0x27f   :  { %v12938_v24 = vand.u32 4294901760, %v12934_v53  ;;  %v12019_v16 = vand.u32 4294901760, %v9219_v25  ;;  %v1822_v4 = vsub.f32 %v12935_v12, %v12012_v10  ;;  %v1834_v48 = vsub.f32 %v12936_v63, %v12013_v32 }
 0x280   :  { %6507 = vmatpush1.bf16.msra.mxu1 %v9358_v5  ;;  %v1810_v5 = vsub.f32 %v12930_v11, %v12011_v41  ;;  %v1840_v54 = vsub.f32 %v9197_v40, %v12014_v44  ;;  %v1858_v32 = vsub.f32 %v9214_v29, %v12015_v14  ;;  %v12041_v14 = vand.u32 4294901760, %v9240_v6 }
 0x281   :  { %6509 = vmatprep.subr.bf16.mxu1 %v6508_v18  ;;  %v1775_v18 = vand.u32 4294901760, %v1774_v55  ;;  %v1828_v19 = vsub.f32 %v12934_v53, %v12938_v24  ;;  %v12016_v55 = vand.u32 4294901760, %v9209_v49  ;;  %v1864_v44 = vsub.f32 %v9219_v25, %v12019_v16 }
 0x282   :  { %v1811_v57 = vand.u32 4294901760, %v1810_v5  ;;  %v1859_v25 = vand.u32 4294901760, %v1858_v32 }
 0x283   :  { %v6518_v41 = vpack.c.bf16 %v1787_v17, %v1775_v18  ;;  %v6520_v18 = vpack.c.bf16 %v1805_v13, %v1793_v15  ;;  %v1817_v17 = vand.u32 4294901760, %v1816_v23  ;;  %v1846_v10 = vsub.f32 %v9209_v49, %v12016_v55  ;;  %v12940_v55 = vld [vmem:[#allocation79_spill] sm:$0xff]  ;;  %v12941_v49 = vld [vmem:[#allocation82_spill] sm:$0xff] }
 0x284   :  { %6511 = vmatpush1.bf16.msra.mxu1 %v9360_v7  ;;  %v1799_v7 = vand.u32 4294901760, %v1798_v8  ;;  %v12939_v8 = vand.u32 4294901760, %v9202_v2  ;;  %v12042_v13 = vand.u32 4294901760, %v9235_v33  ;;  %v1823_v23 = vand.u32 4294901760, %v1822_v4 }
 0x285   :  { %6513 = vmatprep.subr.bf16.mxu1 %v6512_v36  ;;  %v12026_v36 = vand.u32 4294901760, %v9224_v56  ;;  %v12029_v29 = vand.u32 4294901760, %v12940_v55  ;;  %v1847_v16 = vand.u32 4294901760, %v1846_v10  ;;  %v1865_v15 = vand.u32 4294901760, %v1864_v44 }
 0x286   :  { %v1852_v5 = vsub.f32 %v9202_v2, %v12939_v8  ;;  %v6522_v24 = vpack.c.bf16 %v1811_v57, %v1799_v7  ;;  %v1841_v7 = vand.u32 4294901760, %v1840_v54  ;;  %v12030_v2 = vand.u32 4294901760, %v12941_v49 }
 0x287   :  { %v1888_v10 = vsub.f32 %v9240_v6, %v12041_v14  ;;  %v1900_v32 = vsub.f32 %v12940_v55, %v12029_v29  ;;  %v12040_v44 = vand.u32 4294901760, %v9258_v60 }
 0x288   :  { %6515 = vmatpush1.bf16.msra.mxu1 %v6514_v27  ;;  %v1829_v27 = vand.u32 4294901760, %v1828_v19  ;;  %v1835_v19 = vand.u32 4294901760, %v1834_v48  ;;  %v1853_v57 = vand.u32 4294901760, %v1852_v5  ;;  %v1882_v48 = vsub.f32 %v9235_v33, %v12042_v13 }
 0x289   :  { %6517 = vmatprep.subr.bf16.mxu1 %v6516_v45  ;;  %v1876_v45 = vsub.f32 %v9224_v56, %v12026_v36  ;;  %v12031_v36 = vand.u32 4294901760, %v9256_v3  ;;  %v1889_v29 = vand.u32 4294901760, %v1888_v10 }
 0x28a   :  { %v6524_v8 = vpack.c.bf16 %v1829_v27, %v1817_v17  ;;  %v6526_v54 = vpack.c.bf16 %v1835_v19, %v1823_v23  ;;  %v6528_v5 = vpack.c.bf16 %v1853_v57, %v1841_v7  ;;  %v1894_v17 = vsub.f32 %v12941_v49, %v12030_v2 }
 0x28b   :  { %v1877_v56 = vand.u32 4294901760, %v1876_v45  ;;  %v1906_v27 = vsub.f32 %v9256_v3, %v12031_v36  ;;  %v1883_v19 = vand.u32 4294901760, %v1882_v48  ;;  %v12033_v7 = vand.u32 4294901760, %v9262_v21 }
 0x28c   :  { %6519 = vmatpush1.bf16.msra.mxu1 %v6518_v41  ;;  %v12942_v41 = vand.u32 4294901760, %v9230_v37  ;;  %v12034_v57 = vand.u32 4294901760, %v9264_v26  ;;  %v1901_v2 = vand.u32 4294901760, %v1900_v32  ;;  %v1912_v36 = vsub.f32 %v9258_v60, %v12040_v44 }
 0x28d   :  { %6521 = vmatprep.subr.bf16.mxu1 %v6520_v18  ;;  %v12032_v18 = vand.u32 4294901760, %v9260_v22  ;;  %v6532_v45 = vpack.c.bf16 %v1877_v56, %v1865_v15  ;;  %v1907_v56 = vand.u32 4294901760, %v1906_v27  ;;  %v12036_v15 = vand.u32 4294901760, %v9270_v59 }
 0x28e   :  { %v1870_v4 = vsub.f32 %v9230_v37, %v12942_v41  ;;  %v12038_v41 = vand.u32 4294901760, %v9268_v20  ;;  %v1918_v10 = vsub.f32 %v9262_v21, %v12033_v7  ;;  %v1930_v32 = vsub.f32 %v9264_v26, %v12034_v57 }
 0x28f   :  { %v1942_v7 = vsub.f32 %v9270_v59, %v12036_v15 }
 0x290   :  { %6523 = vmatpush1.bf16.msra.mxu1 %v6522_v24  ;;  %v6530_v24 = vpack.c.bf16 %v1859_v25, %v1847_v16  ;;  %v1871_v23 = vand.u32 4294901760, %v1870_v4  ;;  %v1924_v16 = vsub.f32 %v9260_v22, %v12032_v18  ;;  %v1895_v25 = vand.u32 4294901760, %v1894_v17 }
 0x291   :  { %6525 = vmatprep.subr.bf16.mxu1 %v6524_v8  ;;  %v12035_v8 = vand.u32 4294901760, %v9266_v58  ;;  %v12037_v4 = vand.u32 4294901760, %v9272_v0  ;;  %v1948_v27 = vsub.f32 %v9268_v20, %v12038_v41  ;;  %v12047_v41 = vand.u32 4294901760, %v9284_v52 }
 0x292   :  { %v6534_v48 = vpack.c.bf16 %v1883_v19, %v1871_v23  ;;  %v6536_v23 = vpack.c.bf16 %v1901_v2, %v1889_v29  ;;  %v1913_v19 = vand.u32 4294901760, %v1912_v36  ;;  %v6538_v18 = vpack.c.bf16 %v1907_v56, %v1895_v25 }
 0x293   :  { %v1936_v17 = vsub.f32 %v9266_v58, %v12035_v8  ;;  %v1954_v57 = vsub.f32 %v9272_v0, %v12037_v4  ;;  %v12046_v29 = vand.u32 4294901760, %v9278_v31  ;;  %v12044_v2 = vand.u32 4294901760, %v9280_v34 }
 0x294   :  { %6527 = vmatpush1.bf16.msra.mxu1 %v6526_v54  ;;  %v12039_v54 = vand.u32 4294901760, %v9274_v1  ;;  %v1919_v36 = vand.u32 4294901760, %v1918_v10  ;;  %v1949_v56 = vand.u32 4294901760, %v1948_v27  ;;  %v12045_v4 = vand.u32 4294901760, %v9282_v43 }
 0x295   :  { %6529 = vmatprep.subr.bf16.mxu1 %v6528_v5  ;;  %v12043_v5 = vand.u32 4294901760, %v9276_v51  ;;  %v1937_v25 = vand.u32 4294901760, %v1936_v17  ;;  %v1955_v44 = vand.u32 4294901760, %v1954_v57  ;;  %v12943_v17 = vld [vmem:[#allocation92_spill] sm:$0xff]  ;;  %v1996_v57 = vsub.f32 %v9284_v52, %v12047_v41  ;;  %v12948_v41 = vld [vmem:[#allocation106_spill] sm:$0xff] }
 0x296   :  { %v1960_v8 = vsub.f32 %v9274_v1, %v12039_v54  ;;  %v1943_v54 = vand.u32 4294901760, %v1942_v7  ;;  %v12051_v27 = vand.u32 4294901760, %v12943_v17  ;;  %v1984_v7 = vsub.f32 %v9282_v43, %v12045_v4  ;;  %v12947_v4 = vld [vmem:[#allocation104_spill] sm:$0xff] }
 0x297   :  { %v12053_v52 = vand.u32 4294901760, %v12948_v41 }
 0x298   :  { %6531 = vmatpush1.bf16.msra.mxu1 %v6530_v24  ;;  %v1925_v24 = vand.u32 4294901760, %v1924_v16  ;;  %v1931_v16 = vand.u32 4294901760, %v1930_v32  ;;  %v1961_v14 = vand.u32 4294901760, %v1960_v8  ;;  %v6544_v32 = vpack.c.bf16 %v1949_v56, %v1937_v25  ;;  %v12945_v8 = vld [vmem:[#allocation98_spill] sm:$0xff] }
 0x299   :  { %6533 = vmatprep.subr.bf16.mxu1 %v6532_v45  ;;  %v1972_v45 = vsub.f32 %v9276_v51, %v12043_v5  ;;  %v1966_v5 = vsub.f32 %v9278_v31, %v12046_v29  ;;  %v12054_v29 = vand.u32 4294901760, %v12947_v4 }
 0x29a   :  { %v6540_v15 = vpack.c.bf16 %v1925_v24, %v1913_v19  ;;  %v6542_v10 = vpack.c.bf16 %v1931_v16, %v1919_v36  ;;  %v1985_v24 = vand.u32 4294901760, %v1984_v7 }
 0x29b   :  { %v1973_v13 = vand.u32 4294901760, %v1972_v45  ;;  %v12946_v45 = vld [vmem:[#allocation99_spill] sm:$0xff]  ;;  %v1967_v16 = vand.u32 4294901760, %v1966_v5 }
 0x29c   :  { %6535 = vmatpush1.bf16.msra.mxu1 %v6534_v48  ;;  %v1978_v48 = vsub.f32 %v9280_v34, %v12044_v2  ;;  %v1997_v2 = vand.u32 4294901760, %v1996_v57 }
 0x29d   :  { %6537 = vmatprep.subr.bf16.mxu1 %v6536_v23  ;;  %v12944_v23 = vld [vmem:[#allocation94_spill] sm:$0xff]  ;;  %v6548_v36 = vpack.c.bf16 %v1973_v13, %v1961_v14  ;;  %v12949_v14 = vand.u32 4294901760, %v12945_v8 }
 0x29e   :  { %v12050_v19 = vand.u32 4294901760, %v12944_v23  ;;  %v1979_v25 = vand.u32 4294901760, %v1978_v48  ;;  %v6552_v7 = vpack.c.bf16 %v1997_v2, %v1985_v24  ;;  %v12952_v2 = vpack.c.bf16 %v12907_v46, %v12903_v62 }
 0x29f   :  { %v2008_v13 = vsub.f32 %v12945_v8, %v12949_v14 }
 0x2a0   :  { %6539 = vmatpush1.bf16.msra.mxu1 %v6538_v18  ;;  %v6546_v18 = vpack.c.bf16 %v1955_v44, %v1943_v54  ;;  %v2002_v56 = vsub.f32 %v12944_v23, %v12050_v19  ;;  %v12950_v44 = vand.u32 4294901760, %v12946_v45  ;;  %v6550_v5 = vpack.c.bf16 %v1979_v25, %v1967_v16 }
 0x2a1   :  { %6541 = vmatprep.subr.bf16.mxu1 %v6540_v15  ;;  %v1990_v15 = vsub.f32 %v12943_v17, %v12051_v27  ;;  %v2014_v19 = vsub.f32 %v12947_v4, %v12054_v29  ;;  %v2009_v57 = vand.u32 4294901760, %v2008_v13  ;;  %v12951_v25 = vpack.c.bf16 %v12899_v61, %v12898_v35 }
 0x2a2   :  { %v2020_v54 = vsub.f32 %v12946_v45, %v12950_v44  ;;  %v6572_v13 = vpack.c.bf16 %v12922_v30, %v12921_v47 }
 0x2a3   :  { %v1991_v48 = vand.u32 4294901760, %v1990_v15  ;;  %v2015_v8 = vand.u32 4294901760, %v2014_v19  ;;  %v12953_v19 = vpack.c.bf16 %v12909_v39, %v12908_v38  ;;  %v12957_v15 = vld [vmem:[#allocation25_spill] sm:$0xff] }
 0x2a4   :  { %6543 = vmatpush1.bf16.msra.mxu1 %v6542_v10  ;;  %v2003_v10 = vand.u32 4294901760, %v2002_v56  ;;  %v2021_v14 = vand.u32 4294901760, %v2020_v54  ;;  %v12959_v54 = vld [vmem:[#allocation33_spill] sm:$0xff] }
 0x2a5   :  { %6545 = vmatprep.subr.bf16.mxu1 %v6544_v32  ;;  %v2026_v32 = vsub.f32 %v12948_v41, %v12053_v52 }
 0x2a6   :  { %v6554_v27 = vpack.c.bf16 %v2003_v10, %v1991_v48  ;;  %v12962_v10 = vld [vmem:[#allocation45_spill] sm:$0xff] }
 0x2a7   :  { %v2027_v44 = vand.u32 4294901760, %v2026_v32  ;;  %v12963_v32 = vld [vmem:[#allocation47_spill] sm:$0xff] }
 0x2a8   :  { %6547 = vmatpush1.bf16.msra.mxu1 %v6546_v18  ;;  %v6556_v18 = vpack.c.bf16 %v2021_v14, %v2009_v57  ;;  %v12964_v57 = vld [vmem:[#allocation44_spill] sm:$0xff]  ;;  %v12965_v14 = vld [vmem:[#allocation43_spill] sm:$0xff] }
 0x2a9   :  { %6549 = vmatprep.subr.bf16.mxu1 %v6548_v36  ;;  %v6558_v16 = vpack.c.bf16 %v2027_v44, %v2015_v8  ;;  %v12955_v8 = vld [vmem:[#allocation29_spill] sm:$0xff]  ;;  %v12956_v36 = vld [vmem:[#allocation26_spill] sm:$0xff]  ;;  %v12966_v44 = vpack.c.bf16 %v12964_v57, %v12965_v14 }
 0x2aa   :  { %v12958_v56 = vpack.c.bf16 %v12956_v36, %v12957_v15 }
 0x2ac   :  { %6551 = vmatpush1.bf16.msra.mxu1 %v6550_v5  ;;  %v12960_v5 = vld [vmem:[#allocation30_spill] sm:$0xff] }
 0x2ad   :  { %6553 = vmatprep.subr.bf16.mxu1 %v6552_v7  ;;  %v12961_v48 = vpack.c.bf16 %v12959_v54, %v12960_v5  ;;  %v6576_v7 = vpack.c.bf16 %v12963_v32, %v12962_v10 }
 0x2b0   :  { %6555 = vmatpush1.bf16.msra.mxu1 %v6554_v27  ;;  %v12954_v27 = vld [vmem:[#allocation27_spill] sm:$0xff] }
 0x2b1   :  { %6557 = vmatprep.subr.bf16.mxu1 %v6556_v18  ;;  %v6568_v24 = vpack.c.bf16 %v12955_v8, %v12954_v27  ;;  %v12967_v18 = vld [vmem:[#allocation51_spill] sm:$0xff] }
 0x2b4   :  { %6559 = vmatpush1.bf16.msra.mxu1 %v6558_v16  ;;  %v12968_v16 = vld [vmem:[#allocation54_spill] sm:$0xff] }
 0x2b5   :  { %6561 = vmatprep.subr.bf16.mxu1 %v12951_v25  ;;  %v6578_v25 = vpack.c.bf16 %v12968_v16, %v12967_v18 }
 0x2b7   :  { %2032 = vmatmul.mubr.f32.vlgmr.msra.gmra.mrb[2].mxu1 %v9385_v50  ;;  %v12974_v50 = vld [vmem:[#allocation111_spill] sm:$0xff] }
 0x2b8   :  { %6563 = vmatpush1.bf16.msra.mxu1 %v12952_v2  ;;  %2232 = vmatprep.mubr.f32.mxu1 %v9395_v42  ;;  %v12969_v2 = vld [vmem:[#allocation57_spill] sm:$0xff]  ;;  %v6586_v32 = vpack.c.bf16 %v12930_v11, %v12974_v50 }
 0x2b9   :  { %6565 = vmatprep.subr.bf16.mxu1 %v12953_v19  ;;  %v12970_v19 = vld [vmem:[#allocation58_spill] sm:$0xff] }
 0x2bc   :  { %6567 = vmatpush1.bf16.msra.mxu1 %v12958_v56  ;;  %v12971_v56 = vld [vmem:[#allocation110_spill] sm:$0xff] }
 0x2bd   :  { %6569 = vmatprep.subr.bf16.mxu1 %v6568_v24  ;;  %v6580_v24 = vpack.c.bf16 %v12970_v19, %v12969_v2  ;;  %v6582_v52 = vpack.c.bf16 %v12971_v56, %v8938_v28  ;;  %v12977_v28 = vld [vmem:[#allocation53_spill] sm:$0xff] }
 0x2c0   :  { %6571 = vmatpush1.bf16.msra.mxu1 %v12961_v48  ;;  %v12973_v48 = vld [vmem:[#allocation117_spill] sm:$0xff] }
 0x2c1   :  { %6573 = vmatprep.subr.bf16.mxu1 %v6572_v13  ;;  %v12972_v13 = vld [vmem:[#allocation108_spill] sm:$0xff] }
 0x2c2   :  { %v6584_v29 = vpack.c.bf16 %v12973_v48, %v12972_v13  ;;  %v12979_v13 = vld [vmem:[#allocation62_spill] sm:$0xff] }
 0x2c4   :  { %6575 = vmatpush1.bf16.msra.mxu1 %v12966_v44  ;;  %v6588_v44 = vpack.c.bf16 %v12934_v53, %v12933_v9 }
 0x2c5   :  { %6577 = vmatprep.subr.bf16.mxu1 %v6576_v7  ;;  %v6590_v7 = vpack.c.bf16 %v12936_v63, %v12935_v12 }
 0x2c8   :  { %6579 = vmatpush1.bf16.msra.mxu1 %v6578_v25  ;;  %v12975_v25 = vld [vmem:[#allocation48_spill] sm:$0xff] }
 0x2c9   :  { %6581 = vmatprep.subr.bf16.mxu1 %v6580_v24  ;;  %v6592_v56 = vpack.c.bf16 %v12975_v25, %v9197_v40  ;;  %v12976_v24 = vld [vmem:[#allocation52_spill] sm:$0xff] }
 0x2ca   :  { %v6594_v48 = vpack.c.bf16 %v12977_v28, %v12976_v24 }
 0x2cc   :  { %6583 = vmatpush1.bf16.msra.mxu1 %v6582_v52  ;;  %v12978_v52 = vld [vmem:[#allocation59_spill] sm:$0xff] }
 0x2cd   :  { %6585 = vmatprep.subr.bf16.mxu1 %v6584_v29  ;;  %v6596_v11 = vpack.c.bf16 %v12979_v13, %v12978_v52  ;;  %v6598_v29 = vpack.c.bf16 %v9235_v33, %v9230_v37 }
 0x2d0   :  { %6587 = vmatpush1.bf16.msra.mxu1 %v6586_v32  ;;  %v6600_v32 = vpack.c.bf16 %v12940_v55, %v9240_v6 }
 0x2d1   :  { %6589 = vmatprep.subr.bf16.mxu1 %v6588_v44  ;;  %v6602_v44 = vpack.c.bf16 %v9256_v3, %v12941_v49 }
 0x2d4   :  { %6591 = vmatpush1.bf16.msra.mxu1 %v6590_v7  ;;  %v6604_v7 = vpack.c.bf16 %v9260_v22, %v9258_v60 }
 0x2d5   :  { %6593 = vmatprep.subr.bf16.mxu1 %v6592_v56  ;;  %v6606_v56 = vpack.c.bf16 %v9264_v26, %v9262_v21 }
 0x2d8   :  { %6595 = vmatpush1.bf16.msra.mxu1 %v6594_v48  ;;  %v6608_v48 = vpack.c.bf16 %v9268_v20, %v9266_v58 }
 0x2d9   :  { %6597 = vmatprep.subr.bf16.mxu1 %v6596_v11  ;;  %v6610_v11 = vpack.c.bf16 %v9272_v0, %v9270_v59 }
 0x2dc   :  { %6599 = vmatpush1.bf16.msra.mxu1 %v6598_v29  ;;  %v6612_v29 = vpack.c.bf16 %v9276_v51, %v9274_v1 }
 0x2dd   :  { %6601 = vmatprep.subr.bf16.mxu1 %v6600_v32  ;;  %v6614_v32 = vpack.c.bf16 %v9280_v34, %v9278_v31  ;;  %v12984_v34 = vld [vmem:[#allocation101_spill] sm:$0xff] }
 0x2e0   :  { %6603 = vmatpush1.bf16.msra.mxu1 %v6602_v44  ;;  %v12980_v44 = vld [vmem:[#allocation90_spill] sm:$0xff] }
 0x2e1   :  { %6605 = vmatprep.subr.bf16.mxu1 %v6604_v7  ;;  %v6616_v26 = vpack.c.bf16 %v12980_v44, %v9282_v43  ;;  %v6618_v7 = vpack.c.bf16 %v12944_v23, %v12943_v17  ;;  %v12986_v23 = vld [vmem:[#allocation105_spill] sm:$0xff] }
 0x2e2   :  { %v2810_v44 = vld [vmem:[#allocation2 + $0x468] sm:$0xff] }
 0x2e4   :  { %6607 = vmatpush1.bf16.msra.mxu1 %v6606_v56  ;;  %v12981_v56 = vld [vmem:[#allocation98_spill] sm:$0xff] }
 0x2e5   :  { %6609 = vmatprep.subr.bf16.mxu1 %v6608_v48  ;;  %v6620_v0 = vpack.c.bf16 %v12946_v45, %v12981_v56  ;;  %v6622_v48 = vpack.c.bf16 %v12948_v41, %v12947_v4  ;;  %v12988_v45 = vld [vmem:[#allocation28_spill] sm:$0xff]  ;;  %v12990_v41 = vld [vmem:[#allocation41_spill] sm:$0xff] }
 0x2e6   :  { %v2807_v56 = vld [vmem:[#allocation2 + $0x450] sm:$0xff] }
 0x2e8   :  { %6611 = vmatpush1.bf16.msra.mxu1 %v6610_v11  ;;  %v12982_v11 = vld [vmem:[#allocation93_spill] sm:$0xff] }
 0x2e9   :  { %6613 = vmatprep.subr.bf16.mxu1 %v6612_v29  ;;  %v12983_v29 = vld [vmem:[#allocation77_spill] sm:$0xff] }
 0x2ec   :  { %6615 = vmatpush1.bf16.msra.mxu1 %v6614_v32  ;;  %v12985_v32 = vand.u32 4294901760, %v9395_v42  ;;  %v12995_v42 = vld [vmem:[#allocation9_spill] sm:$0xff] }
 0x2ed   :  { %6617 = vmatprep.subr.bf16.mxu1 %v6616_v26  ;;  %v12987_v26 = vld [vmem:[#allocation24_spill] sm:$0xff] }
 0x2f0   :  { %6619 = vmatpush1.bf16.msra.mxu1 %v6618_v7  ;;  %v12989_v7 = vld [vmem:[#allocation49_spill] sm:$0xff] }
 0x2f1   :  { %6621 = vmatprep.subr.bf16.mxu1 %v6620_v0  ;;  %v12991_v0 = vld [vmem:[#allocation55_spill] sm:$0xff] }
 0x2f4   :  { %6623 = vmatpush1.bf16.msra.mxu1 %v6622_v48  ;;  %v12992_v48 = vld [vmem:[#allocation56_spill] sm:$0xff] }
 0x2f5   :  { %6625 = vmatprep.subr.bf16.mxu1 %v12982_v11  ;;  %v12993_v11 = vld [vmem:[#allocation112_spill] sm:$0xff] }
 0x2f7   :  { %2235 = vmatmul.mubr.f32.vlgmr.msra.gmra.mrb[2].mxu1 %v12983_v29 }
 0x2f8   :  { %6627 = vmatpush1.bf16.msra.mxu1 %v12984_v34  ;;  %2372 = vmatprep.mubr.f32.mxu1 %v12985_v32  ;;  %v12994_v34 = vld [vmem:[#allocation115_spill] sm:$0xff]  ;;  %v12996_v32 = vld [vmem:[#allocation10_spill] sm:$0xff] }
 0x2f9   :  { %6629 = vmatprep.subr.bf16.mxu1 %v12986_v23  ;;  %v12997_v23 = vld [vmem:[#allocation16_spill] sm:$0xff] }
 0x2fc   :  { %6631 = vmatpush1.bf16.msra.mxu1 %v12987_v26  ;;  %v12998_v26 = vld [vmem:[#allocation17_spill] sm:$0xff] }
 0x2fd   :  { %6633 = vmatprep.subr.bf16.mxu1 %v12988_v45  ;;  %v12999_v45 = vld [vmem:[#allocation18_spill] sm:$0xff] }
 0x300   :  { %6635 = vmatpush1.bf16.msra.mxu1 %v12989_v7  ;;  %v13000_v7 = vld [vmem:[#allocation21_spill] sm:$0xff] }
 0x301   :  { %6637 = vmatprep.subr.bf16.mxu1 %v12990_v41  ;;  %v13001_v41 = vld [vmem:[#allocation22_spill] sm:$0xff] }
 0x304   :  { %6639 = vmatpush1.bf16.msra.mxu1 %v12991_v0  ;;  %v13002_v0 = vld [vmem:[#allocation23_spill] sm:$0xff] }
 0x305   :  { %6641 = vmatprep.subr.bf16.mxu1 %v12992_v48  ;;  %v13003_v48 = vld [vmem:[#allocation31_spill] sm:$0xff] }
 0x308   :  { %6643 = vmatpush1.bf16.msra.mxu1 %v12993_v11  ;;  %v13004_v11 = vld [vmem:[#allocation32_spill] sm:$0xff] }
 0x309   :  { %6645 = vmatprep.subr.bf16.mxu1 %v12994_v34  ;;  %v13005_v34 = vld [vmem:[#allocation34_spill] sm:$0xff] }
 0x30c   :  { %6647 = vmatpush1.bf16.msra.mxu1 %v12995_v42  ;;  %v13006_v42 = vld [vmem:[#allocation35_spill] sm:$0xff] }
 0x30d   :  { %6649 = vmatprep.subr.bf16.mxu1 %v12996_v32  ;;  %v13007_v32 = vld [vmem:[#allocation36_spill] sm:$0xff] }
 0x310   :  { %6651 = vmatpush1.bf16.msra.mxu1 %v12997_v23  ;;  %v13008_v23 = vld [vmem:[#allocation37_spill] sm:$0xff] }
 0x311   :  { %6653 = vmatprep.subr.bf16.mxu1 %v12998_v26  ;;  %v13009_v26 = vld [vmem:[#allocation38_spill] sm:$0xff] }
 0x314   :  { %6655 = vmatpush1.bf16.msra.mxu1 %v12999_v45  ;;  %v13010_v45 = vld [vmem:[#allocation39_spill] sm:$0xff] }
 0x315   :  { %6657 = vmatprep.subr.bf16.mxu1 %v13000_v7  ;;  %v13011_v7 = vld [vmem:[#allocation116_spill] sm:$0xff] }
 0x318   :  { %6659 = vmatpush1.bf16.msra.mxu1 %v13001_v41  ;;  %v13012_v41 = vld [vmem:[#allocation46_spill] sm:$0xff] }
 0x319   :  { %6661 = vmatprep.subr.bf16.mxu1 %v13002_v0  ;;  %v13013_v0 = vld [vmem:[#allocation50_spill] sm:$0xff] }
 0x31c   :  { %6663 = vmatpush1.bf16.msra.mxu1 %v13003_v48  ;;  %v13014_v48 = vld [vmem:[#allocation95_spill] sm:$0xff] }
 0x31d   :  { %6665 = vmatprep.subr.bf16.mxu1 %v13004_v11 }
 0x320   :  { %6667 = vmatpush1.bf16.msra.mxu1 %v13005_v34  ;;  %v13015_v34 = vand.u32 4294901760, %v12898_v35  ;;  %v13023_v35 = vand.u32 4294901760, %v12957_v15  ;;  %v2798_v15 = vld [vmem:[#allocation2 + $0x408] sm:$0xff] }
 0x321   :  { %6669 = vmatprep.subr.bf16.mxu1 %v13006_v42  ;;  %v13016_v42 = vand.u32 4294901760, %v12899_v61 }
 0x323   :  { %v6688_v11 = vpack.c.bf16 %v13016_v42, %v13015_v34  ;;  %v13024_v34 = vand.u32 4294901760, %v12956_v36  ;;  %v13025_v42 = vand.u32 4294901760, %v12954_v27  ;;  %v2797_v36 = vld [vmem:[#allocation2 + $0x400] sm:$0xff]  ;;  %v13032_v27 = vand.u32 4294901760, %v12965_v14 }
 0x324   :  { %6671 = vmatpush1.bf16.msra.mxu1 %v13007_v32  ;;  %v13017_v32 = vld [vmem:[#allocation102_spill] sm:$0xff] }
 0x325   :  { %6673 = vmatprep.subr.bf16.mxu1 %v13008_v23  ;;  %v13018_v23 = vand.u32 4294901760, %v12903_v62  ;;  %v6694_v61 = vpack.c.bf16 %v13024_v34, %v13023_v35  ;;  %v13026_v62 = vand.u32 4294901760, %v12955_v8  ;;  %v13033_v8 = vand.u32 4294901760, %v12964_v57  ;;  %v2799_v35 = vld [vmem:[#allocation2 + $0x410] sm:$0xff]  ;;  %v2802_v34 = vld [vmem:[#allocation2 + $0x428] sm:$0xff] }
 0x326   :  { %v2803_v57 = vld [vmem:[#allocation2 + $0x430] sm:$0xff] }
 0x328   :  { %6675 = vmatpush1.bf16.msra.mxu1 %v13009_v26  ;;  %v13019_v26 = vand.u32 4294901760, %v12907_v46  ;;  %v6696_v46 = vpack.c.bf16 %v13026_v62, %v13025_v42  ;;  %v13034_v42 = vand.u32 4294901760, %v12962_v10  ;;  %v13035_v62 = vld [vmem:[#allocation47_spill] sm:$0xff] }
 0x329   :  { %6677 = vmatprep.subr.bf16.mxu1 %v13010_v45  ;;  %v2805_v10 = vld [vmem:[#allocation2 + $0x440] sm:$0xff] }
 0x32a   :  { %v6690_v45 = vpack.c.bf16 %v13019_v26, %v13018_v23  ;;  %v13027_v23 = vand.u32 4294901760, %v12960_v5  ;;  %v2800_v26 = vld [vmem:[#allocation2 + $0x418] sm:$0xff]  ;;  %v9761_v5 = vpack.c.bf16 %v13033_v8, %v13032_v27  ;;  %v2806_v27 = vld [vmem:[#allocation2 + $0x448] sm:$0xff] }
 0x32c   :  { %6679 = vmatpush1.bf16.msra.mxu1 %v13011_v7  ;;  %v13020_v7 = vand.u32 4294901760, %v12908_v38  ;;  %v13028_v38 = vand.u32 4294901760, %v12959_v54  ;;  %v2874_v54 = vand.u32 4294901760, %v2798_v15 }
 0x32d   :  { %6681 = vmatprep.subr.bf16.mxu1 %v13012_v41  ;;  %v13021_v41 = vand.u32 4294901760, %v12909_v39  ;;  %v13029_v39 = vand.u32 4294901760, %v12921_v47  ;;  %v2876_v47 = vand.u32 4294901760, %v2797_v36 }
 0x32f   :  { %v9775_v4 = vsub.f32 %v2797_v36, %v2876_v47  ;;  %v2888_v36 = vand.u32 4294901760, %v2803_v57 }
 0x330   :  { %6683 = vmatpush1.bf16.msra.mxu1 %v13013_v0  ;;  %v6692_v0 = vpack.c.bf16 %v13021_v41, %v13020_v7  ;;  %v13030_v41 = vand.u32 4294901760, %v12922_v30  ;;  %v13031_v7 = vld [vmem:[#allocation76_spill] sm:$0xff]  ;;  %v2804_v30 = vld [vmem:[#allocation2 + $0x438] sm:$0xff] }
 0x331   :  { %6685 = vmatprep.subr.bf16.mxu1 %v13014_v48  ;;  %v13022_v48 = vand.u32 4294901760, %v12983_v29  ;;  %v2886_v14 = vand.u32 4294901760, %v2804_v30  ;;  %13040 = vst [vmem:[#allocation84_spill] sm:$0xff] %v9775_v4  ;;  %v2809_v4 = vld [vmem:[#allocation2 + $0x460] sm:$0xff] }
 0x332   :  { %v9754_v29 = vpack.c.bf16 %v13030_v41, %v13029_v39  ;;  %v2882_v39 = vand.u32 4294901760, %v2802_v34  ;;  %v2801_v41 = vld [vmem:[#allocation2 + $0x420] sm:$0xff] }
 0x334   :  { %6687 = vmatpush1.bf16.msra.mxu1 %v13017_v32  ;;  %v9771_v32 = vsub.f32 %v2798_v15, %v2874_v54  ;;  %v9783_v17 = vsub.f32 %v2802_v34, %v2882_v39  ;;  %v9786_v15 = vsub.f32 %v2804_v30, %v2886_v14  ;;  %v2811_v34 = vld [vmem:[#allocation2 + $0x470] sm:$0xff]  ;;  %v9794_v30 = vsub.f32 %v2803_v57, %v2888_v36 }
 0x335   :  { %6689 = vmatprep.subr.bf16.mxu1 %v6688_v11  ;;  %v6698_v11 = vpack.c.bf16 %v13028_v38, %v13027_v23  ;;  %v13036_v23 = vand.u32 4294901760, %v13035_v62  ;;  %v2880_v38 = vand.u32 4294901760, %v2799_v35 }
 0x336   :  { %13038 = vst [vmem:[#allocation80_spill] sm:$0xff] %v9771_v32  ;;  %13044 = vst [vmem:[#allocation91_spill] sm:$0xff] %v9783_v17 }
 0x337   :  { %2376 = vmatmul.mubr.f32.vlgmr.msra.gmra.mrb[2].mxu1 %v13022_v48  ;;  %v2878_v48 = vand.u32 4294901760, %v2800_v26  ;;  %v9777_v62 = vpack.c.bf16 %v2880_v38, %v2876_v47  ;;  %13045 = vst [vmem:[#allocation12_spill] sm:$0xff] %v9786_v15  ;;  %13048 = vst [vmem:[#allocation15_spill] sm:$0xff] %v9794_v30  ;;  %v9798_v15 = vld [vmem:[#allocation2 + $0x480] sm:$0xff] }
 0x338   :  { %6691 = vmatpush1.bf16.msra.mxu1 %v6690_v45  ;;  %2639 = vmatprep.mubr.f32.mxu1 %v13031_v7  ;;  %v9767_v45 = vpack.c.bf16 %v13036_v23, %v13034_v42  ;;  %v9779_v42 = vsub.f32 %v2799_v35, %v2880_v38  ;;  %v9781_v23 = vpack.c.bf16 %v2886_v14, %v2882_v39  ;;  %v2892_v35 = vand.u32 4294901760, %v2805_v10 }
 0x339   :  { %6693 = vmatprep.subr.bf16.mxu1 %v6692_v0  ;;  %v9769_v8 = vpack.c.bf16 %v2878_v48, %v2874_v54  ;;  %v9773_v7 = vsub.f32 %v2800_v26, %v2878_v48  ;;  %v2808_v0 = vld [vmem:[#allocation2 + $0x458] sm:$0xff]  ;;  %13041 = vst [vmem:[#allocation85_spill] sm:$0xff] %v9777_v62  ;;  %v2884_v26 = vand.u32 4294901760, %v2801_v41  ;;  %v2890_v54 = vand.u32 4294901760, %v2806_v27 }
 0x33a   :  { %13042 = vst [vmem:[#allocation87_spill] sm:$0xff] %v9779_v42  ;;  %13043 = vst [vmem:[#allocation89_spill] sm:$0xff] %v9781_v23  ;;  %v2812_v48 = vld [vmem:[#allocation2 + $0x478] sm:$0xff]  ;;  %v2894_v47 = vand.u32 4294901760, %v2808_v0  ;;  %v2896_v38 = vand.u32 4294901760, %v2807_v56  ;;  %v2898_v42 = vand.u32 4294901760, %v2810_v44  ;;  %v9806_v32 = vsub.f32 %v2805_v10, %v2892_v35 }
 0x33b   :  { %13037 = vst [vmem:[#allocation78_spill] sm:$0xff] %v9769_v8  ;;  %13039 = vst [vmem:[#allocation81_spill] sm:$0xff] %v9773_v7  ;;  %6817 = vmatprep.subr.bf16.mxu0 %v9769_v8  ;;  %v9792_v39 = vsub.f32 %v2801_v41, %v2884_v26  ;;  %v9796_v14 = vsub.f32 %v2806_v27, %v2890_v54  ;;  %v2814_v8 = vld [vmem:[#allocation2 + $0x488] sm:$0xff]  ;;  %v2902_v57 = vand.u32 4294901760, %v2812_v48  ;;  %v2900_v27 = vand.u32 4294901760, %v2809_v4 }
 0x33c   :  { %6695 = vmatpush1.bf16.msra.mxu1 %v6694_v61  ;;  %6819 = vmatpush1.bf16.msra.mxu0 %v9777_v62  ;;  %v9790_v61 = vpack.c.bf16 %v2888_v36, %v2884_v26  ;;  %v9800_v62 = vpack.c.bf16 %v2894_v47, %v2890_v54  ;;  %v9802_v17 = vsub.f32 %v2808_v0, %v2894_v47  ;;  %v2904_v36 = vand.u32 4294901760, %v2811_v34 }
 0x33d   :  { %6697 = vmatprep.subr.bf16.mxu1 %v6696_v46  ;;  %6821 = vmatprep.subr.bf16.mxu0 %v9781_v23  ;;  %13047 = vst [vmem:[#allocation14_spill] sm:$0xff] %v9792_v39  ;;  %13049 = vst [vmem:[#allocation61_spill] sm:$0xff] %v9796_v14  ;;  %v2816_v46 = vld [vmem:[#allocation2 + $0x498] sm:$0xff]  ;;  %v9804_v7 = vpack.c.bf16 %v2896_v38, %v2892_v35  ;;  %v2815_v23 = vld [vmem:[#allocation2 + $0x490] sm:$0xff]  ;;  %v9808_v41 = vsub.f32 %v2807_v56, %v2896_v38  ;;  %v2906_v54 = vand.u32 4294901760, %v2814_v8 }
 0x33e   :  { %13046 = vst [vmem:[#allocation13_spill] sm:$0xff] %v9790_v61  ;;  %13050 = vst [vmem:[#allocation63_spill] sm:$0xff] %v9800_v62  ;;  %v9810_v26 = vsub.f32 %v2810_v44, %v2898_v42  ;;  %v2910_v0 = vand.u32 4294901760, %v2816_v46  ;;  %v2908_v47 = vand.u32 4294901760, %v9798_v15  ;;  %v9816_v10 = vpack.c.bf16 %v2902_v57, %v2898_v42  ;;  %v2818_v35 = vld [vmem:[#allocation2 + $0x4a8] sm:$0xff]  ;;  %v2820_v38 = vld [vmem:[#allocation2 + $0x4b8] sm:$0xff] }
 0x33f   :  { %13051 = vst [vmem:[#allocation64_spill] sm:$0xff] %v9802_v17  ;;  %13052 = vst [vmem:[#allocation65_spill] sm:$0xff] %v9804_v7  ;;  %v9820_v56 = vsub.f32 %v2809_v4, %v2900_v27  ;;  %v2912_v44 = vand.u32 4294901760, %v2815_v23  ;;  %v13061_v17 = vand.u32 4294901760, %v12969_v2  ;;  %v13062_v14 = vand.u32 4294901760, %v12970_v19  ;;  %v2819_v4 = vld [vmem:[#allocation2 + $0x4b0] sm:$0xff] }
 0x340   :  { %13053 = vst [vmem:[#allocation66_spill] sm:$0xff] %v9806_v32  ;;  %6699 = vmatpush1.bf16.msra.mxu1 %v6698_v11  ;;  %13054 = vst [vmem:[#allocation67_spill] sm:$0xff] %v9808_v41  ;;  %6823 = vmatpush1.bf16.msra.mxu0 %v9790_v61  ;;  %v9818_v11 = vsub.f32 %v2812_v48, %v2902_v57  ;;  %v13060_v61 = vand.u32 4294901760, %v12968_v16  ;;  %v9832_v42 = vsub.f32 %v2814_v8, %v2906_v54  ;;  %v2817_v48 = vld [vmem:[#allocation2 + $0x4a0] sm:$0xff]  ;;  %v2822_v57 = vld [vmem:[#allocation2 + $0x4c8] sm:$0xff] }
 0x341   :  { %13055 = vst [vmem:[#allocation68_spill] sm:$0xff] %v9810_v26  ;;  %6701 = vmatprep.subr.bf16.mxu1 %v9754_v29  ;;  %6825 = vmatprep.subr.bf16.mxu0 %v9800_v62  ;;  %13056 = vst [vmem:[#allocation69_spill] sm:$0xff] %v9816_v10  ;;  %v13059_v29 = vand.u32 4294901760, %v12967_v18  ;;  %v6708_v41 = vpack.c.bf16 %v13062_v14, %v13061_v17  ;;  %v9830_v62 = vsub.f32 %v2811_v34, %v2904_v36  ;;  %v13067_v18 = vld [vmem:[#allocation110_spill] sm:$0xff]  ;;  %v2821_v8 = vld [vmem:[#allocation2 + $0x4c0] sm:$0xff] }
 0x342   :  { %13057 = vst [vmem:[#allocation70_spill] sm:$0xff] %v9818_v11  ;;  %13058 = vst [vmem:[#allocation71_spill] sm:$0xff] %v9820_v56  ;;  %v13065_v11 = vld [vmem:[#allocation60_spill] sm:$0xff]  ;;  %v13068_v32 = vand.u32 4294901760, %v13067_v18  ;;  %v9842_v2 = vsub.f32 %v9798_v15, %v2908_v47  ;;  %v9844_v17 = vsub.f32 %v2815_v23, %v2912_v44  ;;  %v2824_v19 = vld [vmem:[#allocation2 + $0x4d8] sm:$0xff]  ;;  %v9855_v23 = vpack.c.bf16 %v2910_v0, %v2906_v54 }
 0x343   :  { %v6706_v26 = vpack.c.bf16 %v13060_v61, %v13059_v29  ;;  %13063 = vst [vmem:[#allocation72_spill] sm:$0xff] %v9830_v62  ;;  %13064 = vst [vmem:[#allocation73_spill] sm:$0xff] %v9832_v42  ;;  %v13066_v56 = vand.u32 4294901760, %v13065_v11  ;;  %v9839_v61 = vsub.f32 %v2816_v46, %v2910_v0  ;;  %v13072_v34 = vld [vmem:[#allocation108_spill] sm:$0xff]  ;;  %v13074_v29 = vld [vmem:[#allocation117_spill] sm:$0xff]  ;;  %v9852_v11 = vpack.c.bf16 %v2904_v36, %v2900_v27 }
 0x344   :  { %6703 = vmatpush1.bf16.msra.mxu1 %v9761_v5  ;;  %13070 = vst [vmem:[#allocation96_spill] sm:$0xff] %v9842_v2  ;;  %13071 = vst [vmem:[#allocation97_spill] sm:$0xff] %v9844_v17  ;;  %v13073_v14 = vand.u32 4294901760, %v13072_v34  ;;  %v13075_v5 = vand.u32 4294901760, %v13074_v29  ;;  %6827 = vmatpush1.bf16.msra.mxu0 %v9804_v7  ;;  %v2918_v46 = vand.u32 4294901760, %v2820_v38  ;;  %v2916_v15 = vand.u32 4294901760, %v2817_v48 }
 0x345   :  { %v6710_v16 = vpack.c.bf16 %v13068_v32, %v13066_v56  ;;  %13069 = vst [vmem:[#allocation74_spill] sm:$0xff] %v9839_v61  ;;  %6705 = vmatprep.subr.bf16.mxu1 %v9767_v45  ;;  %13076 = vst [vmem:[#allocation100_spill] sm:$0xff] %v9852_v11  ;;  %v2914_v32 = vand.u32 4294901760, %v2818_v35  ;;  %v2823_v56 = vld [vmem:[#allocation2 + $0x4d0] sm:$0xff]  ;;  %6829 = vmatprep.subr.bf16.mxu0 %v9816_v10  ;;  %v2920_v18 = vand.u32 4294901760, %v2819_v4  ;;  %v2922_v17 = vand.u32 4294901760, %v2822_v57 }
 0x346   :  { %v6712_v42 = vpack.c.bf16 %v13075_v5, %v13073_v14  ;;  %13077 = vst [vmem:[#allocation103_spill] sm:$0xff] %v9855_v23  ;;  %v2826_v45 = vld [vmem:[#allocation2 + $0x4e8] sm:$0xff]  ;;  %v9859_v34 = vsub.f32 %v2820_v38, %v2918_v46  ;;  %v2926_v14 = vand.u32 4294901760, %v2824_v19  ;;  %v2924_v29 = vand.u32 4294901760, %v2821_v8  ;;  %v2828_v5 = vld [vmem:[#allocation2 + $0x4f8] sm:$0xff]  ;;  %v2825_v27 = vld [vmem:[#allocation2 + $0x4e0] sm:$0xff] }
 0x347   :  { %v9857_v2 = vsub.f32 %v2818_v35, %v2914_v32  ;;  %v9861_v36 = vsub.f32 %v2817_v48, %v2916_v15  ;;  %v9863_v7 = vsub.f32 %v2819_v4, %v2920_v18  ;;  %v9865_v10 = vsub.f32 %v2822_v57, %v2922_v17  ;;  %v2827_v0 = vld [vmem:[#allocation2 + $0x4f0] sm:$0xff] }
 0x348   :  { %13079 = vst [vmem:[#allocation109_spill] sm:$0xff] %v9859_v34  ;;  %6707 = vmatpush1.bf16.msra.mxu1 %v6706_v26  ;;  %v2928_v54 = vand.u32 4294901760, %v2823_v56  ;;  %6831 = vmatpush1.bf16.msra.mxu0 %v9852_v11  ;;  %v9868_v35 = vpack.c.bf16 %v2912_v44, %v2908_v47  ;;  %v9870_v38 = vsub.f32 %v2824_v19, %v2926_v14  ;;  %v2934_v4 = vand.u32 4294901760, %v2828_v5  ;;  %v13089_v44 = vld [vmem:[#allocation114_spill] sm:$0xff] }
 0x349   :  { %13078 = vst [vmem:[#allocation107_spill] sm:$0xff] %v9857_v2  ;;  %13080 = vst [vmem:[#allocation40_spill] sm:$0xff] %v9861_v36  ;;  %6709 = vmatprep.subr.bf16.mxu1 %v6708_v41  ;;  %v9872_v34 = vsub.f32 %v2821_v8, %v2924_v29  ;;  %v2930_v2 = vand.u32 4294901760, %v2826_v45  ;;  %6833 = vmatprep.subr.bf16.mxu0 %v9855_v23  ;;  %v9875_v26 = vpack.c.bf16 %v2918_v46, %v2914_v32 }
 0x34a   :  { %13081 = vst [vmem:[#allocation42_spill] sm:$0xff] %v9863_v7  ;;  %13082 = vst [vmem:[#allocation118_spill] sm:$0xff] %v9865_v10  ;;  %v9877_v48 = vsub.f32 %v2823_v56, %v2928_v54  ;;  %v2932_v57 = vand.u32 4294901760, %v2825_v27  ;;  %v2936_v41 = vand.u32 4294901760, %v2827_v0  ;;  %v13088_v47 = vand.u32 4294901760, %v12974_v50 }
 0x34b   :  { %13083 = vst [vmem:[#allocation8_spill] sm:$0xff] %v9868_v35  ;;  %13084 = vst [vmem:[#allocation19_spill] sm:$0xff] %v9870_v38  ;;  %v9879_v10 = vsub.f32 %v2826_v45, %v2930_v2  ;;  %v13090_v19 = vand.u32 4294901760, %v13089_v44  ;;  %v9885_v8 = vsub.f32 %v2828_v5, %v2934_v4  ;;  %v13092_v32 = vand.u32 4294901760, %v12933_v9 }
 0x34c   :  { %13085 = vst [vmem:[#allocation20_spill] sm:$0xff] %v9872_v34  ;;  %13086 = vst [vmem:[#allocation79_spill] sm:$0xff] %v9875_v26  ;;  %6711 = vmatpush1.bf16.msra.mxu1 %v6710_v16  ;;  %v9887_v34 = vsub.f32 %v2825_v27, %v2932_v57  ;;  %v13093_v46 = vand.u32 4294901760, %v12934_v53  ;;  %6835 = vmatpush1.bf16.msra.mxu0 %v9868_v35  ;;  %v9894_v45 = vpack.c.bf16 %v2920_v18, %v2916_v15 }
 0x34d   :  { %13087 = vst [vmem:[#allocation82_spill] sm:$0xff] %v9877_v48  ;;  %v6714_v11 = vpack.c.bf16 %v13090_v19, %v13088_v47  ;;  %6713 = vmatprep.subr.bf16.mxu1 %v6712_v42  ;;  %v9896_v16 = vsub.f32 %v2827_v0, %v2936_v41  ;;  %6837 = vmatprep.subr.bf16.mxu0 %v9875_v26  ;;  %v13097_v5 = vand.u32 4294901760, %v12935_v12  ;;  %v13098_v42 = vand.u32 4294901760, %v12936_v63 }
 0x34e   :  { %13091 = vst [vmem:[#allocation27_spill] sm:$0xff] %v9887_v34  ;;  %v6716_v56 = vpack.c.bf16 %v13093_v46, %v13092_v32  ;;  %13094 = vst [vmem:[#allocation29_spill] sm:$0xff] %v9894_v45  ;;  %v9899_v50 = vpack.c.bf16 %v2926_v14, %v2922_v17  ;;  %v13099_v9 = vand.u32 4294901760, %v9197_v40  ;;  %v13100_v53 = vand.u32 4294901760, %v12975_v25  ;;  %v13122_v46 = vld [vmem:[#allocation86_spill] sm:$0xff] }
 0x34f   :  { %13095 = vst [vmem:[#allocation26_spill] sm:$0xff] %v9896_v16  ;;  %v6718_v27 = vpack.c.bf16 %v13098_v42, %v13097_v5  ;;  %v9910_v15 = vpack.c.bf16 %v2928_v54, %v2924_v29  ;;  %v9913_v17 = vpack.c.bf16 %v2934_v4, %v2930_v2  ;;  %v13103_v12 = vand.u32 4294901760, %v12976_v24 }
 0x350   :  { %13096 = vst [vmem:[#allocation25_spill] sm:$0xff] %v9899_v50  ;;  %6715 = vmatpush1.bf16.msra.mxu1 %v6714_v11  ;;  %v6720_v47 = vpack.c.bf16 %v13100_v53, %v13099_v9  ;;  %6839 = vmatpush1.bf16.msra.mxu0 %v9894_v45  ;;  %v13104_v63 = vand.u32 4294901760, %v12977_v28  ;;  %v13105_v40 = vand.u32 4294901760, %v12978_v52  ;;  %v13106_v25 = vand.u32 4294901760, %v12979_v13  ;;  %v13130_v53 = vld [vmem:[#allocation90_spill] sm:$0xff] }
 0x351   :  { %6717 = vmatprep.subr.bf16.mxu1 %v6716_v56  ;;  %13101 = vst [vmem:[#allocation33_spill] sm:$0xff] %v9910_v15  ;;  %6841 = vmatprep.subr.bf16.mxu0 %v9899_v50  ;;  %13102 = vst [vmem:[#allocation30_spill] sm:$0xff] %v9913_v17  ;;  %v9924_v14 = vpack.c.bf16 %v2936_v41, %v2932_v57  ;;  %v13108_v2 = vand.u32 4294901760, %v9230_v37  ;;  %v13109_v24 = vand.u32 4294901760, %v9235_v33  ;;  %v13110_v28 = vand.u32 4294901760, %v9240_v6  ;;  %v13117_v41 = vld [vmem:[#allocation83_spill] sm:$0xff] }
 0x352   :  { %v6722_v11 = vpack.c.bf16 %v13104_v63, %v13103_v12  ;;  %v6724_v18 = vpack.c.bf16 %v13106_v25, %v13105_v40  ;;  %v13111_v52 = vand.u32 4294901760, %v12940_v55  ;;  %v13112_v13 = vand.u32 4294901760, %v12941_v49  ;;  %v13132_v12 = vld [vmem:[#allocation92_spill] sm:$0xff] }
 0x353   :  { %13107 = vst [vmem:[#allocation45_spill] sm:$0xff] %v9924_v14  ;;  %v6726_v29 = vpack.c.bf16 %v13109_v24, %v13108_v2  ;;  %v13113_v0 = vand.u32 4294901760, %v9256_v3  ;;  %v13114_v37 = vand.u32 4294901760, %v9258_v60  ;;  %v13115_v33 = vand.u32 4294901760, %v9260_v22  ;;  %v13140_v24 = vld [vmem:[#allocation104_spill] sm:$0xff] }
 0x354   :  { %6719 = vmatpush1.bf16.msra.mxu1 %v6718_v27  ;;  %6843 = vmatpush1.bf16.msra.mxu0 %v9910_v15  ;;  %v6728_v54 = vpack.c.bf16 %v13111_v52, %v13110_v28  ;;  %v13116_v6 = vand.u32 4294901760, %v9262_v21  ;;  %v13118_v55 = vand.u32 4294901760, %v13117_v41  ;;  %v13119_v19 = vand.u32 4294901760, %v9266_v58  ;;  %v13127_v27 = vld [vmem:[#allocation88_spill] sm:$0xff]  ;;  %v13142_v28 = vld [vmem:[#allocation106_spill] sm:$0xff]  ;;  %v13152_v41 = vld [vmem:[#allocation41_spill] sm:$0xff] }
 0x355   :  { %6721 = vmatprep.subr.bf16.mxu1 %v6720_v47  ;;  %6845 = vmatprep.subr.bf16.mxu0 %v9913_v17  ;;  %v6730_v4 = vpack.c.bf16 %v13113_v0, %v13112_v13  ;;  %v6732_v57 = vpack.c.bf16 %v13115_v33, %v13114_v37  ;;  %v13120_v49 = vand.u32 4294901760, %v9268_v20  ;;  %v13121_v3 = vand.u32 4294901760, %v9270_v59  ;;  %v13145_v13 = vld [vmem:[#allocation75_spill] sm:$0xff]  ;;  %v13146_v0 = vld [vmem:[#allocation101_spill] sm:$0xff]  ;;  %v13149_v33 = vld [vmem:[#allocation24_spill] sm:$0xff] }
 0x356   :  { %v6734_v44 = vpack.c.bf16 %v13118_v55, %v13116_v6  ;;  %v13123_v60 = vand.u32 4294901760, %v13122_v46  ;;  %v13124_v22 = vand.u32 4294901760, %v9274_v1  ;;  %v13125_v21 = vand.u32 4294901760, %v9276_v51  ;;  %v13136_v51 = vld [vmem:[#allocation98_spill] sm:$0xff]  ;;  %v13148_v37 = vld [vmem:[#allocation105_spill] sm:$0xff]  ;;  %v13153_v55 = vld [vmem:[#allocation55_spill] sm:$0xff] }
 0x357   :  { %v6736_v32 = vpack.c.bf16 %v13120_v49, %v13119_v19  ;;  %v13126_v42 = vand.u32 4294901760, %v9278_v31  ;;  %v13128_v58 = vand.u32 4294901760, %v13127_v27  ;;  %v13129_v20 = vand.u32 4294901760, %v9282_v43  ;;  %v13151_v6 = vld [vmem:[#allocation49_spill] sm:$0xff]  ;;  %v13155_v19 = vld [vmem:[#allocation112_spill] sm:$0xff]  ;;  %v13156_v49 = vld [vmem:[#allocation115_spill] sm:$0xff] }
 0x358   :  { %6723 = vmatpush1.bf16.msra.mxu1 %v6722_v11  ;;  %6847 = vmatpush1.bf16.msra.mxu0 %v9924_v14  ;;  %v6738_v56 = vpack.c.bf16 %v13123_v60, %v13121_v3  ;;  %v6740_v5 = vpack.c.bf16 %v13125_v21, %v13124_v22  ;;  %v13131_v59 = vand.u32 4294901760, %v13130_v53  ;;  %v13133_v63 = vand.u32 4294901760, %v13132_v12  ;;  %v13134_v11 = vld [vmem:[#allocation94_spill] sm:$0xff]  ;;  %v13159_v46 = vld [vmem:[#allocation16_spill] sm:$0xff]  ;;  %v13160_v60 = vld [vmem:[#allocation17_spill] sm:$0xff] }
 0x359   :  { %6725 = vmatprep.subr.bf16.mxu1 %v6724_v18  ;;  %v6742_v9 = vpack.c.bf16 %v13128_v58, %v13126_v42  ;;  %v13135_v1 = vand.u32 4294901760, %v13134_v11  ;;  %v13137_v25 = vand.u32 4294901760, %v13136_v51  ;;  %v13138_v18 = vld [vmem:[#allocation99_spill] sm:$0xff]  ;;  %v13143_v43 = vand.u32 4294901760, %v13142_v28  ;;  %v13158_v3 = vld [vmem:[#allocation10_spill] sm:$0xff]  ;;  %v13162_v22 = vld [vmem:[#allocation21_spill] sm:$0xff] }
 0x35a   :  { %v6744_v47 = vpack.c.bf16 %v13131_v59, %v13129_v20  ;;  %v13139_v31 = vand.u32 4294901760, %v13138_v18  ;;  %v13163_v21 = vld [vmem:[#allocation22_spill] sm:$0xff]  ;;  %v13165_v42 = vld [vmem:[#allocation31_spill] sm:$0xff]  ;;  %v13166_v27 = vld [vmem:[#allocation32_spill] sm:$0xff] }
 0x35b   :  { %v6746_v40 = vpack.c.bf16 %v13135_v1, %v13133_v63  ;;  %v13167_v58 = vld [vmem:[#allocation34_spill] sm:$0xff]  ;;  %v13169_v20 = vld [vmem:[#allocation36_spill] sm:$0xff]  ;;  %v13170_v53 = vld [vmem:[#allocation37_spill] sm:$0xff] }
 0x35c   :  { %6727 = vmatpush1.bf16.msra.mxu1 %v6726_v29  ;;  %v6748_v2 = vpack.c.bf16 %v13139_v31, %v13137_v25  ;;  %v13141_v29 = vand.u32 4294901760, %v13140_v24  ;;  %v13171_v59 = vld [vmem:[#allocation38_spill] sm:$0xff]  ;;  %v13173_v12 = vld [vmem:[#allocation116_spill] sm:$0xff]  ;;  %v13176_v1 = vld [vmem:[#allocation95_spill] sm:$0xff] }
 0x35d   :  { %6729 = vmatprep.subr.bf16.mxu1 %v6728_v54  ;;  %v13144_v54 = vld [vmem:[#allocation93_spill] sm:$0xff]  ;;  %v13174_v63 = vld [vmem:[#allocation46_spill] sm:$0xff]  ;;  %v2853_v14 = vld [vmem:[#allocation2 + $0x5c0] sm:$0xff] }
 0x35e   :  { %v6750_v52 = vpack.c.bf16 %v13143_v43, %v13141_v29  ;;  %v13175_v11 = vld [vmem:[#allocation50_spill] sm:$0xff]  ;;  %v10015_v51 = vld [vmem:[#allocation2 + $0x508] sm:$0xff]  ;;  %v2988_v17 = vand.u32 4294901760, %v2853_v14 }
 0x35f   :  { %v10017_v25 = vld [vmem:[#allocation2 + $0x518] sm:$0xff]  ;;  %v12114_v18 = vand.u32 4294901760, %v10015_v51  ;;  %v10023_v24 = vld [vmem:[#allocation2 + $0x510] sm:$0xff] }
 0x360   :  { %6731 = vmatpush1.bf16.msra.mxu1 %v6730_v4  ;;  %v13147_v4 = vld [vmem:[#allocation76_spill] sm:$0xff]  ;;  %v12113_v31 = vand.u32 4294901760, %v10017_v25  ;;  %v12111_v28 = vand.u32 4294901760, %v10023_v24  ;;  %v13192_v26 = vand.u32 4294901760, %v10017_v25  ;;  %v13197_v16 = vand.u32 4294901760, %v10023_v24 }
 0x361   :  { %6733 = vmatprep.subr.bf16.mxu1 %v6732_v57  ;;  %v13150_v57 = vld [vmem:[#allocation28_spill] sm:$0xff] }
 0x362   :  { %v10031_v43 = vpack.c.bf16 %v12113_v31, %v12114_v18  ;;  %v2849_v31 = vld [vmem:[#allocation2 + $0x5a0] sm:$0xff]  ;;  %v2851_v18 = vld [vmem:[#allocation2 + $0x5b0] sm:$0xff]  ;;  %v10121_v35 = vsub.f32 %v10017_v25, %v13192_v26  ;;  %v10133_v34 = vsub.f32 %v10023_v24, %v13197_v16 }
 0x364   :  { %6735 = vmatpush1.bf16.msra.mxu1 %v6734_v44  ;;  %v13154_v44 = vld [vmem:[#allocation56_spill] sm:$0xff]  ;;  %13178 = vst [vmem:[#allocation44_spill] sm:$0xff] %v10031_v43  ;;  %6849 = vmatprep.subr.bf16.mxu0 %v10031_v43  ;;  %13193 = vst [vmem:[#allocation47_spill] sm:$0xff] %v10121_v35 }
 0x365   :  { %6737 = vmatprep.subr.bf16.mxu1 %v6736_v32  ;;  %v13157_v32 = vld [vmem:[#allocation9_spill] sm:$0xff]  ;;  %13198 = vst [vmem:[#allocation108_spill] sm:$0xff] %v10133_v34 }
 0x368   :  { %6739 = vmatpush1.bf16.msra.mxu1 %v6738_v56  ;;  %v13161_v56 = vld [vmem:[#allocation18_spill] sm:$0xff] }
 0x369   :  { %6741 = vmatprep.subr.bf16.mxu1 %v6740_v5  ;;  %v13164_v5 = vld [vmem:[#allocation23_spill] sm:$0xff] }
 0x36c   :  { %6743 = vmatpush1.bf16.msra.mxu1 %v6742_v9  ;;  %v13168_v9 = vld [vmem:[#allocation35_spill] sm:$0xff] }
 0x36d   :  { %6745 = vmatprep.subr.bf16.mxu1 %v6744_v47  ;;  %v13172_v47 = vld [vmem:[#allocation39_spill] sm:$0xff] }
 0x370   :  { %6747 = vmatpush1.bf16.msra.mxu1 %v6746_v40  ;;  %v13177_v40 = vld [vmem:[#allocation102_spill] sm:$0xff] }
 0x371   :  { %6749 = vmatprep.subr.bf16.mxu1 %v6748_v2  ;;  %v10021_v2 = vld [vmem:[#allocation2 + $0x500] sm:$0xff] }
 0x372   :  { %v12112_v29 = vand.u32 4294901760, %v10021_v2  ;;  %v13195_v23 = vand.u32 4294901760, %v10021_v2 }
 0x374   :  { %6751 = vmatpush1.bf16.msra.mxu1 %v6750_v52  ;;  %v10037_v52 = vpack.c.bf16 %v12111_v28, %v12112_v29 }
 0x375   :  { %6753 = vmatprep.subr.bf16.mxu1 %v13144_v54  ;;  %v10039_v54 = vld [vmem:[#allocation2 + $0x528] sm:$0xff] }
 0x376   :  { %13179 = vst [vmem:[#allocation43_spill] sm:$0xff] %v10037_v52  ;;  %6851 = vmatpush1.bf16.msra.mxu0 %v10037_v52 }
 0x377   :  { %2641 = vmatmul.mubr.f32.vlgmr.msra.gmra.mrb[2].mxu1 %v13145_v13 }
 0x378   :  { %6755 = vmatpush1.bf16.msra.mxu1 %v13146_v0  ;;  %2776 = vmatprep.mubr.f32.mxu1 %v13147_v4  ;;  %v12110_v0 = vand.u32 4294901760, %v10039_v54 }
 0x379   :  { %6757 = vmatprep.subr.bf16.mxu1 %v13148_v37  ;;  %v10046_v37 = vld [vmem:[#allocation2 + $0x520] sm:$0xff] }
 0x37c   :  { %6759 = vmatpush1.bf16.msra.mxu1 %v13149_v33  ;;  %v10048_v33 = vld [vmem:[#allocation2 + $0x530] sm:$0xff] }
 0x37d   :  { %6761 = vmatprep.subr.bf16.mxu1 %v13150_v57  ;;  %v12108_v57 = vand.u32 4294901760, %v10046_v37  ;;  %v13204_v16 = vand.u32 4294901760, %v10048_v33 }
 0x37f   :  { %v10154_v24 = vsub.f32 %v10048_v33, %v13204_v16 }
 0x380   :  { %6763 = vmatpush1.bf16.msra.mxu1 %v13151_v6  ;;  %v12107_v6 = vand.u32 4294901760, %v10048_v33 }
 0x381   :  { %6765 = vmatprep.subr.bf16.mxu1 %v13152_v41 }
 0x384   :  { %6767 = vmatpush1.bf16.msra.mxu1 %v13153_v55  ;;  %v10063_v55 = vpack.c.bf16 %v12107_v6, %v12108_v57 }
 0x385   :  { %6769 = vmatprep.subr.bf16.mxu1 %v13154_v44  ;;  %v10065_v44 = vld [vmem:[#allocation2 + $0x548] sm:$0xff] }
 0x386   :  { %13181 = vst [vmem:[#allocation54_spill] sm:$0xff] %v10063_v55 }
 0x388   :  { %6771 = vmatpush1.bf16.msra.mxu1 %v13155_v19  ;;  %v10067_v19 = vld [vmem:[#allocation2 + $0x558] sm:$0xff] }
 0x389   :  { %6773 = vmatprep.subr.bf16.mxu1 %v13156_v49  ;;  %v12106_v49 = vand.u32 4294901760, %v10065_v44 }
 0x38c   :  { %6775 = vmatpush1.bf16.msra.mxu1 %v13157_v32  ;;  %v12105_v32 = vand.u32 4294901760, %v10067_v19 }
 0x38d   :  { %6777 = vmatprep.subr.bf16.mxu1 %v13158_v3  ;;  %v10072_v3 = vld [vmem:[#allocation2 + $0x540] sm:$0xff] }
 0x390   :  { %6779 = vmatpush1.bf16.msra.mxu1 %v13159_v46  ;;  %v10074_v46 = vld [vmem:[#allocation2 + $0x550] sm:$0xff] }
 0x391   :  { %6781 = vmatprep.subr.bf16.mxu1 %v13160_v60  ;;  %v12104_v60 = vand.u32 4294901760, %v10072_v3  ;;  %v13210_v33 = vand.u32 4294901760, %v10074_v46 }
 0x393   :  { %v10175_v16 = vsub.f32 %v10074_v46, %v13210_v33  ;;  %v13224_v33 = vld [vmem:[#allocation12_spill] sm:$0xff] }
 0x394   :  { %6783 = vmatpush1.bf16.msra.mxu1 %v13161_v56  ;;  %v12103_v56 = vand.u32 4294901760, %v10074_v46 }
 0x395   :  { %6785 = vmatprep.subr.bf16.mxu1 %v13162_v22  ;;  %v10083_v22 = vpack.c.bf16 %v12105_v32, %v12106_v49 }
 0x397   :  { %13182 = vst [vmem:[#allocation57_spill] sm:$0xff] %v10083_v22 }
 0x398   :  { %6787 = vmatpush1.bf16.msra.mxu1 %v13163_v21  ;;  %v10089_v21 = vpack.c.bf16 %v12103_v56, %v12104_v60  ;;  %v2845_v56 = vld [vmem:[#allocation2 + $0x580] sm:$0xff]  ;;  %v2847_v60 = vld [vmem:[#allocation2 + $0x590] sm:$0xff] }
 0x399   :  { %6789 = vmatprep.subr.bf16.mxu1 %v13164_v5  ;;  %v2842_v5 = vld [vmem:[#allocation2 + $0x568] sm:$0xff]  ;;  %v2972_v32 = vand.u32 4294901760, %v2845_v56  ;;  %v2976_v49 = vand.u32 4294901760, %v2847_v60 }
 0x39a   :  { %13183 = vst [vmem:[#allocation58_spill] sm:$0xff] %v10089_v21 }
 0x39b   :  { %v10101_v57 = vpack.c.bf16 %v2976_v49, %v2972_v32 }
 0x39c   :  { %6791 = vmatpush1.bf16.msra.mxu1 %v13165_v42  ;;  %v2844_v42 = vld [vmem:[#allocation2 + $0x578] sm:$0xff] }
 0x39d   :  { %6793 = vmatprep.subr.bf16.mxu1 %v13166_v27  ;;  %v2962_v27 = vand.u32 4294901760, %v2842_v5  ;;  %13187 = vst [vmem:[#allocation53_spill] sm:$0xff] %v10101_v57 }
 0x3a0   :  { %6795 = vmatpush1.bf16.msra.mxu1 %v13167_v58  ;;  %v2966_v58 = vand.u32 4294901760, %v2844_v42 }
 0x3a1   :  { %6797 = vmatprep.subr.bf16.mxu1 %v13168_v9  ;;  %v2841_v9 = vld [vmem:[#allocation2 + $0x560] sm:$0xff] }
 0x3a4   :  { %6799 = vmatpush1.bf16.msra.mxu1 %v13169_v20  ;;  %v2843_v20 = vld [vmem:[#allocation2 + $0x570] sm:$0xff] }
 0x3a5   :  { %6801 = vmatprep.subr.bf16.mxu1 %v13170_v53  ;;  %v2964_v53 = vand.u32 4294901760, %v2841_v9 }
 0x3a8   :  { %6803 = vmatpush1.bf16.msra.mxu1 %v13171_v59  ;;  %v2968_v59 = vand.u32 4294901760, %v2843_v20 }
 0x3a9   :  { %6805 = vmatprep.subr.bf16.mxu1 %v13172_v47  ;;  %v10093_v47 = vpack.c.bf16 %v2966_v58, %v2962_v27 }
 0x3ab   :  { %13184 = vst [vmem:[#allocation111_spill] sm:$0xff] %v10093_v47 }
 0x3ac   :  { %6807 = vmatpush1.bf16.msra.mxu1 %v13173_v12  ;;  %v10095_v12 = vpack.c.bf16 %v2968_v59, %v2964_v53 }
 0x3ad   :  { %6809 = vmatprep.subr.bf16.mxu1 %v13174_v63  ;;  %v2846_v63 = vld [vmem:[#allocation2 + $0x588] sm:$0xff] }
 0x3ae   :  { %13185 = vst [vmem:[#allocation48_spill] sm:$0xff] %v10095_v12 }
 0x3b0   :  { %6811 = vmatpush1.bf16.msra.mxu1 %v13175_v11  ;;  %v2848_v11 = vld [vmem:[#allocation2 + $0x598] sm:$0xff] }
 0x3b1   :  { %6813 = vmatprep.subr.bf16.mxu1 %v13176_v1  ;;  %v2970_v1 = vand.u32 4294901760, %v2846_v63 }
 0x3b4   :  { %6815 = vmatpush1.bf16.msra.mxu1 %v13177_v40  ;;  %v2974_v40 = vand.u32 4294901760, %v2848_v11 }
 0x3b6   :  { %v10099_v6 = vpack.c.bf16 %v2974_v40, %v2970_v1 }
 0x3b7   :  { %2778 = vmatmul.mubr.f32.vlgmr.msra.gmra.mrb[2].mxu1 %v13145_v13  ;;  %v10041_v13 = vld [vmem:[#allocation2 + $0x538] sm:$0xff] }
 0x3b8   :  { %v12109_v4 = vand.u32 4294901760, %v10041_v13  ;;  %13186 = vst [vmem:[#allocation52_spill] sm:$0xff] %v10099_v6  ;;  %v13201_v26 = vand.u32 4294901760, %v10041_v13 }
 0x3ba   :  { %v10057_v41 = vpack.c.bf16 %v12109_v4, %v12110_v0  ;;  %v2850_v4 = vld [vmem:[#allocation2 + $0x5a8] sm:$0xff]  ;;  %v2852_v0 = vld [vmem:[#allocation2 + $0x5b8] sm:$0xff]  ;;  %v10143_v25 = vsub.f32 %v10041_v13, %v13201_v26  ;;  %v13206_v13 = vand.u32 4294901760, %v10067_v19 }
 0x3bb   :  { %v2978_v28 = vand.u32 4294901760, %v2850_v4  ;;  %v2982_v29 = vand.u32 4294901760, %v2852_v0 }
 0x3bc   :  { %13180 = vst [vmem:[#allocation51_spill] sm:$0xff] %v10057_v41  ;;  %6853 = vmatprep.subr.bf16.mxu0 %v10057_v41  ;;  %v2856_v41 = vld [vmem:[#allocation2 + $0x5d8] sm:$0xff]  ;;  %13202 = vst [vmem:[#allocation114_spill] sm:$0xff] %v10143_v25  ;;  %v10164_v26 = vsub.f32 %v10067_v19, %v13206_v13  ;;  %v10183_v19 = vsub.f32 %v2843_v20, %v2968_v59  ;;  %v10185_v13 = vsub.f32 %v2846_v63, %v2970_v1 }
 0x3bd   :  { %6855 = vmatpush1.bf16.msra.mxu0 %v10063_v55  ;;  %v2854_v55 = vld [vmem:[#allocation2 + $0x5c8] sm:$0xff]  ;;  %v2990_v43 = vand.u32 4294901760, %v2856_v41  ;;  %v10193_v46 = vsub.f32 %v2850_v4, %v2978_v28  ;;  %v10205_v59 = vsub.f32 %v2853_v14, %v2988_v17  ;;  %v13223_v1 = vld [vmem:[#allocation91_spill] sm:$0xff] }
 0x3be   :  { %6857 = vmatprep.subr.bf16.mxu0 %v10083_v22  ;;  %v10105_v22 = vpack.c.bf16 %v2982_v29, %v2978_v28  ;;  %v2986_v52 = vand.u32 4294901760, %v2854_v55  ;;  %13207 = vst [vmem:[#allocation83_spill] sm:$0xff] %v10164_v26  ;;  %v2858_v26 = vld [vmem:[#allocation2 + $0x5e8] sm:$0xff] }
 0x3c0   :  { %13188 = vst [vmem:[#allocation59_spill] sm:$0xff] %v10105_v22  ;;  %v10111_v50 = vpack.c.bf16 %v2990_v43, %v2986_v52  ;;  %v10201_v20 = vsub.f32 %v2854_v55, %v2986_v52 }
 0x3c1   :  { %6859 = vmatpush1.bf16.msra.mxu0 %v10089_v21  ;;  %v2984_v21 = vand.u32 4294901760, %v2851_v18 }
 0x3c2   :  { %6861 = vmatprep.subr.bf16.mxu0 %v10093_v47  ;;  %v2980_v47 = vand.u32 4294901760, %v2849_v31  ;;  %13190 = vst [vmem:[#allocation77_spill] sm:$0xff] %v10111_v50 }
 0x3c5   :  { %6863 = vmatpush1.bf16.msra.mxu0 %v10095_v12  ;;  %v10107_v12 = vpack.c.bf16 %v2984_v21, %v2980_v47 }
 0x3c6   :  { %6865 = vmatprep.subr.bf16.mxu0 %v10099_v6  ;;  %v2855_v6 = vld [vmem:[#allocation2 + $0x5d0] sm:$0xff] }
 0x3c7   :  { %13189 = vst [vmem:[#allocation62_spill] sm:$0xff] %v10107_v12  ;;  %v2992_v15 = vand.u32 4294901760, %v2855_v6 }
 0x3c9   :  { %6867 = vmatpush1.bf16.msra.mxu0 %v10101_v57  ;;  %v13191_v57 = vand.u32 4294901760, %v10015_v51 }
 0x3ca   :  { %6869 = vmatprep.subr.bf16.mxu0 %v10105_v22  ;;  %v10123_v22 = vpack.c.bf16 %v2992_v15, %v2988_v17 }
 0x3cb   :  { %v10116_v45 = vsub.f32 %v10015_v51, %v13191_v57  ;;  %v13199_v51 = vand.u32 4294901760, %v10039_v54 }
 0x3cc   :  { %13194 = vst [vmem:[#allocation60_spill] sm:$0xff] %v10123_v22 }
 0x3cd   :  { %6871 = vmatpush1.bf16.msra.mxu0 %v10107_v12  ;;  %v10128_v12 = vsub.f32 %v10021_v2, %v13195_v23  ;;  %v10138_v57 = vsub.f32 %v10039_v54, %v13199_v51  ;;  %v13203_v23 = vand.u32 4294901760, %v10046_v37  ;;  %v13205_v54 = vand.u32 4294901760, %v10065_v44 }
 0x3ce   :  { %6873 = vmatprep.subr.bf16.mxu0 %v10111_v50  ;;  %v10177_v50 = vsub.f32 %v2842_v5, %v2962_v27  ;;  %v10195_v5 = vsub.f32 %v2852_v0, %v2982_v29  ;;  %v2859_v27 = vld [vmem:[#allocation2 + $0x5f0] sm:$0xff]  ;;  %v13213_v29 = vld [vmem:[#allocation80_spill] sm:$0xff] }
 0x3cf   :  { %13196 = vst [vmem:[#allocation110_spill] sm:$0xff] %v10128_v12  ;;  %13200 = vst [vmem:[#allocation117_spill] sm:$0xff] %v10138_v57  ;;  %v10149_v2 = vsub.f32 %v10046_v37, %v13203_v23  ;;  %v10159_v51 = vsub.f32 %v10065_v44, %v13205_v54  ;;  %v13208_v37 = vand.u32 4294901760, %v10072_v3  ;;  %v10179_v44 = vsub.f32 %v2844_v42, %v2966_v58  ;;  %v2857_v42 = vld [vmem:[#allocation2 + $0x5e0] sm:$0xff] }
 0x3d0   :  { %v10181_v54 = vsub.f32 %v2841_v9, %v2964_v53  ;;  %v10197_v58 = vsub.f32 %v2849_v31, %v2980_v47  ;;  %v10199_v9 = vsub.f32 %v2851_v18, %v2984_v21  ;;  %v10203_v53 = vsub.f32 %v2856_v41, %v2990_v43  ;;  %v13218_v43 = vld [vmem:[#allocation84_spill] sm:$0xff]  ;;  %v13222_v47 = vld [vmem:[#allocation87_spill] sm:$0xff] }
 0x3d1   :  { %6875 = vmatpush1.bf16.msra.mxu0 %v10123_v22  ;;  %v10170_v23 = vsub.f32 %v10072_v3, %v13208_v37  ;;  %v10187_v22 = vsub.f32 %v2848_v11, %v2974_v40  ;;  %v2860_v3 = vld [vmem:[#allocation2 + $0x5f8] sm:$0xff]  ;;  %v10189_v37 = vsub.f32 %v2845_v56, %v2972_v32  ;;  %v10207_v32 = vsub.f32 %v2855_v6, %v2992_v15  ;;  %v13214_v56 = vld [vmem:[#allocation81_spill] sm:$0xff] }
 0x3d2   :  { %13211 = vst [vmem:[#allocation88_spill] sm:$0xff] %v10199_v9  ;;  %v2996_v28 = vand.u32 4294901760, %v2857_v42  ;;  %v3000_v4 = vand.u32 4294901760, %v2859_v27  ;;  %v12165_v0 = vand.u32 4294901760, %v13213_v29  ;;  %v12164_v63 = vand.u32 4294901760, %v13214_v56 }
 0x3d3   :  { %13209 = vst [vmem:[#allocation86_spill] sm:$0xff] %v10170_v23  ;;  %v10191_v23 = vsub.f32 %v2847_v60, %v2976_v49  ;;  %13212 = vst [vmem:[#allocation90_spill] sm:$0xff] %v10207_v32  ;;  %v2994_v49 = vand.u32 4294901760, %v2858_v26  ;;  %v2998_v60 = vand.u32 4294901760, %v2860_v3  ;;  %v12163_v41 = vand.u32 4294901760, %v13218_v43 }
 0x3d4   :  { %v10218_v17 = vpack.c.bf16 %v3000_v4, %v2996_v28  ;;  %v10220_v15 = vsub.f32 %v2857_v42, %v2996_v28  ;;  %v10222_v14 = vsub.f32 %v2859_v27, %v3000_v4  ;;  %v3022_v6 = vsub.f32 %v13213_v29, %v12165_v0 }
 0x3d5   :  { %v10211_v31 = vpack.c.bf16 %v2998_v60, %v2994_v49  ;;  %v10213_v18 = vsub.f32 %v2858_v26, %v2994_v49  ;;  %v10215_v52 = vsub.f32 %v2860_v3, %v2998_v60  ;;  %v3034_v55 = vsub.f32 %v13214_v56, %v12164_v63 }
 0x3d6   :  { %13219 = vst [vmem:[#allocation99_spill] sm:$0xff] %v10218_v17  ;;  %13220 = vst [vmem:[#allocation104_spill] sm:$0xff] %v10220_v15  ;;  %v3028_v21 = vsub.f32 %v13218_v43, %v12163_v41  ;;  %v12166_v11 = vand.u32 4294901760, %v13222_v47  ;;  %v12171_v40 = vand.u32 4294901760, %v13223_v1  ;;  %v3023_v26 = vand.u32 4294901760, %v3022_v6 }
 0x3d7   :  { %13215 = vst [vmem:[#allocation92_spill] sm:$0xff] %v10211_v31  ;;  %13216 = vst [vmem:[#allocation94_spill] sm:$0xff] %v10213_v18  ;;  %6877 = vmatprep.subr.bf16.mxu0 %v10211_v31  ;;  %v12174_v3 = vand.u32 4294901760, %v13224_v33  ;;  %v12177_v42 = vand.u32 4294901760, %v9792_v39  ;;  %v12182_v27 = vand.u32 4294901760, %v9794_v30  ;;  %v3035_v49 = vand.u32 4294901760, %v3034_v55 }
 0x3d8   :  { %13217 = vst [vmem:[#allocation98_spill] sm:$0xff] %v10215_v52  ;;  %13221 = vst [vmem:[#allocation106_spill] sm:$0xff] %v10222_v14  ;;  %6879 = vmatpush1.bf16.msra.mxu0 %v10218_v17  ;;  %v3029_v60 = vand.u32 4294901760, %v3028_v21  ;;  %v3040_v28 = vsub.f32 %v13222_v47, %v12166_v11  ;;  %v3046_v4 = vsub.f32 %v13223_v1, %v12171_v40  ;;  %v13225_v14 = vld [vmem:[#allocation66_spill] sm:$0xff]  ;;  %v13238_v1 = vld [vmem:[#allocation73_spill] sm:$0xff] }
 0x3d9   :  { %v3058_v6 = vsub.f32 %v13224_v33, %v12174_v3  ;;  %v3052_v41 = vsub.f32 %v9792_v39, %v12177_v42  ;;  %v3064_v55 = vsub.f32 %v9794_v30, %v12182_v27  ;;  %v6880_v21 = vpack.c.bf16 %v3035_v49, %v3023_v26  ;;  %v13226_v3 = vld [vmem:[#allocation67_spill] sm:$0xff] }
 0x3da   :  { %v3041_v63 = vand.u32 4294901760, %v3040_v28  ;;  %v3047_v0 = vand.u32 4294901760, %v3046_v4  ;;  %v12181_v15 = vand.u32 4294901760, %v13225_v14  ;;  %v12180_v52 = vand.u32 4294901760, %v13226_v3  ;;  %v13227_v49 = vld [vmem:[#allocation71_spill] sm:$0xff] }
 0x3db   :  { %v3059_v11 = vand.u32 4294901760, %v3058_v6  ;;  %v3053_v17 = vand.u32 4294901760, %v3052_v41  ;;  %v3065_v31 = vand.u32 4294901760, %v3064_v55  ;;  %6881 = vmatprep.subr.bf16.mxu0 %v6880_v21  ;;  %v12178_v28 = vand.u32 4294901760, %v13227_v49 }
 0x3dc   :  { %v10255_v40 = vpack.c.bf16 %v3041_v63, %v3029_v60  ;;  %v3076_v26 = vsub.f32 %v13225_v14, %v12181_v15  ;;  %v3088_v41 = vsub.f32 %v13226_v3, %v12180_v52  ;;  %v12179_v63 = vand.u32 4294901760, %v9830_v62 }
 0x3dd   :  { %v10259_v18 = vpack.c.bf16 %v3059_v11, %v3047_v0  ;;  %v10261_v42 = vpack.c.bf16 %v3065_v31, %v3053_v17  ;;  %v3100_v0 = vsub.f32 %v13227_v49, %v12178_v28 }
 0x3de   :  { %v3077_v60 = vand.u32 4294901760, %v3076_v26  ;;  %v3089_v4 = vand.u32 4294901760, %v3088_v41  ;;  %v3112_v31 = vsub.f32 %v9830_v62, %v12179_v63 }
 0x3df   :  { %v3101_v11 = vand.u32 4294901760, %v3100_v0  ;;  %v5663_v0 = vld [vmem:[%s11567_s2 + $0x1] ss:$4 sm:$0x3] }
 0x3e0   :  { %v10277_v17 = vpack.c.bf16 %v3089_v4, %v3077_v60  ;;  %v3113_v6 = vand.u32 4294901760, %v3112_v31  ;;  %v13228_v31 = vld [vmem:[#allocation113_spill] sm:$0xff] }
 0x3e2   :  { %v10279_v55 = vpack.c.bf16 %v3113_v6, %v3101_v11  ;;  %v1493_v11 = vrot.slane %v5663_v0, %v13228_v31  ;;  %v13229_v6 = vld [vmem:[#allocation11_spill] sm:$0xff] }
 0x3e3   :  { %v1497_v63 = vrot.slane %v5663_v0, %v13229_v6 }
 0x48a   :  { %v2779_v52 = vpop.f32.mrb[2].mxu1 }
 0x48b   :  { %v7468_v15 = vadd.f32 %v2779_v52, %v1493_v11  ;;  %v2781_v27 = vpop.f32.mrb[3].mxu1  ;;  %v13232_v52 = vld [vmem:[#allocation61_spill] sm:$0xff] }
 0x48c   :  { %v7469_v41 = vadd.f32 %v2781_v27, %v1497_v63  ;;  %v12193_v27 = vand.u32 4294901760, %v13232_v52 }
 0x48d   :  { %v2786_v26 = vmin.f32 %v7468_v15, 0.0  ;;  %vm2784_vm2 = vcmp.gt.f32.partialorder %v7468_v15, 0.0 }
 0x48e   :  { %v2787_v28 = vmin.f32 %v7469_v41, 0.0  ;;  %vm2785_vm3 = vcmp.gt.f32.partialorder %v7469_v41, 0.0 }
 0x48f   :  { %v2788_v21 = vmul.f32 1.442695, %v2786_v26 }
 0x490   :  { %v2790_v39 = vmul.f32 1.442695, %v2787_v28  ;;  %v13234_v28 = vld [vmem:[#allocation64_spill] sm:$0xff] }
 0x491   :  { %7512 = vpow2.f32 %v2788_v21  ;;  %v12197_v21 = vand.u32 4294901760, %v13234_v28 }
 0x492   :  { %7514 = vpow2.f32 %v2790_v39 }
 0x49b   :  { %v7513_v60 = vpop.eup %7512 }
 0x49c   :  { %v7515_v4 = vpop.eup %7514  ;;  %v5664_v49 = vadd.f32 -1.0, %v7513_v60 }
 0x49d   :  { %v5665_v62 = vadd.f32 -1.0, %v7515_v4  ;;  %v13237_v4 = vld [vmem:[#allocation70_spill] sm:$0xff] }
 0x49e   :  { %v2794_v14 = vsel %vm2784_vm2, %v7468_v15, %v5664_v49  ;;  %v12205_v11 = vand.u32 4294901760, %v13237_v4 }
 0x49f   :  { %v10298_v31 = vand.u32 4294901760, %v2794_v14  ;;  %v2795_v0 = vsel %vm2785_vm3, %v7469_v41, %v5665_v62  ;;  %v3070_v62 = vsub.f32 %v13232_v52, %v12193_v27  ;;  %v13236_v41 = vld [vmem:[#allocation68_spill] sm:$0xff] }
 0x4a0   :  { %v10300_v6 = vand.u32 4294901760, %v2795_v0  ;;  %v12206_v60 = vand.u32 4294901760, %v13236_v41 }
 0x4a1   :  { %13230 = vst [vmem:[#allocation93_spill] sm:$0xff] %v10298_v31  ;;  %v10304_v63 = vsub.f32 %v2794_v14, %v10298_v31  ;;  %v3082_v14 = vsub.f32 %v13234_v28, %v12197_v21  ;;  %v3071_v30 = vand.u32 4294901760, %v3070_v62  ;;  %v13239_v28 = vld [vmem:[#allocation96_spill] sm:$0xff]  ;;  %v13241_v62 = vld [vmem:[#allocation107_spill] sm:$0xff] }
 0x4a2   :  { %13231 = vst [vmem:[#allocation75_spill] sm:$0xff] %v10300_v6  ;;  %v10308_v39 = vsub.f32 %v2795_v0, %v10300_v6  ;;  %v3094_v21 = vsub.f32 %v13236_v41, %v12206_v60  ;;  %v12210_v43 = vand.u32 4294901760, %v13239_v28 }
 0x4a3   :  { %13233 = vst [vmem:[#allocation101_spill] sm:$0xff] %v10304_v63  ;;  %v12196_v26 = vand.u32 4294901760, %v10304_v63 }
 0x4a4   :  { %13235 = vst [vmem:[#allocation76_spill] sm:$0xff] %v10308_v39  ;;  %v12202_v15 = vand.u32 4294901760, %v10308_v39  ;;  %v3124_v52 = vsub.f32 %v13239_v28, %v12210_v43  ;;  %v13248_v43 = vld [vmem:[#allocation118_spill] sm:$0xff] }
 0x4a5   :  { %v3011_v49 = vsub.f32 %v10304_v63, %v12196_v26  ;;  %v3083_v26 = vand.u32 4294901760, %v3082_v14  ;;  %v3106_v63 = vsub.f32 %v13237_v4, %v12205_v11  ;;  %v13244_v11 = vand.u32 4294901760, %v9839_v61 }
 0x4a6   :  { %v3005_v0 = vsub.f32 %v10308_v39, %v12202_v15  ;;  %v13240_v15 = vld [vmem:[#allocation97_spill] sm:$0xff]  ;;  %v3125_v28 = vand.u32 4294901760, %v3124_v52 }
 0x4a7   :  { %v3012_v33 = vand.u32 4294901760, %v3011_v49  ;;  %v13242_v39 = vld [vmem:[#allocation109_spill] sm:$0xff]  ;;  %v13243_v49 = vand.u32 4294901760, %v13238_v1  ;;  %v6888_v60 = vpack.c.bf16 %v3083_v26, %v3071_v30 }
 0x4a8   :  { %v3006_v3 = vand.u32 4294901760, %v3005_v0  ;;  %v3107_v0 = vand.u32 4294901760, %v3106_v63 }
 0x4a9   :  { %v3118_v14 = vsub.f32 %v13238_v1, %v13243_v49  ;;  %v13247_v1 = vand.u32 4294901760, %v13242_v39 }
 0x4aa   :  { %3007 = vmatprep.mubr.f32.mxu0 %v3006_v3  ;;  %v3130_v3 = vsub.f32 %v9839_v61, %v13244_v11 }
 0x4ab   :  { %3013 = vmatmul.mubr.f32.vlgmr.msra.gmra.mrb[2].mxu0 %v3012_v33  ;;  %v3095_v33 = vand.u32 4294901760, %v3094_v21  ;;  %v3154_v11 = vsub.f32 %v13242_v39, %v13247_v1  ;;  %v3119_v63 = vand.u32 4294901760, %v3118_v14  ;;  %v12223_v1 = vand.u32 4294901760, %v9877_v48 }
 0x4ac   :  { %6883 = vmatpush1.bf16.msra.mxu0 %v10255_v40  ;;  %3404 = vmatprep.mubr.f32.mxu0 %v10300_v6  ;;  %v13245_v40 = vand.u32 4294901760, %v13240_v15  ;;  %v13246_v6 = vand.u32 4294901760, %v13241_v62  ;;  %v3131_v21 = vand.u32 4294901760, %v3130_v3  ;;  %v13251_v14 = vand.u32 4294901760, %v9863_v7 }
 0x4ad   :  { %6885 = vmatprep.subr.bf16.mxu0 %v10259_v18  ;;  %v6892_v26 = vpack.c.bf16 %v3107_v0, %v3095_v33  ;;  %v3155_v30 = vand.u32 4294901760, %v3154_v11  ;;  %v13250_v18 = vand.u32 4294901760, %v9861_v36  ;;  %v12226_v33 = vand.u32 4294901760, %v10116_v45 }
 0x4ae   :  { %v3136_v27 = vsub.f32 %v13240_v15, %v13245_v40  ;;  %v3142_v49 = vsub.f32 %v13241_v62, %v13246_v6  ;;  %v12218_v40 = vand.u32 4294901760, %v13248_v43  ;;  %v12217_v15 = vand.u32 4294901760, %v9870_v38  ;;  %v13249_v62 = vld [vmem:[#allocation20_spill] sm:$0xff] }
 0x4af   :  { %v12219_v61 = vand.u32 4294901760, %v13249_v62  ;;  %v6896_v0 = vpack.c.bf16 %v3131_v21, %v3119_v63  ;;  %v12231_v3 = vand.u32 4294901760, %v10138_v57 }
 0x4b0   :  { %6887 = vmatpush1.bf16.msra.mxu0 %v10261_v42  ;;  %v3137_v6 = vand.u32 4294901760, %v3136_v27  ;;  %v3143_v39 = vand.u32 4294901760, %v3142_v49  ;;  %v3148_v42 = vsub.f32 %v9861_v36, %v13250_v18  ;;  %v3166_v52 = vsub.f32 %v13248_v43, %v12218_v40 }
 0x4b1   :  { %6889 = vmatprep.subr.bf16.mxu0 %v6888_v60  ;;  %v3160_v60 = vsub.f32 %v9863_v7, %v13251_v14  ;;  %v3178_v27 = vsub.f32 %v9870_v38, %v12217_v15  ;;  %v3172_v49 = vsub.f32 %v13249_v62, %v12219_v61  ;;  %v13253_v15 = vld [vmem:[#allocation26_spill] sm:$0xff]  ;;  %v13254_v38 = vand.u32 4294901760, %v9879_v10 }
 0x4b2   :  { %v6898_v11 = vpack.c.bf16 %v3137_v6, %v3125_v28  ;;  %v6900_v18 = vpack.c.bf16 %v3155_v30, %v3143_v39  ;;  %v3149_v63 = vand.u32 4294901760, %v3148_v42  ;;  %v12225_v40 = vand.u32 4294901760, %v13253_v15 }
 0x4b3   :  { %v3161_v21 = vand.u32 4294901760, %v3160_v60  ;;  %v3167_v61 = vand.u32 4294901760, %v3166_v52  ;;  %v3179_v62 = vand.u32 4294901760, %v3178_v27  ;;  %v3190_v28 = vsub.f32 %v9879_v10, %v13254_v38 }
 0x4b4   :  { %6891 = vmatpush1.bf16.msra.mxu0 %v10277_v17  ;;  %v3184_v17 = vsub.f32 %v9877_v48, %v12223_v1  ;;  %v13255_v39 = vand.u32 4294901760, %v9885_v8  ;;  %v12228_v42 = vand.u32 4294901760, %v10128_v12  ;;  %v12227_v60 = vand.u32 4294901760, %v10133_v34 }
 0x4b5   :  { %6893 = vmatprep.subr.bf16.mxu0 %v6892_v26  ;;  %v13252_v26 = vld [vmem:[#allocation27_spill] sm:$0xff]  ;;  %v6902_v1 = vpack.c.bf16 %v3161_v21, %v3149_v63  ;;  %v3208_v52 = vsub.f32 %v13253_v15, %v12225_v40  ;;  %v3214_v27 = vsub.f32 %v10116_v45, %v12226_v33  ;;  %v6904_v63 = vpack.c.bf16 %v3179_v62, %v3167_v61 }
 0x4b6   :  { %v12224_v14 = vand.u32 4294901760, %v13252_v26  ;;  %v3202_v30 = vsub.f32 %v9885_v8, %v13255_v39  ;;  %v3185_v6 = vand.u32 4294901760, %v3184_v17  ;;  %v3191_v21 = vand.u32 4294901760, %v3190_v28 }
 0x4b7   :  { %v3232_v40 = vsub.f32 %v10133_v34, %v12227_v60  ;;  %v3238_v33 = vsub.f32 %v10138_v57, %v12231_v3  ;;  %v12254_v62 = vand.u32 4294901760, %v10154_v24  ;;  %v12253_v60 = vand.u32 4294901760, %v10159_v51 }
 0x4b8   :  { %6895 = vmatpush1.bf16.msra.mxu0 %v10279_v55  ;;  %v3173_v55 = vand.u32 4294901760, %v3172_v49  ;;  %v3196_v38 = vsub.f32 %v13252_v26, %v12224_v14  ;;  %v13256_v49 = vand.u32 4294901760, %v10121_v35  ;;  %v3220_v14 = vsub.f32 %v10128_v12, %v12228_v42  ;;  %v13257_v42 = vld [vmem:[#allocation83_spill] sm:$0xff]  ;;  %v13258_v12 = vld [vmem:[#allocation86_spill] sm:$0xff] }
 0x4b9   :  { %6897 = vmatprep.subr.bf16.mxu0 %v6896_v0  ;;  %v12238_v0 = vand.u32 4294901760, %v10143_v25  ;;  %v12241_v34 = vand.u32 4294901760, %v13257_v42  ;;  %v3233_v57 = vand.u32 4294901760, %v3232_v40  ;;  %v3239_v61 = vand.u32 4294901760, %v3238_v33 }
 0x4ba   :  { %v3226_v17 = vsub.f32 %v10121_v35, %v13256_v49  ;;  %v6906_v39 = vpack.c.bf16 %v3185_v6, %v3173_v55  ;;  %v3197_v28 = vand.u32 4294901760, %v3196_v38  ;;  %v3215_v55 = vand.u32 4294901760, %v3214_v27 }
 0x4bb   :  { %v3221_v3 = vand.u32 4294901760, %v3220_v14  ;;  %v12242_v35 = vand.u32 4294901760, %v13258_v12  ;;  %v3262_v40 = vsub.f32 %v10159_v51, %v12253_v60  ;;  %v3274_v33 = vsub.f32 %v13257_v42, %v12241_v34 }
 0x4bc   :  { %6899 = vmatpush1.bf16.msra.mxu0 %v6898_v11  ;;  %v3203_v11 = vand.u32 4294901760, %v3202_v30  ;;  %v3209_v30 = vand.u32 4294901760, %v3208_v52  ;;  %v3227_v6 = vand.u32 4294901760, %v3226_v17  ;;  %v3256_v52 = vsub.f32 %v10154_v24, %v12254_v62 }
 0x4bd   :  { %6901 = vmatprep.subr.bf16.mxu0 %v6900_v18  ;;  %v3250_v18 = vsub.f32 %v10143_v25, %v12238_v0  ;;  %v12243_v0 = vand.u32 4294901760, %v10175_v16  ;;  %v12252_v14 = vand.u32 4294901760, %v10177_v50  ;;  %v3263_v34 = vand.u32 4294901760, %v3262_v40 }
 0x4be   :  { %v6908_v49 = vpack.c.bf16 %v3203_v11, %v3191_v21  ;;  %v6910_v27 = vpack.c.bf16 %v3209_v30, %v3197_v28  ;;  %v6912_v17 = vpack.c.bf16 %v3227_v6, %v3215_v55  ;;  %v3268_v21 = vsub.f32 %v13258_v12, %v12242_v35 }
 0x4bf   :  { %v3251_v25 = vand.u32 4294901760, %v3250_v18  ;;  %v3280_v11 = vsub.f32 %v10175_v16, %v12243_v0  ;;  %v3257_v30 = vand.u32 4294901760, %v3256_v52  ;;  %v12245_v55 = vand.u32 4294901760, %v10181_v54 }
 0x4c0   :  { %6903 = vmatpush1.bf16.msra.mxu0 %v6902_v1  ;;  %v13259_v1 = vand.u32 4294901760, %v10149_v2  ;;  %v12246_v6 = vand.u32 4294901760, %v10183_v19  ;;  %v3275_v35 = vand.u32 4294901760, %v3274_v33  ;;  %v3286_v0 = vsub.f32 %v10177_v50, %v12252_v14 }
 0x4c1   :  { %6905 = vmatprep.subr.bf16.mxu0 %v6904_v63  ;;  %v12244_v63 = vand.u32 4294901760, %v10179_v44  ;;  %v6916_v18 = vpack.c.bf16 %v3251_v25, %v3239_v61  ;;  %v3269_v25 = vand.u32 4294901760, %v3268_v21  ;;  %v12248_v61 = vand.u32 4294901760, %v10189_v37 }
 0x4c2   :  { %v3244_v38 = vsub.f32 %v10149_v2, %v13259_v1  ;;  %v12250_v1 = vand.u32 4294901760, %v10187_v22  ;;  %v3292_v40 = vsub.f32 %v10181_v54, %v12245_v55  ;;  %v3304_v33 = vsub.f32 %v10183_v19, %v12246_v6 }
 0x4c3   :  { %v3316_v55 = vsub.f32 %v10189_v37, %v12248_v61 }
 0x4c4   :  { %6907 = vmatpush1.bf16.msra.mxu0 %v6906_v39  ;;  %v6914_v39 = vpack.c.bf16 %v3233_v57, %v3221_v3  ;;  %v3245_v28 = vand.u32 4294901760, %v3244_v38  ;;  %v3298_v57 = vsub.f32 %v10179_v44, %v12244_v63  ;;  %v3281_v3 = vand.u32 4294901760, %v3280_v11 }
 0x4c5   :  { %6909 = vmatprep.subr.bf16.mxu0 %v6908_v49  ;;  %v12247_v49 = vand.u32 4294901760, %v10185_v13  ;;  %v12249_v38 = vand.u32 4294901760, %v10191_v23  ;;  %v3322_v11 = vsub.f32 %v10187_v22, %v12250_v1  ;;  %v12257_v1 = vand.u32 4294901760, %v10203_v53 }
 0x4c6   :  { %v6918_v52 = vpack.c.bf16 %v3257_v30, %v3245_v28  ;;  %v6920_v28 = vpack.c.bf16 %v3275_v35, %v3263_v34  ;;  %v3287_v30 = vand.u32 4294901760, %v3286_v0  ;;  %v6922_v63 = vpack.c.bf16 %v3281_v3, %v3269_v25 }
 0x4c7   :  { %v3310_v21 = vsub.f32 %v10185_v13, %v12247_v49  ;;  %v3328_v6 = vsub.f32 %v10191_v23, %v12249_v38  ;;  %v12259_v34 = vand.u32 4294901760, %v10197_v58  ;;  %v12258_v35 = vand.u32 4294901760, %v10199_v9 }
 0x4c8   :  { %6911 = vmatpush1.bf16.msra.mxu0 %v6910_v27  ;;  %v12251_v27 = vand.u32 4294901760, %v10193_v46  ;;  %v3293_v0 = vand.u32 4294901760, %v3292_v40  ;;  %v3323_v3 = vand.u32 4294901760, %v3322_v11  ;;  %v12256_v38 = vand.u32 4294901760, %v10201_v20 }
 0x4c9   :  { %6913 = vmatprep.subr.bf16.mxu0 %v6912_v17  ;;  %v12255_v17 = vand.u32 4294901760, %v10195_v5  ;;  %v3311_v25 = vand.u32 4294901760, %v3310_v21  ;;  %v3329_v14 = vand.u32 4294901760, %v3328_v6  ;;  %v12262_v21 = vand.u32 4294901760, %v10205_v59 }
 0x4ca   :  { %v3334_v49 = vsub.f32 %v10193_v46, %v12251_v27  ;;  %v3317_v27 = vand.u32 4294901760, %v3316_v55  ;;  %v12261_v11 = vand.u32 4294901760, %v10207_v32  ;;  %v3358_v55 = vsub.f32 %v10201_v20, %v12256_v38 }
 0x4cb   :  { %v3370_v6 = vsub.f32 %v10203_v53, %v12257_v1  ;;  %v13263_v1 = vld [vmem:[#allocation106_spill] sm:$0xff] }
 0x4cc   :  { %6915 = vmatpush1.bf16.msra.mxu0 %v6914_v39  ;;  %v3299_v39 = vand.u32 4294901760, %v3298_v57  ;;  %v3305_v57 = vand.u32 4294901760, %v3304_v33  ;;  %v3335_v60 = vand.u32 4294901760, %v3334_v49  ;;  %v6928_v33 = vpack.c.bf16 %v3323_v3, %v3311_v25  ;;  %v13260_v49 = vld [vmem:[#allocation94_spill] sm:$0xff]  ;;  %v13262_v3 = vld [vmem:[#allocation104_spill] sm:$0xff] }
 0x4cd   :  { %6917 = vmatprep.subr.bf16.mxu0 %v6916_v18  ;;  %v3346_v18 = vsub.f32 %v10195_v5, %v12255_v17  ;;  %v3340_v17 = vsub.f32 %v10197_v58, %v12259_v34  ;;  %v3376_v25 = vsub.f32 %v10207_v32, %v12261_v11  ;;  %v12264_v38 = vand.u32 4294901760, %v13262_v3 }
 0x4ce   :  { %v6924_v61 = vpack.c.bf16 %v3299_v39, %v3287_v30  ;;  %v6926_v40 = vpack.c.bf16 %v3305_v57, %v3293_v0  ;;  %v13261_v30 = vld [vmem:[#allocation98_spill] sm:$0xff]  ;;  %v3359_v34 = vand.u32 4294901760, %v3358_v55  ;;  %v3371_v39 = vand.u32 4294901760, %v3370_v6 }
 0x4cf   :  { %v3347_v62 = vand.u32 4294901760, %v3346_v18  ;;  %v3341_v0 = vand.u32 4294901760, %v3340_v17 }
 0x4d0   :  { %6919 = vmatpush1.bf16.msra.mxu0 %v6918_v52  ;;  %v3352_v52 = vsub.f32 %v10199_v9, %v12258_v35  ;;  %v12263_v35 = vand.u32 4294901760, %v13263_v1  ;;  %v6936_v55 = vpack.c.bf16 %v3371_v39, %v3359_v34  ;;  %v13266_v34 = vld [vmem:[#allocation84_spill] sm:$0xff] }
 0x4d1   :  { %6921 = vmatprep.subr.bf16.mxu0 %v6920_v28  ;;  %v12260_v28 = vand.u32 4294901760, %v13260_v49  ;;  %v6932_v18 = vpack.c.bf16 %v3347_v62, %v3335_v60  ;;  %v13264_v62 = vand.u32 4294901760, %v13261_v30  ;;  %v13267_v39 = vpack.c.bf16 %v13222_v47, %v13266_v34 }
 0x4d2   :  { %v3353_v57 = vand.u32 4294901760, %v3352_v52  ;;  %v3377_v52 = vand.u32 4294901760, %v3376_v25  ;;  %v13270_v25 = vld [vmem:[#allocation91_spill] sm:$0xff] }
 0x4d3   :  { %v3382_v60 = vsub.f32 %v13260_v49, %v12260_v28 }
 0x4d4   :  { %6923 = vmatpush1.bf16.msra.mxu0 %v6922_v63  ;;  %v6930_v63 = vpack.c.bf16 %v3329_v14, %v3317_v27  ;;  %v3394_v14 = vsub.f32 %v13261_v30, %v13264_v62  ;;  %v6934_v27 = vpack.c.bf16 %v3353_v57, %v3341_v0  ;;  %v13265_v57 = vpack.c.bf16 %v13214_v56, %v13213_v29 }
 0x4d5   :  { %6925 = vmatprep.subr.bf16.mxu0 %v6924_v61  ;;  %v3364_v61 = vsub.f32 %v10205_v59, %v12262_v21  ;;  %v3383_v6 = vand.u32 4294901760, %v3382_v60 }
 0x4d6   :  { %v3395_v28 = vand.u32 4294901760, %v3394_v14  ;;  %v13274_v14 = vld [vmem:[#allocation15_spill] sm:$0xff] }
 0x4d7   :  { %v3365_v17 = vand.u32 4294901760, %v3364_v61  ;;  %v13269_v61 = vld [vmem:[#allocation12_spill] sm:$0xff] }
 0x4d8   :  { %6927 = vmatpush1.bf16.msra.mxu0 %v6926_v40  ;;  %v3388_v40 = vsub.f32 %v13262_v3, %v12264_v38  ;;  %v13271_v60 = vpack.c.bf16 %v13269_v61, %v13270_v25 }
 0x4d9   :  { %6929 = vmatprep.subr.bf16.mxu0 %v6928_v33  ;;  %v3400_v33 = vsub.f32 %v13263_v1, %v12263_v35  ;;  %v6938_v11 = vpack.c.bf16 %v3377_v52, %v3365_v17  ;;  %v6956_v52 = vpack.c.bf16 %v13237_v4, %v13236_v41  ;;  %v13286_v35 = vld [vmem:[#allocation97_spill] sm:$0xff]  ;;  %v6966_v4 = vpack.c.bf16 %v9863_v7, %v9861_v36  ;;  %v13293_v36 = vld [vmem:[#allocation108_spill] sm:$0xff] }
 0x4da   :  { %v3389_v21 = vand.u32 4294901760, %v3388_v40  ;;  %v13277_v40 = vld [vmem:[#allocation67_spill] sm:$0xff] }
 0x4db   :  { %v3401_v62 = vand.u32 4294901760, %v3400_v33  ;;  %v13278_v33 = vld [vmem:[#allocation66_spill] sm:$0xff] }
 0x4dc   :  { %6931 = vmatpush1.bf16.msra.mxu0 %v6930_v63  ;;  %v6940_v63 = vpack.c.bf16 %v3395_v28, %v3383_v6  ;;  %v13280_v6 = vld [vmem:[#allocation73_spill] sm:$0xff] }
 0x4dd   :  { %6933 = vmatprep.subr.bf16.mxu0 %v6932_v18  ;;  %v6942_v0 = vpack.c.bf16 %v3401_v62, %v3389_v21  ;;  %v13268_v18 = vld [vmem:[#allocation76_spill] sm:$0xff]  ;;  %v13281_v62 = vld [vmem:[#allocation74_spill] sm:$0xff] }
 0x4de   :  { %v13273_v21 = vld [vmem:[#allocation64_spill] sm:$0xff] }
 0x4e0   :  { %6935 = vmatpush1.bf16.msra.mxu0 %v6934_v27  ;;  %v13275_v27 = vld [vmem:[#allocation14_spill] sm:$0xff] }
 0x4e1   :  { %6937 = vmatprep.subr.bf16.mxu0 %v6936_v55  ;;  %v13276_v17 = vpack.c.bf16 %v13274_v14, %v13275_v27  ;;  %v13279_v55 = vpack.c.bf16 %v13277_v40, %v13278_v33 }
 0x4e4   :  { %6939 = vmatpush1.bf16.msra.mxu0 %v6938_v11  ;;  %v13272_v11 = vld [vmem:[#allocation61_spill] sm:$0xff] }
 0x4e5   :  { %6941 = vmatprep.subr.bf16.mxu0 %v6940_v63  ;;  %v6952_v28 = vpack.c.bf16 %v13273_v21, %v13272_v11  ;;  %v6960_v63 = vpack.c.bf16 %v13281_v62, %v13280_v6  ;;  %v13290_v62 = vld [vmem:[#allocation20_spill] sm:$0xff] }
 0x4e6   :  { %v6970_v6 = vpack.c.bf16 %v9877_v48, %v13290_v62 }
 0x4e8   :  { %6943 = vmatpush1.bf16.msra.mxu0 %v6942_v0  ;;  %v13282_v0 = vld [vmem:[#allocation72_spill] sm:$0xff] }
 0x4e9   :  { %6945 = vmatprep.subr.bf16.mxu0 %v13265_v57  ;;  %v13283_v57 = vld [vmem:[#allocation71_spill] sm:$0xff] }
 0x4eb   :  { %3406 = vmatmul.mubr.f32.vlgmr.msra.gmra.mrb[2].mxu0 %v10298_v31 }
 0x4ec   :  { %6947 = vmatpush1.bf16.msra.mxu0 %v13267_v39  ;;  %3606 = vmatprep.mubr.f32.mxu0 %v13268_v18  ;;  %v13284_v39 = vpack.c.bf16 %v13282_v0, %v13283_v57 }
 0x4ed   :  { %6949 = vmatprep.subr.bf16.mxu0 %v13271_v60  ;;  %v13285_v60 = vld [vmem:[#allocation96_spill] sm:$0xff] }
 0x4ee   :  { %v6962_v38 = vpack.c.bf16 %v13286_v35, %v13285_v60 }
 0x4f0   :  { %6951 = vmatpush1.bf16.msra.mxu0 %v13276_v17  ;;  %v13288_v17 = vld [vmem:[#allocation109_spill] sm:$0xff] }
 0x4f1   :  { %6953 = vmatprep.subr.bf16.mxu0 %v6952_v28  ;;  %v13287_v28 = vld [vmem:[#allocation107_spill] sm:$0xff] }
 0x4f2   :  { %v6964_v31 = vpack.c.bf16 %v13288_v17, %v13287_v28 }
 0x4f4   :  { %6955 = vmatpush1.bf16.msra.mxu0 %v13279_v55 }
 0x4f5   :  { %6957 = vmatprep.subr.bf16.mxu0 %v6956_v52  ;;  %v13289_v52 = vld [vmem:[#allocation19_spill] sm:$0xff] }
 0x4f6   :  { %v6968_v55 = vpack.c.bf16 %v13289_v52, %v13248_v43  ;;  %v13295_v43 = vld [vmem:[#allocation114_spill] sm:$0xff] }
 0x4f8   :  { %6959 = vmatpush1.bf16.msra.mxu0 %v13284_v39  ;;  %v6972_v39 = vpack.c.bf16 %v9885_v8, %v9879_v10 }
 0x4f9   :  { %6961 = vmatprep.subr.bf16.mxu0 %v6960_v63  ;;  %v6974_v63 = vpack.c.bf16 %v13253_v15, %v13252_v26 }
 0x4fc   :  { %6963 = vmatpush1.bf16.msra.mxu0 %v6962_v38  ;;  %v13291_v38 = vld [vmem:[#allocation47_spill] sm:$0xff] }
 0x4fd   :  { %6965 = vmatprep.subr.bf16.mxu0 %v6964_v31  ;;  %v6976_v7 = vpack.c.bf16 %v13291_v38, %v10116_v45  ;;  %v13292_v31 = vld [vmem:[#allocation110_spill] sm:$0xff] }
 0x4fe   :  { %v6978_v52 = vpack.c.bf16 %v13293_v36, %v13292_v31 }
 0x500   :  { %6967 = vmatpush1.bf16.msra.mxu0 %v6966_v4  ;;  %v13294_v4 = vld [vmem:[#allocation117_spill] sm:$0xff] }
 0x501   :  { %6969 = vmatprep.subr.bf16.mxu0 %v6968_v55  ;;  %v6980_v48 = vpack.c.bf16 %v13295_v43, %v13294_v4  ;;  %v6982_v55 = vpack.c.bf16 %v10154_v24, %v10149_v2 }
 0x504   :  { %6971 = vmatpush1.bf16.msra.mxu0 %v6970_v6  ;;  %v6984_v6 = vpack.c.bf16 %v13257_v42, %v10159_v51 }
 0x505   :  { %6973 = vmatprep.subr.bf16.mxu0 %v6972_v39  ;;  %v6986_v39 = vpack.c.bf16 %v10175_v16, %v13258_v12 }
 0x508   :  { %6975 = vmatpush1.bf16.msra.mxu0 %v6974_v63  ;;  %v6988_v63 = vpack.c.bf16 %v10179_v44, %v10177_v50 }
 0x509   :  { %6977 = vmatprep.subr.bf16.mxu0 %v6976_v7  ;;  %v6990_v7 = vpack.c.bf16 %v10183_v19, %v10181_v54 }
 0x50c   :  { %6979 = vmatpush1.bf16.msra.mxu0 %v6978_v52  ;;  %v6992_v52 = vpack.c.bf16 %v10187_v22, %v10185_v13 }
 0x50d   :  { %6981 = vmatprep.subr.bf16.mxu0 %v6980_v48  ;;  %v6994_v48 = vpack.c.bf16 %v10191_v23, %v10189_v37 }
 0x510   :  { %6983 = vmatpush1.bf16.msra.mxu0 %v6982_v55  ;;  %v6996_v55 = vpack.c.bf16 %v10195_v5, %v10193_v46 }
 0x511   :  { %6985 = vmatprep.subr.bf16.mxu0 %v6984_v6  ;;  %v6998_v6 = vpack.c.bf16 %v10199_v9, %v10197_v58  ;;  %v13298_v9 = vld [vmem:[#allocation85_spill] sm:$0xff] }
 0x514   :  { %6987 = vmatpush1.bf16.msra.mxu0 %v6986_v39  ;;  %v7000_v39 = vpack.c.bf16 %v10203_v53, %v10201_v20 }
 0x515   :  { %6989 = vmatprep.subr.bf16.mxu0 %v6988_v63  ;;  %v7002_v63 = vpack.c.bf16 %v10207_v32, %v10205_v59  ;;  %v13300_v32 = vld [vmem:[#allocation89_spill] sm:$0xff] }
 0x518   :  { %6991 = vmatpush1.bf16.msra.mxu0 %v6990_v7  ;;  %v7004_v7 = vpack.c.bf16 %v13261_v30, %v13260_v49  ;;  %v13302_v30 = vld [vmem:[#allocation63_spill] sm:$0xff] }
 0x519   :  { %6993 = vmatprep.subr.bf16.mxu0 %v6992_v52  ;;  %v7006_v52 = vpack.c.bf16 %v13263_v1, %v13262_v3  ;;  %v13304_v1 = vld [vmem:[#allocation69_spill] sm:$0xff] }
 0x51c   :  { %6995 = vmatpush1.bf16.msra.mxu0 %v6994_v48  ;;  %v13296_v48 = vld [vmem:[#allocation78_spill] sm:$0xff] }
 0x51d   :  { %6997 = vmatprep.subr.bf16.mxu0 %v6996_v55  ;;  %v13297_v55 = vld [vmem:[#allocation101_spill] sm:$0xff] }
 0x520   :  { %6999 = vmatpush1.bf16.msra.mxu0 %v6998_v6  ;;  %v13299_v6 = vand.u32 4294901760, %v13268_v18  ;;  %v13309_v18 = vld [vmem:[#allocation29_spill] sm:$0xff] }
 0x521   :  { %7001 = vmatprep.subr.bf16.mxu0 %v7000_v39  ;;  %v13301_v39 = vld [vmem:[#allocation13_spill] sm:$0xff] }
 0x524   :  { %7003 = vmatpush1.bf16.msra.mxu0 %v7002_v63  ;;  %v13303_v63 = vld [vmem:[#allocation65_spill] sm:$0xff] }
 0x525   :  { %7005 = vmatprep.subr.bf16.mxu0 %v7004_v7  ;;  %v13305_v7 = vld [vmem:[#allocation100_spill] sm:$0xff] }
 0x528   :  { %7007 = vmatpush1.bf16.msra.mxu0 %v7006_v52  ;;  %v13306_v52 = vld [vmem:[#allocation103_spill] sm:$0xff] }
 0x529   :  { %7009 = vmatprep.subr.bf16.mxu0 %v13296_v48  ;;  %v13307_v48 = vld [vmem:[#allocation8_spill] sm:$0xff] }
 0x52b   :  { %3609 = vmatmul.mubr.f32.vlgmr.msra.gmra.mrb[2].mxu0 %v13297_v55 }
 0x52c   :  { %7011 = vmatpush1.bf16.msra.mxu0 %v13298_v9  ;;  %3746 = vmatprep.mubr.f32.mxu0 %v13299_v6  ;;  %v13308_v9 = vld [vmem:[#allocation79_spill] sm:$0xff]  ;;  %v13310_v6 = vld [vmem:[#allocation25_spill] sm:$0xff] }
 0x52d   :  { %7013 = vmatprep.subr.bf16.mxu0 %v13300_v32  ;;  %v13311_v32 = vld [vmem:[#allocation33_spill] sm:$0xff] }
 0x530   :  { %7015 = vmatpush1.bf16.msra.mxu0 %v13301_v39  ;;  %v13312_v39 = vld [vmem:[#allocation30_spill] sm:$0xff] }
 0x531   :  { %7017 = vmatprep.subr.bf16.mxu0 %v13302_v30  ;;  %v13313_v30 = vld [vmem:[#allocation45_spill] sm:$0xff] }
 0x534   :  { %7019 = vmatpush1.bf16.msra.mxu0 %v13303_v63  ;;  %v13314_v63 = vld [vmem:[#allocation44_spill] sm:$0xff] }
 0x535   :  { %7021 = vmatprep.subr.bf16.mxu0 %v13304_v1  ;;  %v13315_v1 = vld [vmem:[#allocation43_spill] sm:$0xff] }
 0x538   :  { %7023 = vmatpush1.bf16.msra.mxu0 %v13305_v7  ;;  %v13316_v7 = vld [vmem:[#allocation51_spill] sm:$0xff] }
 0x539   :  { %7025 = vmatprep.subr.bf16.mxu0 %v13306_v52  ;;  %v13317_v52 = vld [vmem:[#allocation54_spill] sm:$0xff] }
 0x53c   :  { %7027 = vmatpush1.bf16.msra.mxu0 %v13307_v48  ;;  %v13318_v48 = vld [vmem:[#allocation57_spill] sm:$0xff] }
 0x53d   :  { %7029 = vmatprep.subr.bf16.mxu0 %v13308_v9  ;;  %v13319_v9 = vld [vmem:[#allocation58_spill] sm:$0xff] }
 0x540   :  { %7031 = vmatpush1.bf16.msra.mxu0 %v13309_v18  ;;  %v13320_v18 = vld [vmem:[#allocation111_spill] sm:$0xff] }
 0x541   :  { %7033 = vmatprep.subr.bf16.mxu0 %v13310_v6  ;;  %v13321_v6 = vld [vmem:[#allocation48_spill] sm:$0xff] }
 0x544   :  { %7035 = vmatpush1.bf16.msra.mxu0 %v13311_v32  ;;  %v13322_v32 = vld [vmem:[#allocation52_spill] sm:$0xff] }
 0x545   :  { %7037 = vmatprep.subr.bf16.mxu0 %v13312_v39  ;;  %v13323_v39 = vld [vmem:[#allocation53_spill] sm:$0xff] }
 0x548   :  { %7039 = vmatpush1.bf16.msra.mxu0 %v13313_v30  ;;  %v13324_v30 = vld [vmem:[#allocation59_spill] sm:$0xff] }
 0x549   :  { %7041 = vmatprep.subr.bf16.mxu0 %v13314_v63  ;;  %v13325_v63 = vld [vmem:[#allocation62_spill] sm:$0xff] }
 0x54c   :  { %7043 = vmatpush1.bf16.msra.mxu0 %v13315_v1  ;;  %v13326_v1 = vld [vmem:[#allocation77_spill] sm:$0xff] }
 0x54d   :  { %7045 = vmatprep.subr.bf16.mxu0 %v13316_v7  ;;  %v13327_v7 = vld [vmem:[#allocation60_spill] sm:$0xff] }
 0x550   :  { %7047 = vmatpush1.bf16.msra.mxu0 %v13317_v52  ;;  %v13328_v52 = vld [vmem:[#allocation92_spill] sm:$0xff] }
 0x551   :  { %7049 = vmatprep.subr.bf16.mxu0 %v13318_v48 }
 0x554   :  { %7051 = vmatpush1.bf16.msra.mxu0 %v13319_v9  ;;  %v13329_v9 = vand.u32 4294901760, %v13213_v29  ;;  %v13337_v29 = vld [vmem:[#allocation75_spill] sm:$0xff] }
 0x555   :  { %7053 = vmatprep.subr.bf16.mxu0 %v13320_v18  ;;  %v13330_v18 = vand.u32 4294901760, %v13214_v56  ;;  %v13339_v56 = vand.u32 4294901760, %v13274_v14  ;;  %v13347_v14 = vand.u32 4294901760, %v13283_v57  ;;  %v13356_v57 = vand.u32 4294901760, %v13288_v17 }
 0x556   :  { %v13368_v17 = vand.u32 4294901760, %v9879_v10  ;;  %v13375_v10 = vand.u32 4294901760, %v13293_v36  ;;  %v13382_v36 = vand.u32 4294901760, %v13258_v12  ;;  %v13389_v12 = vand.u32 4294901760, %v10187_v22 }
 0x557   :  { %v7072_v48 = vpack.c.bf16 %v13330_v18, %v13329_v9  ;;  %v13338_v9 = vand.u32 4294901760, %v13275_v27  ;;  %v13397_v22 = vand.u32 4294901760, %v10201_v20 }
 0x558   :  { %7055 = vmatpush1.bf16.msra.mxu0 %v13321_v6  ;;  %v13331_v6 = vld [vmem:[#allocation99_spill] sm:$0xff] }
 0x559   :  { %7057 = vmatprep.subr.bf16.mxu0 %v13322_v32  ;;  %v13332_v32 = vand.u32 4294901760, %v13266_v34  ;;  %v7078_v34 = vpack.c.bf16 %v13339_v56, %v13338_v9  ;;  %v13355_v56 = vand.u32 4294901760, %v13287_v28 }
 0x55c   :  { %7059 = vmatpush1.bf16.msra.mxu0 %v13323_v39  ;;  %v13333_v39 = vand.u32 4294901760, %v13222_v47  ;;  %v13341_v47 = vand.u32 4294901760, %v13273_v21  ;;  %v13349_v21 = vld [vmem:[#allocation73_spill] sm:$0xff] }
 0x55d   :  { %7061 = vmatprep.subr.bf16.mxu0 %v13324_v30 }
 0x55e   :  { %v7074_v30 = vpack.c.bf16 %v13333_v39, %v13332_v32  ;;  %v13340_v32 = vand.u32 4294901760, %v13272_v11  ;;  %v13348_v11 = vand.u32 4294901760, %v13282_v0  ;;  %v13357_v0 = vld [vmem:[#allocation40_spill] sm:$0xff] }
 0x560   :  { %7063 = vmatpush1.bf16.msra.mxu0 %v13325_v63  ;;  %v13334_v63 = vand.u32 4294901760, %v13270_v25  ;;  %v7080_v25 = vpack.c.bf16 %v13341_v47, %v13340_v32  ;;  %v13358_v32 = vand.u32 4294901760, %v13357_v0  ;;  %v13359_v47 = vld [vmem:[#allocation42_spill] sm:$0xff] }
 0x561   :  { %7065 = vmatprep.subr.bf16.mxu0 %v13326_v1  ;;  %v13335_v1 = vand.u32 4294901760, %v13269_v61  ;;  %v13343_v61 = vand.u32 4294901760, %v13277_v40  ;;  %v13353_v40 = vand.u32 4294901760, %v13285_v60 }
 0x564   :  { %7067 = vmatpush1.bf16.msra.mxu0 %v13327_v7  ;;  %v7076_v7 = vpack.c.bf16 %v13335_v1, %v13334_v63  ;;  %v13342_v1 = vand.u32 4294901760, %v13278_v33  ;;  %v7086_v63 = vpack.c.bf16 %v13348_v11, %v13347_v14  ;;  %v13369_v14 = vand.u32 4294901760, %v9885_v8 }
 0x565   :  { %7069 = vmatprep.subr.bf16.mxu0 %v13328_v52  ;;  %v13336_v52 = vand.u32 4294901760, %v13297_v55  ;;  %v13345_v55 = vld [vmem:[#allocation70_spill] sm:$0xff]  ;;  %v13376_v8 = vand.u32 4294901760, %v13294_v4  ;;  %v13383_v4 = vand.u32 4294901760, %v10175_v16  ;;  %v13390_v16 = vand.u32 4294901760, %v10189_v37 }
 0x566   :  { %v13346_v27 = vand.u32 4294901760, %v13345_v55  ;;  %v7100_v11 = vpack.c.bf16 %v13369_v14, %v13368_v17  ;;  %v13398_v37 = vand.u32 4294901760, %v10203_v53  ;;  %v13408_v53 = vld [vmem:[#allocation78_spill] sm:$0xff]  ;;  %v13410_v17 = vld [vmem:[#allocation85_spill] sm:$0xff] }
 0x567   :  { %v13412_v14 = vld [vmem:[#allocation13_spill] sm:$0xff] }
 0x568   :  { %7071 = vmatpush1.bf16.msra.mxu0 %v13331_v6 }
 0x569   :  { %7073 = vmatprep.subr.bf16.mxu0 %v7072_v48  ;;  %v7082_v48 = vpack.c.bf16 %v13343_v61, %v13342_v1  ;;  %v13361_v61 = vld [vmem:[#allocation118_spill] sm:$0xff] }
 0x56b   :  { %3750 = vmatmul.mubr.f32.vlgmr.msra.gmra.mrb[2].mxu0 %v13336_v52  ;;  %v13351_v52 = vld [vmem:[#allocation74_spill] sm:$0xff] }
 0x56c   :  { %7075 = vmatpush1.bf16.msra.mxu0 %v7074_v30  ;;  %4013 = vmatprep.mubr.f32.mxu0 %v13337_v29  ;;  %v13344_v30 = vand.u32 4294901760, %v13236_v41  ;;  %v13352_v33 = vand.u32 4294901760, %v13351_v52  ;;  %v13354_v41 = vand.u32 4294901760, %v13286_v35  ;;  %v13365_v35 = vand.u32 4294901760, %v13290_v62 }
 0x56d   :  { %7077 = vmatprep.subr.bf16.mxu0 %v7076_v7  ;;  %v13350_v7 = vand.u32 4294901760, %v13349_v21  ;;  %v13371_v21 = vand.u32 4294901760, %v13253_v15  ;;  %v13372_v52 = vand.u32 4294901760, %v10116_v45  ;;  %v13373_v62 = vand.u32 4294901760, %v13291_v38 }
 0x56e   :  { %v7084_v39 = vpack.c.bf16 %v13346_v27, %v13344_v30  ;;  %v7090_v9 = vpack.c.bf16 %v13354_v41, %v13353_v40  ;;  %v13363_v30 = vld [vmem:[#allocation19_spill] sm:$0xff]  ;;  %v13366_v27 = vld [vmem:[#allocation82_spill] sm:$0xff]  ;;  %v13378_v15 = vand.u32 4294901760, %v10149_v2  ;;  %v13379_v45 = vand.u32 4294901760, %v10154_v24 }
 0x56f   :  { %v7088_v18 = vpack.c.bf16 %v13352_v33, %v13350_v7  ;;  %v13364_v60 = vand.u32 4294901760, %v13363_v30  ;;  %v13367_v28 = vand.u32 4294901760, %v13366_v27  ;;  %v7104_v33 = vpack.c.bf16 %v13373_v62, %v13372_v52  ;;  %v13400_v30 = vld [vmem:[#allocation90_spill] sm:$0xff]  ;;  %v13418_v52 = vld [vmem:[#allocation8_spill] sm:$0xff]  ;;  %v13419_v62 = vld [vmem:[#allocation79_spill] sm:$0xff] }
 0x570   :  { %7079 = vmatpush1.bf16.msra.mxu0 %v7078_v34  ;;  %v7092_v34 = vpack.c.bf16 %v13356_v57, %v13355_v56  ;;  %v13380_v38 = vand.u32 4294901760, %v10159_v51  ;;  %v7114_v57 = vpack.c.bf16 %v13383_v4, %v13382_v36  ;;  %v13385_v2 = vand.u32 4294901760, %v10179_v44  ;;  %v13434_v36 = vld [vmem:[#allocation53_spill] sm:$0xff]  ;;  %v13435_v4 = vld [vmem:[#allocation59_spill] sm:$0xff] }
 0x571   :  { %7081 = vmatprep.subr.bf16.mxu0 %v7080_v25  ;;  %v13360_v25 = vand.u32 4294901760, %v13359_v47  ;;  %v13386_v24 = vand.u32 4294901760, %v10181_v54  ;;  %v13387_v51 = vand.u32 4294901760, %v10183_v19  ;;  %v13392_v44 = vand.u32 4294901760, %v10193_v46 }
 0x572   :  { %v13393_v54 = vand.u32 4294901760, %v10195_v5  ;;  %v13394_v19 = vand.u32 4294901760, %v10197_v58  ;;  %v13401_v46 = vand.u32 4294901760, %v13400_v30  ;;  %v13402_v5 = vand.u32 4294901760, %v13260_v49  ;;  %v13411_v49 = vld [vmem:[#allocation89_spill] sm:$0xff] }
 0x573   :  { %v7094_v1 = vpack.c.bf16 %v13360_v25, %v13358_v32  ;;  %v7118_v0 = vpack.c.bf16 %v13387_v51, %v13386_v24  ;;  %v13405_v27 = vand.u32 4294901760, %v13262_v3  ;;  %v13414_v3 = vld [vmem:[#allocation65_spill] sm:$0xff]  ;;  %v10806_v24 = vld [vmem:[%s11569_s4] sm:$0xff] }
 0x574   :  { %7083 = vmatpush1.bf16.msra.mxu0 %v7082_v48  ;;  %v13362_v48 = vand.u32 4294901760, %v13361_v61  ;;  %v7124_v25 = vpack.c.bf16 %v13393_v54, %v13392_v44  ;;  %v10811_v51 = vld [vmem:[%s11569_s4 + $0x8] sm:$0xff] }
 0x575   :  { %7085 = vmatprep.subr.bf16.mxu0 %v7084_v39  ;;  %v7098_v39 = vpack.c.bf16 %v13367_v28, %v13365_v35  ;;  %v13406_v28 = vld [vmem:[#allocation106_spill] sm:$0xff] }
 0x576   :  { %v7096_v55 = vpack.c.bf16 %v13364_v60, %v13362_v48  ;;  %v7128_v48 = vpack.c.bf16 %v13398_v37, %v13397_v22  ;;  %v13407_v20 = vand.u32 4294901760, %v13406_v28  ;;  %v4218_v28 = vld [vmem:[%s11569_s4 + $0x28] sm:$0xff] }
 0x578   :  { %7087 = vmatpush1.bf16.msra.mxu0 %v7086_v63  ;;  %v13370_v63 = vand.u32 4294901760, %v13252_v26  ;;  %v13377_v26 = vand.u32 4294901760, %v13295_v43  ;;  %v13384_v43 = vand.u32 4294901760, %v10177_v50  ;;  %v13391_v50 = vand.u32 4294901760, %v10191_v23 }
 0x579   :  { %7089 = vmatprep.subr.bf16.mxu0 %v7088_v18  ;;  %v13374_v18 = vand.u32 4294901760, %v13292_v31  ;;  %v13381_v31 = vand.u32 4294901760, %v13257_v42  ;;  %v13388_v42 = vand.u32 4294901760, %v10185_v13  ;;  %v13399_v23 = vand.u32 4294901760, %v10205_v59  ;;  %v13409_v59 = vld [vmem:[#allocation93_spill] sm:$0xff] }
 0x57a   :  { %v7102_v7 = vpack.c.bf16 %v13371_v21, %v13370_v63  ;;  %v7108_v41 = vpack.c.bf16 %v13377_v26, %v13376_v8  ;;  %v7122_v47 = vpack.c.bf16 %v13391_v50, %v13390_v16  ;;  %v13415_v63 = vld [vmem:[#allocation69_spill] sm:$0xff]  ;;  %v13416_v21 = vld [vmem:[#allocation100_spill] sm:$0xff]  ;;  %v13426_v26 = vld [vmem:[#allocation43_spill] sm:$0xff] }
 0x57b   :  { %v7106_v40 = vpack.c.bf16 %v13375_v10, %v13374_v18  ;;  %v7112_v56 = vpack.c.bf16 %v13381_v31, %v13380_v38  ;;  %v7120_v32 = vpack.c.bf16 %v13389_v12, %v13388_v42  ;;  %v7130_v60 = vpack.c.bf16 %v13401_v46, %v13399_v23  ;;  %v13422_v18 = vld [vmem:[#allocation33_spill] sm:$0xff]  ;;  %v13423_v10 = vld [vmem:[#allocation30_spill] sm:$0xff]  ;;  %v13425_v8 = vld [vmem:[#allocation44_spill] sm:$0xff] }
 0x57c   :  { %7091 = vmatpush1.bf16.msra.mxu0 %v7090_v9  ;;  %v7110_v9 = vpack.c.bf16 %v13379_v45, %v13378_v15  ;;  %v13428_v15 = vld [vmem:[#allocation54_spill] sm:$0xff]  ;;  %v13429_v45 = vld [vmem:[#allocation57_spill] sm:$0xff]  ;;  %v13431_v38 = vld [vmem:[#allocation111_spill] sm:$0xff]  ;;  %v7575_v42 = vmov 0.0|0.0   ;;  %v4229_v12 = vand.u32 4294901760, %v10811_v51 }
 0x57d   :  { %7093 = vmatprep.subr.bf16.mxu0 %v7092_v34  ;;  %v7116_v34 = vpack.c.bf16 %v13385_v2, %v13384_v43  ;;  %v13432_v31 = vld [vmem:[#allocation48_spill] sm:$0xff]  ;;  %v13437_v43 = vld [vmem:[#allocation77_spill] sm:$0xff]  ;;  %7212 = vmatprep.subr.bf16.mxu1 %v7575_v42 }
 0x57e   :  { %v13438_v2 = vld [vmem:[#allocation60_spill] sm:$0xff]  ;;  %v10833_v44 = vsub.f32 %v10811_v51, %v4229_v12 }
 0x580   :  { %7095 = vmatpush1.bf16.msra.mxu0 %v7094_v1  ;;  %v13395_v1 = vld [vmem:[#allocation88_spill] sm:$0xff] }
 0x581   :  { %7097 = vmatprep.subr.bf16.mxu0 %v7096_v55  ;;  %v13396_v13 = vand.u32 4294901760, %v13395_v1  ;;  %v13403_v55 = vld [vmem:[#allocation98_spill] sm:$0xff]  ;;  %v4318_v1 = vand.u32 4294901760, %v10833_v44 }
 0x582   :  { %v13404_v58 = vand.u32 4294901760, %v13403_v55 }
 0x583   :  { %v7126_v61 = vpack.c.bf16 %v13396_v13, %v13394_v19  ;;  %v4319_v37 = vsub.f32 %v10833_v44, %v4318_v1 }
 0x584   :  { %7099 = vmatpush1.bf16.msra.mxu0 %v7098_v39  ;;  %v7132_v35 = vpack.c.bf16 %v13404_v58, %v13402_v5  ;;  %v7134_v39 = vpack.c.bf16 %v13407_v20, %v13405_v27  ;;  %v4217_v27 = vld [vmem:[%s11569_s4 + $0x20] sm:$0xff]  ;;  %v13440_v20 = vld [vmem:[#allocation113_spill] sm:$0xff] }
 0x585   :  { %7101 = vmatprep.subr.bf16.mxu0 %v7100_v11  ;;  %v13413_v11 = vld [vmem:[#allocation63_spill] sm:$0xff]  ;;  %v4320_v46 = vand.u32 4294901760, %v4319_v37 }
 0x588   :  { %7103 = vmatpush1.bf16.msra.mxu0 %v7102_v7  ;;  %v13417_v7 = vld [vmem:[#allocation103_spill] sm:$0xff] }
 0x589   :  { %7105 = vmatprep.subr.bf16.mxu0 %v7104_v33  ;;  %v13420_v33 = vld [vmem:[#allocation29_spill] sm:$0xff] }
 0x58c   :  { %7107 = vmatpush1.bf16.msra.mxu0 %v7106_v40  ;;  %v13424_v40 = vld [vmem:[#allocation45_spill] sm:$0xff] }
 0x58d   :  { %7109 = vmatprep.subr.bf16.mxu0 %v7108_v41  ;;  %v13427_v41 = vld [vmem:[#allocation51_spill] sm:$0xff] }
 0x590   :  { %7111 = vmatpush1.bf16.msra.mxu0 %v7110_v9  ;;  %v13430_v9 = vld [vmem:[#allocation58_spill] sm:$0xff] }
 0x591   :  { %7113 = vmatprep.subr.bf16.mxu0 %v7112_v56  ;;  %v13433_v56 = vld [vmem:[#allocation52_spill] sm:$0xff] }
 0x594   :  { %7115 = vmatpush1.bf16.msra.mxu0 %v7114_v57  ;;  %v13436_v57 = vld [vmem:[#allocation62_spill] sm:$0xff] }
 0x595   :  { %7117 = vmatprep.subr.bf16.mxu0 %v7116_v34  ;;  %v13439_v34 = vld [vmem:[#allocation92_spill] sm:$0xff] }
 0x598   :  { %7119 = vmatpush1.bf16.msra.mxu0 %v7118_v0  ;;  %v10816_v0 = vld [vmem:[%s11569_s4 + $0x10] sm:$0xff] }
 0x599   :  { %7121 = vmatprep.subr.bf16.mxu0 %v7120_v32  ;;  %v10824_v32 = vld [vmem:[%s11569_s4 + $0x18] sm:$0xff]  ;;  %v4232_v16 = vand.u32 4294901760, %v10816_v0 }
 0x59a   :  { %v4235_v50 = vand.u32 4294901760, %v10824_v32 }
 0x59b   :  { %v10838_v54 = vsub.f32 %v10816_v0, %v4232_v16 }
 0x59c   :  { %7123 = vmatpush1.bf16.msra.mxu0 %v7122_v47 }
 0x59d   :  { %7125 = vmatprep.subr.bf16.mxu0 %v7124_v25  ;;  %v10843_v25 = vsub.f32 %v10824_v32, %v4235_v50  ;;  %v4325_v13 = vand.u32 4294901760, %v10838_v54 }
 0x5a0   :  { %7127 = vmatpush1.bf16.msra.mxu0 %v7126_v61  ;;  %v4332_v61 = vand.u32 4294901760, %v10843_v25 }
 0x5a1   :  { %7129 = vmatprep.subr.bf16.mxu0 %v7128_v48  ;;  %v4326_v48 = vsub.f32 %v10838_v54, %v4325_v13 }
 0x5a2   :  { %v4333_v23 = vsub.f32 %v10843_v25, %v4332_v61 }
 0x5a4   :  { %7131 = vmatpush1.bf16.msra.mxu0 %v7130_v60  ;;  %v4327_v60 = vand.u32 4294901760, %v4326_v48  ;;  %v4334_v5 = vand.u32 4294901760, %v4333_v23 }
 0x5a5   :  { %7133 = vmatprep.subr.bf16.mxu0 %v7132_v35  ;;  %v5666_v35 = vld [vmem:[%s11567_s2 + $0x2] ss:$4 sm:$0x3] }
 0x5a6   :  { %v7216_v58 = vpack.c.bf16 %v4334_v5, %v4327_v60 }
 0x5a8   :  { %7135 = vmatpush1.bf16.msra.mxu0 %v7134_v39  ;;  %v2867_v39 = vrot.slane %v5666_v35, %v13440_v20 }
 0x5a9   :  { %7137 = vmatprep.subr.bf16.mxu0 %v13408_v53  ;;  %v4238_v53 = vand.u32 4294901760, %v4217_v27 }
 0x5ab   :  { %4015 = vmatmul.mubr.f32.vlgmr.msra.gmra.mrb[2].mxu0 %v13409_v59 }
 0x5ac   :  { %7139 = vmatpush1.bf16.msra.mxu0 %v13410_v17  ;;  %4150 = vmatprep.mubr.f32.mxu0 %v13337_v29  ;;  %v13421_v29 = vld [vmem:[#allocation25_spill] sm:$0xff]  ;;  %v13441_v17 = vld [vmem:[#allocation11_spill] sm:$0xff] }
 0x5ad   :  { %7141 = vmatprep.subr.bf16.mxu0 %v13411_v49  ;;  %v2871_v49 = vrot.slane %v5666_v35, %v13441_v17 }
 0x5b0   :  { %7143 = vmatpush1.bf16.msra.mxu0 %v13412_v14  ;;  %v10874_v14 = vsub.f32 %v4217_v27, %v4238_v53 }
 0x5b1   :  { %7145 = vmatprep.subr.bf16.mxu0 %v13413_v11 }
 0x5b4   :  { %7147 = vmatpush1.bf16.msra.mxu0 %v13414_v3 }
 0x5b5   :  { %7149 = vmatprep.subr.bf16.mxu0 %v13415_v63  ;;  %v4219_v63 = vld [vmem:[%s11569_s4 + $0x30] sm:$0xff] }
 0x5b8   :  { %7151 = vmatpush1.bf16.msra.mxu0 %v13416_v21  ;;  %v4220_v21 = vld [vmem:[%s11569_s4 + $0x38] sm:$0xff]  ;;  %s7578_s4 = smov 64  }
 0x5b9   :  { %7153 = vmatprep.subr.bf16.mxu0 %v13417_v7 }
 0x5bc   :  { %7155 = vmatpush1.bf16.msra.mxu0 %v13418_v52 }
 0x5bd   :  { %7157 = vmatprep.subr.bf16.mxu0 %v13419_v62  ;;  %v4339_v62 = vand.u32 4294901760, %v10874_v14 }
 0x5c0   :  { %7159 = vmatpush1.bf16.msra.mxu0 %v13420_v33 }
 0x5c1   :  { %7161 = vmatprep.subr.bf16.mxu0 %v13421_v29  ;;  %v4244_v29 = vand.u32 4294901760, %v4219_v63 }
 0x5c4   :  { %7163 = vmatpush1.bf16.msra.mxu0 %v13422_v18 }
 0x5c5   :  { %7165 = vmatprep.subr.bf16.mxu0 %v13423_v10  ;;  %v4247_v10 = vand.u32 4294901760, %v4220_v21 }
 0x5c7   :  { %v10921_v23 = vpack.c.bf16 %v4247_v10, %v4244_v29 }
 0x5c8   :  { %7167 = vmatpush1.bf16.msra.mxu0 %v13424_v40 }
 0x5c9   :  { %7169 = vmatprep.subr.bf16.mxu0 %v13425_v8  ;;  %v4340_v8 = vsub.f32 %v10874_v14, %v4339_v62 }
 0x5cc   :  { %7171 = vmatpush1.bf16.msra.mxu0 %v13426_v26 }
 0x5cd   :  { %7173 = vmatprep.subr.bf16.mxu0 %v13427_v41 }
 0x5d0   :  { %7175 = vmatpush1.bf16.msra.mxu0 %v13428_v15  ;;  %v10888_v15 = vsub.f32 %v4219_v63, %v4244_v29 }
 0x5d1   :  { %7177 = vmatprep.subr.bf16.mxu0 %v13429_v45  ;;  %v10890_v45 = vsub.f32 %v4220_v21, %v4247_v10  ;;  %v7252_v21 = vpack.c.bf16 %v4332_v61, %v4325_v13  ;;  %v4181_v13 = vld [vmem:[%s11568_s3] sm:$0xff]  ;;  %v10997_v61 = vld [vmem:[%s11568_s3 + $0x8] sm:$0xff] }
 0x5d2   :  { %v4763_v29 = vand.u32 4294901760, %v4181_v13 }
 0x5d3   :  { %v7234_v60 = vpack.c.bf16 %v10890_v45, %v10888_v15 }
 0x5d4   :  { %7179 = vmatpush1.bf16.msra.mxu0 %v13430_v9 }
 0x5d5   :  { %7181 = vmatprep.subr.bf16.mxu0 %v13431_v38  ;;  %v4341_v38 = vand.u32 4294901760, %v4340_v8 }
 0x5d8   :  { %7183 = vmatpush1.bf16.msra.mxu0 %v13432_v31 }
 0x5d9   :  { %7185 = vmatprep.subr.bf16.mxu0 %v13433_v56 }
 0x5dc   :  { %7187 = vmatpush1.bf16.msra.mxu0 %v13434_v36  ;;  %v4353_v36 = vand.u32 4294901760, %v10888_v15 }
 0x5dd   :  { %7189 = vmatprep.subr.bf16.mxu0 %v13435_v4  ;;  %v4360_v4 = vand.u32 4294901760, %v10890_v45 }
 0x5e0   :  { %7191 = vmatpush1.bf16.msra.mxu0 %v13436_v57 }
 0x5e1   :  { %7193 = vmatprep.subr.bf16.mxu0 %v13437_v43 }
 0x5e4   :  { %7195 = vmatpush1.bf16.msra.mxu0 %v13438_v2  ;;  %v4354_v2 = vsub.f32 %v10888_v15, %v4353_v36 }
 0x5e5   :  { %7197 = vmatprep.subr.bf16.mxu0 %v13439_v34  ;;  %v4361_v34 = vsub.f32 %v10890_v45, %v4360_v4  ;;  %v4201_v45 = vld [vmem:[%s11568_s3 + $0xa0] sm:$0xff] }
 0x5e7   :  { %v4362_v51 = vand.u32 4294901760, %v4361_v34 }
 0x5e8   :  { %7199 = vmatpush1.bf16.msra.mxu0 %v13331_v6  ;;  %v4226_v6 = vand.u32 4294901760, %v10806_v24 }
 0x5e9   :  { %7200 = vmatprep.subr.bf16.mxu0 %v7575_v42 }
 0x5ea   :  { %v10830_v47 = vsub.f32 %v10806_v24, %v4226_v6  ;;  %v10894_v43 = vpack.c.bf16 %v4229_v12, %v4226_v6  ;;  %v4355_v24 = vand.u32 4294901760, %v4354_v2  ;;  %v10905_v6 = vpack.c.bf16 %v4235_v50, %v4232_v16  ;;  %v4186_v2 = vld [vmem:[%s11568_s3 + $0x28] sm:$0xff] }
 0x5eb   :  { %4152 = vmatmul.mubr.f32.vlgmr.msra.gmra.mrb[2].mxu0 %v13409_v59  ;;  %v4241_v59 = vand.u32 4294901760, %v4218_v28  ;;  %v7577_v12 = vmov 0.0  }
 0x5ec   :  { %v4311_v19 = vand.u32 4294901760, %v10830_v47  ;;  %7202 = vmatpush3.bf16.msra.mxu0 %v10894_v43  ;;  %5969 = vmatprep.mubr.msk.f32.mxu1 %vm7576_vm4, %v7577_v12 }
 0x5ed   :  { %v10876_v11 = vsub.f32 %v4218_v28, %v4241_v59  ;;  %7203 = vmatprep.subr.bf16.mxu0 %v7575_v42  ;;  %5950 = vmatprep.mubr.msk.f32.mxu0 %vm7576_vm4, %v7577_v12  ;;  %v10914_v37 = vpack.c.bf16 %v4241_v59, %v4238_v53  ;;  %v7225_v53 = vpack.c.bf16 %v10833_v44, %v10830_v47 }
 0x5ee   :  { %v4312_v22 = vsub.f32 %v10830_v47, %v4311_v19  ;;  %v7249_v63 = vpack.c.bf16 %v4318_v1, %v4311_v19 }
 0x5ef   :  { %v4346_v33 = vand.u32 4294901760, %v10876_v11 }
 0x5f0   :  { %v4313_v30 = vand.u32 4294901760, %v4312_v22  ;;  %v7222_v22 = vpack.c.bf16 %v4362_v51, %v4355_v24  ;;  %7205 = vmatpush3.bf16.msra.mxu0 %v10905_v6  ;;  %v4203_v24 = vld [vmem:[%s11568_s3 + $0xb0] sm:$0xff]  ;;  %v4204_v51 = vld [vmem:[%s11568_s3 + $0xb8] sm:$0xff] }
 0x5f1   :  { %v4347_v26 = vsub.f32 %v10876_v11, %v4346_v33  ;;  %7206 = vmatprep.subr.bf16.mxu0 %v7575_v42  ;;  %v7255_v5 = vpack.c.bf16 %v4346_v33, %v4339_v62  ;;  %v4199_v62 = vld [vmem:[%s11568_s3 + $0x90] sm:$0xff]  ;;  %v4200_v33 = vld [vmem:[%s11568_s3 + $0x98] sm:$0xff] }
 0x5f2   :  { %v7213_v55 = vpack.c.bf16 %v4320_v46, %v4313_v30  ;;  %v7231_v46 = vpack.c.bf16 %v10876_v11, %v10874_v14  ;;  %v4820_v8 = vand.u32 4294901760, %v4200_v33 }
 0x5f3   :  { %v4348_v31 = vand.u32 4294901760, %v4347_v26  ;;  %v4183_v26 = vld [vmem:[%s11568_s3 + $0x10] sm:$0xff] }
 0x5f4   :  { %7214 = vmatpush3.bf16.msra.mxu1 %v7213_v55  ;;  %7208 = vmatpush3.bf16.msra.mxu0 %v10914_v37  ;;  %v7258_v55 = vpack.c.bf16 %v4360_v4, %v4353_v36  ;;  %v4823_v4 = vand.u32 4294901760, %v4201_v45 }
 0x5f5   :  { %7215 = vmatprep.subr.bf16.mxu1 %v7575_v42  ;;  %v7219_v57 = vpack.c.bf16 %v4348_v31, %v4341_v38  ;;  %7209 = vmatprep.subr.bf16.mxu0 %v7575_v42  ;;  %v4769_v31 = vand.u32 4294901760, %v4183_v26 }
 0x5f8   :  { %7217 = vmatpush3.bf16.msra.mxu1 %v7216_v58  ;;  %7211 = vmatpush3.bf16.msra.mxu0 %v10921_v23 }
 0x5f9   :  { %7218 = vmatprep.subr.bf16.mxu1 %v7575_v42 }
 0x5fc   :  { %7220 = vmatpush3.bf16.msra.mxu1 %v7219_v57 }
 0x5fd   :  { %7221 = vmatprep.subr.bf16.mxu1 %v7575_v42 }
 0x600   :  { %7223 = vmatpush3.bf16.msra.mxu1 %v7222_v22 }
 0x601   :  { %7224 = vmatprep.subr.bf16.mxu1 %v7575_v42 }
 0x6be   :  { %v4153_v3 = vpop.f32.mrb[2].mxu0 }
 0x6bf   :  { %v7470_v7 = vadd.f32 %v4153_v3, %v2867_v39  ;;  %v4155_v52 = vpop.f32.mrb[3].mxu0 }
 0x6c0   :  { %v7471_v18 = vadd.f32 %v4155_v52, %v2871_v49  ;;  %v7228_v49 = vpack.c.bf16 %v10843_v25, %v10838_v54  ;;  %v10980_v54 = vld [vmem:[%s11568_s3 + $0x80] sm:$0xff]  ;;  %v10985_v25 = vld [vmem:[%s11568_s3 + $0x88] sm:$0xff] }
 0x6c1   :  { %v4160_v40 = vmin.f32 %v7470_v7, 0.0  ;;  %vm4158_vm5 = vcmp.gt.f32.partialorder %v7470_v7, 0.0  ;;  %v4811_v19 = vand.u32 4294901760, %v10980_v54  ;;  %v4814_v1 = vand.u32 4294901760, %v10985_v25 }
 0x6c2   :  { %v4161_v41 = vmin.f32 %v7471_v18, 0.0  ;;  %vm4159_vm6 = vcmp.gt.f32.partialorder %v7471_v18, 0.0 }
 0x6c3   :  { %v4162_v9 = vmul.f32 1.442695, %v4160_v40  ;;  %v11012_v10 = vpack.c.bf16 %v4814_v1, %v4811_v19  ;;  %v4817_v40 = vand.u32 4294901760, %v4199_v62 }
 0x6c4   :  { %v4164_v56 = vmul.f32 1.442695, %v4161_v41  ;;  %v4184_v41 = vld [vmem:[%s11568_s3 + $0x18] sm:$0xff] }
 0x6c5   :  { %7516 = vpow2.f32 %v4162_v9  ;;  %v4202_v9 = vld [vmem:[%s11568_s3 + $0xa8] sm:$0xff]  ;;  %v11037_v36 = vpack.c.bf16 %v4820_v8, %v4817_v40 }
 0x6c6   :  { %7518 = vpow2.f32 %v4164_v56  ;;  %v4772_v56 = vand.u32 4294901760, %v4184_v41  ;;  %v4826_v57 = vand.u32 4294901760, %v4202_v9 }
 0x6cf   :  { %v7517_v0 = vpop.eup %7516 }
 0x6d0   :  { %v7519_v32 = vpop.eup %7518  ;;  %v5667_v16 = vadd.f32 -1.0, %v7517_v0  ;;  %v4778_v0 = vand.u32 4294901760, %v4186_v2 }
 0x6d1   :  { %v5668_v48 = vadd.f32 -1.0, %v7519_v32  ;;  %v4829_v32 = vand.u32 4294901760, %v4203_v24 }
 0x6d2   :  { %v10917_v50 = vsel %vm4158_vm5, %v7470_v7, %v5667_v16  ;;  %v4832_v16 = vand.u32 4294901760, %v4204_v51 }
 0x6d3   :  { %4171 = vrot.lane.b32.xlu0 %v10917_v50, %s7578_s4  ;;  %v4169_v30 = vsel %vm4159_vm6, %v7471_v18, %v5668_v48  ;;  %v11000_v7 = vand.u32 4294901760, %v10917_v50  ;;  %v4766_v18 = vand.u32 4294901760, %v10997_v61  ;;  %v4188_v48 = vld [vmem:[%s11568_s3 + $0x38] sm:$0xff] }
 0x6d4   :  { %v10967_v47 = vand.u32 4294901760, %v4169_v30 }
 0x6d5   :  { %v11022_v15 = vsub.f32 %v10917_v50, %v11000_v7  ;;  %v11034_v38 = vpack.c.bf16 %v4766_v18, %v4763_v29 }
 0x6d6   :  { %v10975_v44 = vsub.f32 %v4169_v30, %v10967_v47 }
 0x6d7   :  { %4177 = vrot.lane.b32.xlu0 %v4169_v30, %s7578_s4  ;;  %v12276_v22 = vand.u32 4294901760, %v11022_v15 }
 0x6d8   :  { %v12277_v52 = vand.u32 4294901760, %v10975_v44 }
 0x745   :  { %v4172_v58 = vpop.permute.xlu0 %4171 }
 0x746   :  { %v4174_v35 = vmax.f32 %v10917_v50, %v4172_v58  ;;  %v4187_v50 = vld [vmem:[%s11568_s3 + $0x30] sm:$0xff]  ;;  %v11080_v58 = vpack.c.bf16 %v4832_v16, %v4829_v32 }
 0x748   :  { %v4175_v27 = vmax.f32 %v4174_v35, %v4169_v30  ;;  %v4206_v30 = vld [vmem:[%s11568_s3 + $0xc8] sm:$0xff]  ;;  %13445 = vst [vmem:[#allocation49_spill] sm:$0xff] %v11080_v58 }
 0x749   :  { %v4178_v28 = vpop.permute.xlu0 %4177 }
 0x74a   :  { %v4180_v20 = vmax.f32 %v4175_v27, %v4178_v28  ;;  %v4838_v27 = vand.u32 4294901760, %v4206_v30  ;;  %v4189_v28 = vld [vmem:[%s11568_s3 + $0x40] sm:$0xff] }
 0x74c   :  { %v4223_v39 = vsel %vm4221_vm7, %v4180_v20, 0  ;;  %v4190_v20 = vld [vmem:[%s11568_s3 + $0x48] sm:$0xff] }
 0x74d   :  { %v10931_v59 = vand.u32 4294901760, %v4223_v39 }
 0x74f   :  { %v4299_v17 = vsub.f32 %v4223_v39, %v10931_v59  ;;  %5970 = vmatmul.mubr.f32.vlgmr.msra.gmra.mrb[4].mxu1 %v10931_v59  ;;  %v11089_v39 = vsub.f32 %v10980_v54, %v4811_v19  ;;  %v11112_v54 = vsub.f32 %v4184_v41, %v4772_v56  ;;  %v4787_v19 = vand.u32 4294901760, %v4189_v28 }
 0x750   :  { %7226 = vmatpush3.bf16.msra.mxu1 %v7225_v53  ;;  %5988 = vmatprep.mubr.msk.f32.mxu1 %vm7576_vm4, %v7577_v12  ;;  %v11092_v53 = vsub.f32 %v10985_v25, %v4814_v1  ;;  %v4790_v1 = vand.u32 4294901760, %v4190_v20  ;;  %v11138_v41 = vsub.f32 %v4203_v24, %v4829_v32 }
 0x751   :  { %v4300_v14 = vand.u32 4294901760, %v4299_v17  ;;  %7227 = vmatprep.subr.bf16.mxu1 %v7575_v42  ;;  %v12284_v24 = vand.u32 4294901760, %v11089_v39 }
 0x753   :  { %v4301_v11 = vsub.f32 %v4299_v17, %v4300_v14 }
 0x754   :  { %7229 = vmatpush3.bf16.msra.mxu1 %v7228_v49  ;;  %v4208_v49 = vld [vmem:[%s11568_s3 + $0xd8] sm:$0xff] }
 0x755   :  { %7230 = vmatprep.subr.bf16.mxu1 %v7575_v42  ;;  %v4302_v3 = vand.u32 4294901760, %v4301_v11  ;;  %v11104_v11 = vsub.f32 %v10997_v61, %v4766_v18  ;;  %v11125_v61 = vld [vmem:[%s11568_s3 + $0x58] sm:$0xff]  ;;  %v4844_v18 = vand.u32 4294901760, %v4208_v49 }
 0x757   :  { %5951 = vmatmul.mubr.f32.vlgmr.msra.gmra.mrb[4].mxu0 %v4302_v3  ;;  %v11106_v3 = vsub.f32 %v4199_v62, %v4817_v40  ;;  %v11127_v62 = vsub.f32 %v4201_v45, %v4823_v4  ;;  %v11132_v40 = vsub.f32 %v4202_v9, %v4826_v57  ;;  %v11146_v45 = vld [vmem:[%s11568_s3 + $0xe8] sm:$0xff] }
 0x758   :  { %7232 = vmatpush3.bf16.msra.mxu1 %v7231_v46  ;;  %v11074_v46 = vsub.f32 %v11022_v15, %v12276_v22  ;;  %v11186_v22 = vld [vmem:[%s11568_s3 + $0xf0] sm:$0xff] }
 0x759   :  { %7233 = vmatprep.subr.bf16.mxu1 %v7575_v42 }
 0x75c   :  { %7235 = vmatpush3.bf16.msra.mxu1 %v7234_v60 }
 0x75d   :  { %7236 = vmatprep.subr.bf16.mxu1 %v7575_v42 }
 0x75f   :  { %5989 = vmatmul.mubr.f32.vlgmr.msra.gmra.mrb[6].mxu1 %v4299_v17  ;;  %v4207_v17 = vld [vmem:[%s11568_s3 + $0xd0] sm:$0xff] }
 0x760   :  { %7238 = vmatpush3.bf16.msra.mxu1 %v10894_v43  ;;  %6007 = vmatprep.mubr.msk.f32.mxu1 %vm7576_vm4, %v7577_v12 }
 0x761   :  { %7239 = vmatprep.subr.bf16.mxu1 %v7575_v42 }
 0x764   :  { %7241 = vmatpush3.bf16.msra.mxu1 %v10905_v6 }
 0x765   :  { %7242 = vmatprep.subr.bf16.mxu1 %v7575_v42 }
 0x768   :  { %7244 = vmatpush3.bf16.msra.mxu1 %v10914_v37 }
 0x769   :  { %7245 = vmatprep.subr.bf16.mxu1 %v7575_v42 }
 0x76c   :  { %7247 = vmatpush3.bf16.msra.mxu1 %v10921_v23 }
 0x76d   :  { %7248 = vmatprep.subr.bf16.mxu1 %v7575_v42 }
 0x76f   :  { %6008 = vmatmul.mubr.f32.vlgmr.msra.gmra.mrb[8].mxu1 %v4300_v14 }
 0x770   :  { %7250 = vmatpush3.bf16.msra.mxu1 %v7249_v63  ;;  %6026 = vmatprep.mubr.msk.f32.mxu1 %vm7576_vm4, %v7577_v12  ;;  %v11108_v63 = vsub.f32 %v4200_v33, %v4820_v8 }
 0x771   :  { %7251 = vmatprep.subr.bf16.mxu1 %v7575_v42 }
 0x774   :  { %7253 = vmatpush3.bf16.msra.mxu1 %v7252_v21  ;;  %v11110_v21 = vsub.f32 %v4183_v26, %v4769_v31  ;;  %v11136_v26 = vsub.f32 %v4186_v2, %v4778_v0 }
 0x775   :  { %7254 = vmatprep.subr.bf16.mxu1 %v7575_v42 }
 0x778   :  { %7256 = vmatpush3.bf16.msra.mxu1 %v7255_v5  ;;  %v4781_v5 = vand.u32 4294901760, %v4187_v50 }
 0x779   :  { %7257 = vmatprep.subr.bf16.mxu1 %v7575_v42 }
 0x77c   :  { %7259 = vmatpush3.bf16.msra.mxu1 %v7258_v55  ;;  %v4784_v55 = vand.u32 4294901760, %v4188_v48 }
 0x77d   :  { %7260 = vmatprep.subr.bf16.mxu1 %v7575_v42 }
 0x77e   :  { %v11115_v25 = vpack.c.bf16 %v4784_v55, %v4781_v5  ;;  %v11165_v2 = vsub.f32 %v4188_v48, %v4784_v55 }
 0x77f   :  { %6027 = vmatmul.mubr.f32.vlgmr.msra.gmra.mrb[10].mxu1 %v10931_v59 }
 0x780   :  { %7262 = vmatpush3.bf16.msra.mxu1 %v10894_v43  ;;  %6045 = vmatprep.mubr.msk.f32.mxu1 %vm7576_vm4, %v7577_v12  ;;  %v4185_v43 = vld [vmem:[%s11568_s3 + $0x20] sm:$0xff]  ;;  %13446 = vst [vmem:[#allocation41_spill] sm:$0xff] %v11115_v25 }
 0x781   :  { %7263 = vmatprep.subr.bf16.mxu1 %v7575_v42  ;;  %v4775_v12 = vand.u32 4294901760, %v4185_v43 }
 0x783   :  { %v11077_v60 = vpack.c.bf16 %v4778_v0, %v4775_v12  ;;  %v11134_v8 = vsub.f32 %v4185_v43, %v4775_v12  ;;  %v11162_v43 = vld [vmem:[%s11568_s3 + $0x68] sm:$0xff] }
 0x784   :  { %7265 = vmatpush3.bf16.msra.mxu1 %v10905_v6  ;;  %v11054_v6 = vpack.c.bf16 %v4772_v56, %v4769_v31  ;;  %v11148_v31 = vsub.f32 %v4204_v51, %v4832_v16  ;;  %v11150_v56 = vsub.f32 %v4187_v50, %v4781_v5  ;;  %v12287_v51 = vand.u32 4294901760, %v11092_v53 }
 0x785   :  { %7266 = vmatprep.subr.bf16.mxu1 %v7575_v42  ;;  %13444 = vst [vmem:[#allocation28_spill] sm:$0xff] %v11077_v60  ;;  %v4850_v16 = vand.u32 4294901760, %v11146_v45  ;;  %v11177_v50 = vsub.f32 %v4206_v30, %v4838_v27  ;;  %v11179_v5 = vsub.f32 %v4189_v28, %v4787_v19  ;;  %v11205_v28 = vld [vmem:[%s11568_s3 + $0x78] sm:$0xff] }
 0x786   :  { %13442 = vst [vmem:[#allocation105_spill] sm:$0xff] %v11054_v6 }
 0x788   :  { %7268 = vmatpush3.bf16.msra.mxu1 %v10914_v37  ;;  %v11057_v37 = vpack.c.bf16 %v4826_v57, %v4823_v4  ;;  %v4796_v4 = vand.u32 4294901760, %v11125_v61  ;;  %v11157_v57 = vld [vmem:[%s11568_s3 + $0x60] sm:$0xff] }
 0x789   :  { %7269 = vmatprep.subr.bf16.mxu1 %v7575_v42  ;;  %v4861_v42 = vsub.f32 %v10975_v44, %v12277_v52  ;;  %v4799_v48 = vand.u32 4294901760, %v11157_v57 }
 0x78a   :  { %13443 = vst [vmem:[#allocation24_spill] sm:$0xff] %v11057_v37 }
 0x78b   :  { %v4862_v34 = vand.u32 4294901760, %v4861_v42  ;;  %v4209_v42 = vld [vmem:[%s11568_s3 + $0xe0] sm:$0xff] }
 0x78c   :  { %7271 = vmatpush3.bf16.msra.mxu1 %v10921_v23  ;;  %v4205_v23 = vld [vmem:[%s11568_s3 + $0xc0] sm:$0xff]  ;;  %v4847_v32 = vand.u32 4294901760, %v4209_v42 }
 0x78d   :  { %7273 = vmatprep.subr.bf16.mxu1 %v11012_v10  ;;  %v4835_v35 = vand.u32 4294901760, %v4205_v23 }
 0x78f   :  { %6046 = vmatmul.mubr.f32.vlgmr.msra.gmra.mrb[12].mxu1 %v10931_v59  ;;  %v11094_v59 = vsub.f32 %v4181_v13, %v4763_v29  ;;  %v11120_v13 = vld [vmem:[%s11568_s3 + $0x50] sm:$0xff]  ;;  %v11130_v33 = vpack.c.bf16 %v4838_v27, %v4835_v35  ;;  %v4841_v29 = vand.u32 4294901760, %v4207_v17  ;;  %v11172_v12 = vsub.f32 %v4205_v23, %v4835_v35  ;;  %v11191_v23 = vld [vmem:[%s11568_s3 + $0xf8] sm:$0xff] }
 0x790   :  { %7275 = vmatpush3.bf16.msra.mxu1 %v11034_v38  ;;  %4863 = vmatprep.mubr.f32.mxu1 %v4862_v34  ;;  %v4793_v9 = vand.u32 4294901760, %v11120_v13  ;;  %v11167_v34 = vpack.c.bf16 %v4790_v1, %v4787_v19  ;;  %v11193_v35 = vsub.f32 %v4190_v20, %v4790_v1  ;;  %v11200_v27 = vld [vmem:[%s11568_s3 + $0x70] sm:$0xff]  ;;  %v4990_v20 = vsub.f32 %v11089_v39, %v12284_v24 }
 0x791   :  { %7277 = vmatprep.subr.bf16.mxu1 %v11037_v36  ;;  %13447 = vst [vmem:[#allocation55_spill] sm:$0xff] %v11130_v33  ;;  %v11174_v0 = vpack.c.bf16 %v4844_v18, %v4841_v29  ;;  %v4997_v1 = vsub.f32 %v11092_v53, %v12287_v51  ;;  %v11221_v19 = vpack.c.bf16 %v4850_v16, %v4847_v32  ;;  %v13452_v24 = vand.u32 4294901760, %v11162_v43 }
 0x792   :  { %13448 = vst [vmem:[#allocation56_spill] sm:$0xff] %v11167_v34  ;;  %v11195_v30 = vpack.c.bf16 %v4796_v4, %v4793_v9  ;;  %v13454_v14 = vand.u32 4294901760, %v11094_v59  ;;  %v13456_v51 = vand.u32 4294901760, %v11106_v3 }
 0x793   :  { %13449 = vst [vmem:[#allocation112_spill] sm:$0xff] %v11174_v0  ;;  %13451 = vst [vmem:[#allocation9_spill] sm:$0xff] %v11221_v19 }
 0x794   :  { %7279 = vmatpush3.bf16.msra.mxu1 %v11054_v6  ;;  %13450 = vst [vmem:[#allocation115_spill] sm:$0xff] %v11195_v30  ;;  %v5004_v55 = vsub.f32 %v11106_v3, %v13456_v51  ;;  %v11261_v51 = vsub.f32 %v11125_v61, %v4796_v4  ;;  %v13463_v61 = vand.u32 4294901760, %v11200_v27  ;;  %v13468_v6 = vand.u32 4294901760, %v11138_v41 }
 0x795   :  { %7281 = vmatprep.subr.bf16.mxu1 %v11057_v37  ;;  %v13461_v37 = vand.u32 4294901760, %v11110_v21 }
 0x798   :  { %7283 = vmatpush3.bf16.msra.mxu1 %v11077_v60  ;;  %v11249_v60 = vsub.f32 %v11120_v13, %v4793_v9  ;;  %v5005_v9 = vand.u32 4294901760, %v5004_v55  ;;  %v11293_v55 = vsub.f32 %v11157_v57, %v4799_v48  ;;  %v12305_v13 = vand.u32 4294901760, %v11150_v56 }
 0x799   :  { %7285 = vmatprep.subr.bf16.mxu1 %v11080_v58  ;;  %v11229_v58 = vpack.c.bf16 %v13452_v24, %v4799_v48  ;;  %v4998_v24 = vand.u32 4294901760, %v4997_v1  ;;  %v12300_v1 = vand.u32 4294901760, %v11132_v40  ;;  %v12307_v48 = vand.u32 4294901760, %v11177_v50 }
 0x79a   :  { %v13470_v57 = vand.u32 4294901760, %v11074_v46 }
 0x79b   :  { %13453 = vst [vmem:[#allocation10_spill] sm:$0xff] %v11229_v58 }
 0x79c   :  { %7287 = vmatpush3.bf16.msra.mxu1 %v11115_v25  ;;  %v11225_v25 = vsub.f32 %v4208_v49, %v4844_v18  ;;  %v4991_v18 = vand.u32 4294901760, %v4990_v20  ;;  %v13459_v49 = vand.u32 4294901760, %v11191_v23 }
 0x79d   :  { %7289 = vmatprep.subr.bf16.mxu1 %v11130_v33  ;;  %v11219_v33 = vsub.f32 %v4207_v17, %v4841_v29  ;;  %v4878_v17 = vsub.f32 %v11094_v59, %v13454_v14  ;;  %v13455_v29 = vand.u32 4294901760, %v11104_v11 }
 0x79f   :  { %v4885_v52 = vsub.f32 %v11104_v11, %v13455_v29  ;;  %v13458_v29 = vand.u32 4294901760, %v11186_v22 }
 0x7a0   :  { %7291 = vmatpush3.bf16.msra.mxu1 %v11167_v34 }
 0x7a1   :  { %7293 = vmatprep.subr.bf16.mxu1 %v11174_v0  ;;  %v13457_v0 = vand.u32 4294901760, %v11108_v63  ;;  %v11256_v34 = vpack.c.bf16 %v13459_v49, %v13458_v29  ;;  %v4892_v49 = vsub.f32 %v11110_v21, %v13461_v37  ;;  %v13462_v29 = vand.u32 4294901760, %v11112_v54 }
 0x7a3   :  { %v5011_v14 = vsub.f32 %v11108_v63, %v13457_v0  ;;  %13460 = vst [vmem:[#allocation16_spill] sm:$0xff] %v11256_v34  ;;  %v4879_v0 = vand.u32 4294901760, %v4878_v17  ;;  %v4899_v20 = vsub.f32 %v11112_v54, %v13462_v29  ;;  %v5025_v29 = vsub.f32 %v11132_v40, %v12300_v1 }
 0x7a4   :  { %7295 = vmatpush3.bf16.msra.mxu1 %v11195_v30  ;;  %v11263_v30 = vsub.f32 %v4209_v42, %v4847_v32  ;;  %v13464_v42 = vand.u32 4294901760, %v11205_v28  ;;  %v7304_v32 = vpack.c.bf16 %v4998_v24, %v4991_v18  ;;  %v13466_v18 = vand.u32 4294901760, %v11134_v8 }
 0x7a5   :  { %7297 = vmatprep.subr.bf16.mxu1 %v11221_v19  ;;  %v4886_v19 = vand.u32 4294901760, %v4885_v52  ;;  %v5012_v17 = vand.u32 4294901760, %v5011_v14  ;;  %v13465_v52 = vand.u32 4294901760, %v11127_v62  ;;  %v13467_v14 = vand.u32 4294901760, %v11136_v26 }
 0x7a6   :  { %v11278_v4 = vpack.c.bf16 %v13464_v42, %v13463_v61  ;;  %v11290_v61 = vsub.f32 %v11146_v45, %v4850_v16  ;;  %v4906_v24 = vsub.f32 %v11134_v8, %v13466_v18  ;;  %v4893_v1 = vand.u32 4294901760, %v4892_v49 }
 0x7a7   :  { %v5018_v37 = vsub.f32 %v11127_v62, %v13465_v52  ;;  %v4913_v42 = vsub.f32 %v11136_v26, %v13467_v14  ;;  %v7306_v52 = vpack.c.bf16 %v4886_v19, %v4879_v0  ;;  %v7308_v45 = vpack.c.bf16 %v5012_v17, %v5005_v9 }
 0x7a8   :  { %7299 = vmatpush3.bf16.msra.mxu1 %v11229_v58  ;;  %v12306_v16 = vand.u32 4294901760, %v11165_v2  ;;  %v5026_v58 = vand.u32 4294901760, %v5025_v29  ;;  %v5032_v19 = vsub.f32 %v11138_v41, %v13468_v6  ;;  %v4907_v49 = vand.u32 4294901760, %v4906_v24 }
 0x7a9   :  { %7301 = vmatprep.subr.bf16.mxu1 %v11256_v34  ;;  %v4900_v34 = vand.u32 4294901760, %v4899_v20  ;;  %v5019_v18 = vand.u32 4294901760, %v5018_v37  ;;  %v13469_v20 = vand.u32 4294901760, %v11148_v31  ;;  %v4914_v14 = vand.u32 4294901760, %v4913_v42 }
 0x7aa   :  { %v12309_v9 = vand.u32 4294901760, %v11179_v5  ;;  %v12308_v17 = vand.u32 4294901760, %v11193_v35  ;;  %v4920_v37 = vsub.f32 %v11150_v56, %v12305_v13  ;;  %v4927_v24 = vsub.f32 %v11165_v2, %v12306_v16 }
 0x7ab   :  { %v5039_v0 = vsub.f32 %v11148_v31, %v13469_v20  ;;  %v13471_v42 = vand.u32 4294901760, %v11172_v12  ;;  %v5033_v20 = vand.u32 4294901760, %v5032_v19  ;;  %v13473_v29 = vand.u32 4294901760, %v11186_v22 }
 0x7ac   :  { %7303 = vmatpush3.bf16.msra.mxu1 %v11278_v4  ;;  %v7314_v6 = vpack.c.bf16 %v4914_v14, %v4907_v49  ;;  %v4928_v49 = vand.u32 4294901760, %v4927_v24 }
 0x7ad   :  { %7305 = vmatprep.subr.bf16.mxu1 %v7304_v32  ;;  %v7310_v32 = vpack.c.bf16 %v4900_v34, %v4893_v1  ;;  %v5046_v46 = vsub.f32 %v11172_v12, %v13471_v42  ;;  %v5053_v34 = vsub.f32 %v11177_v50, %v12307_v48  ;;  %v13472_v1 = vand.u32 4294901760, %v11162_v43 }
 0x7ae   :  { %v5040_v13 = vand.u32 4294901760, %v5039_v0  ;;  %v11339_v16 = vsub.f32 %v11186_v22, %v13473_v29  ;;  %v4934_v42 = vsub.f32 %v11179_v5, %v12309_v9  ;;  %v4941_v48 = vsub.f32 %v11193_v35, %v12308_v17 }
 0x7af   :  { %4869 = vmatmul.mubr.f32.vlgmr.msra.gmra.mrb[14].mxu1 %v13470_v57  ;;  %v11334_v57 = vsub.f32 %v11162_v43, %v13472_v1  ;;  %v13474_v43 = vand.u32 4294901760, %v11219_v33  ;;  %v4921_v0 = vand.u32 4294901760, %v4920_v37  ;;  %v5047_v14 = vand.u32 4294901760, %v5046_v46 }
 0x7b0   :  { %7307 = vmatpush3.bf16.msra.mxu1 %v7306_v52  ;;  %5099 = vmatprep.mubr.f32.mxu1 %v10967_v47  ;;  %v7312_v52 = vpack.c.bf16 %v5026_v58, %v5019_v18  ;;  %v5054_v29 = vand.u32 4294901760, %v5053_v34  ;;  %v13476_v1 = vand.u32 4294901760, %v11191_v23  ;;  %v12310_v9 = vand.u32 4294901760, %v11263_v30 }
 0x7b1   :  { %7309 = vmatprep.subr.bf16.mxu1 %v7308_v45  ;;  %v5060_v58 = vsub.f32 %v11219_v33, %v13474_v43  ;;  %v13475_v45 = vand.u32 4294901760, %v11225_v25  ;;  %v7316_v43 = vpack.c.bf16 %v5040_v13, %v5033_v20  ;;  %v13477_v22 = vand.u32 4294901760, %v11200_v27 }
 0x7b2   :  { %v11358_v17 = vsub.f32 %v11191_v23, %v13476_v1  ;;  %v4935_v24 = vand.u32 4294901760, %v4934_v42  ;;  %v4942_v46 = vand.u32 4294901760, %v4941_v48  ;;  %v13479_v13 = vand.u32 4294901760, %v11249_v60 }
 0x7b3   :  { %v5067_v18 = vsub.f32 %v11225_v25, %v13475_v45  ;;  %v11365_v19 = vsub.f32 %v11200_v27, %v13477_v22  ;;  %v5061_v23 = vand.u32 4294901760, %v5060_v58  ;;  %v13480_v20 = vand.u32 4294901760, %v11261_v51 }
 0x7b4   :  { %7311 = vmatpush3.bf16.msra.mxu1 %v7310_v32  ;;  %v13478_v32 = vand.u32 4294901760, %v11205_v28  ;;  %v7318_v27 = vpack.c.bf16 %v4928_v49, %v4921_v0  ;;  %v7320_v22 = vpack.c.bf16 %v5054_v29, %v5047_v14  ;;  %v4961_v45 = vand.u32 4294901760, %v11293_v55 }
 0x7b5   :  { %7313 = vmatprep.subr.bf16.mxu1 %v7312_v52  ;;  %v5068_v34 = vand.u32 4294901760, %v5067_v18  ;;  %v4948_v52 = vsub.f32 %v11249_v60, %v13479_v13  ;;  %v4955_v1 = vsub.f32 %v11261_v51, %v13480_v20  ;;  %v5074_v48 = vsub.f32 %v11263_v30, %v12310_v9 }
 0x7b6   :  { %v11370_v37 = vsub.f32 %v11205_v28, %v13478_v32  ;;  %v12312_v28 = vand.u32 4294901760, %v11334_v57  ;;  %v13481_v42 = vand.u32 4294901760, %v11290_v61  ;;  %v12311_v18 = vand.u32 4294901760, %v11339_v16 }
 0x7b7   :  { %v12313_v32 = vand.u32 4294901760, %v11358_v17  ;;  %v7324_v0 = vpack.c.bf16 %v5068_v34, %v5061_v23  ;;  %v4949_v49 = vand.u32 4294901760, %v4948_v52  ;;  %v4956_v14 = vand.u32 4294901760, %v4955_v1 }
 0x7b8   :  { %7315 = vmatpush3.bf16.msra.mxu1 %v7314_v6  ;;  %v5081_v58 = vsub.f32 %v11290_v61, %v13481_v42  ;;  %v7322_v6 = vpack.c.bf16 %v4942_v46, %v4935_v24  ;;  %v4962_v29 = vsub.f32 %v11293_v55, %v4961_v45  ;;  %v4975_v13 = vand.u32 4294901760, %v11365_v19 }
 0x7b9   :  { %7317 = vmatprep.subr.bf16.mxu1 %v7316_v43  ;;  %v4969_v43 = vsub.f32 %v11334_v57, %v12312_v28  ;;  %v4982_v20 = vand.u32 4294901760, %v11370_v37  ;;  %v5075_v42 = vand.u32 4294901760, %v5074_v48  ;;  %v5088_v24 = vsub.f32 %v11339_v16, %v12311_v18 }
 0x7ba   :  { %v5082_v9 = vand.u32 4294901760, %v5081_v58  ;;  %v5095_v46 = vsub.f32 %v11358_v17, %v12313_v32  ;;  %v7326_v23 = vpack.c.bf16 %v4956_v14, %v4949_v49  ;;  %v4963_v34 = vand.u32 4294901760, %v4962_v29 }
 0x7bb   :  { %v4970_v52 = vand.u32 4294901760, %v4969_v43  ;;  %v4976_v1 = vsub.f32 %v11365_v19, %v4975_v13  ;;  %v5089_v48 = vand.u32 4294901760, %v5088_v24  ;;  %v7336_v14 = vpack.c.bf16 %v11092_v53, %v11089_v39 }
 0x7bc   :  { %7319 = vmatpush3.bf16.msra.mxu1 %v7318_v27  ;;  %v4983_v27 = vsub.f32 %v11370_v37, %v4982_v20  ;;  %v5096_v58 = vand.u32 4294901760, %v5095_v46  ;;  %v7338_v29 = vpack.c.bf16 %v11104_v11, %v11094_v59  ;;  %v7350_v43 = vpack.c.bf16 %v11165_v2, %v11150_v56 }
 0x7bd   :  { %7321 = vmatprep.subr.bf16.mxu1 %v7320_v22  ;;  %v7328_v22 = vpack.c.bf16 %v5082_v9, %v5075_v42  ;;  %v7330_v18 = vpack.c.bf16 %v4970_v52, %v4963_v34  ;;  %v4977_v28 = vand.u32 4294901760, %v4976_v1  ;;  %v7340_v9 = vpack.c.bf16 %v11108_v63, %v11106_v3 }
 0x7be   :  { %v4984_v32 = vand.u32 4294901760, %v4983_v27  ;;  %v7352_v42 = vpack.c.bf16 %v11177_v50, %v11172_v12  ;;  %v7354_v24 = vpack.c.bf16 %v11193_v35, %v11179_v5  ;;  %v7356_v46 = vpack.c.bf16 %v11225_v25, %v11219_v33 }
 0x7bf   :  { %v7360_v34 = vpack.c.bf16 %v11290_v61, %v11263_v30  ;;  %v7362_v52 = vpack.c.bf16 %v11334_v57, %v11293_v55  ;;  %v7364_v1 = vpack.c.bf16 %v11358_v17, %v11339_v16  ;;  %v7366_v27 = vpack.c.bf16 %v11370_v37, %v11365_v19 }
 0x7c0   :  { %7323 = vmatpush3.bf16.msra.mxu1 %v7322_v6  ;;  %v7332_v6 = vpack.c.bf16 %v5096_v58, %v5089_v48  ;;  %v7334_v49 = vpack.c.bf16 %v4984_v32, %v4977_v28  ;;  %v7342_v28 = vpack.c.bf16 %v11112_v54, %v11110_v21  ;;  %v7346_v32 = vpack.c.bf16 %v11136_v26, %v11134_v8  ;;  %v13483_v48 = vld [vmem:[#allocation105_spill] sm:$0xff]  ;;  %v13484_v58 = vld [vmem:[#allocation24_spill] sm:$0xff] }
 0x7c1   :  { %7325 = vmatprep.subr.bf16.mxu1 %v7324_v0  ;;  %v7348_v0 = vpack.c.bf16 %v11148_v31, %v11138_v41 }
 0x7c4   :  { %7327 = vmatpush3.bf16.msra.mxu1 %v7326_v23  ;;  %v7358_v23 = vpack.c.bf16 %v11261_v51, %v11249_v60 }
 0x7c5   :  { %7329 = vmatprep.subr.bf16.mxu1 %v7328_v22  ;;  %v13482_v22 = vand.u32 4294901760, %v10975_v44 }
 0x7c8   :  { %7331 = vmatpush3.bf16.msra.mxu1 %v7330_v18  ;;  %v7344_v18 = vpack.c.bf16 %v11132_v40, %v11127_v62 }
 0x7c9   :  { %7333 = vmatprep.subr.bf16.mxu1 %v7332_v6  ;;  %v13485_v6 = vld [vmem:[#allocation28_spill] sm:$0xff] }
 0x7cc   :  { %7335 = vmatpush3.bf16.msra.mxu1 %v7334_v49  ;;  %v13486_v49 = vld [vmem:[#allocation49_spill] sm:$0xff] }
 0x7cd   :  { %7337 = vmatprep.subr.bf16.mxu1 %v7336_v14  ;;  %v13487_v14 = vld [vmem:[#allocation41_spill] sm:$0xff] }
 0x7cf   :  { %5101 = vmatmul.mubr.f32.vlgmr.msra.gmra.mrb[16].mxu1 %v11000_v7 }
 0x7d0   :  { %7339 = vmatpush3.bf16.msra.mxu1 %v7338_v29  ;;  %5236 = vmatprep.mubr.f32.mxu1 %v10975_v44  ;;  %v13488_v29 = vld [vmem:[#allocation55_spill] sm:$0xff] }
 0x7d1   :  { %7341 = vmatprep.subr.bf16.mxu1 %v7340_v9  ;;  %v13489_v9 = vld [vmem:[#allocation56_spill] sm:$0xff]  ;;  %v13491_v44 = vld [vmem:[#allocation115_spill] sm:$0xff] }
 0x7d4   :  { %7343 = vmatpush3.bf16.msra.mxu1 %v7342_v28  ;;  %v13490_v28 = vld [vmem:[#allocation112_spill] sm:$0xff] }
 0x7d5   :  { %7345 = vmatprep.subr.bf16.mxu1 %v7344_v18  ;;  %v13492_v18 = vld [vmem:[#allocation9_spill] sm:$0xff] }
 0x7d8   :  { %7347 = vmatpush3.bf16.msra.mxu1 %v7346_v32  ;;  %v13493_v32 = vld [vmem:[#allocation10_spill] sm:$0xff] }
 0x7d9   :  { %7349 = vmatprep.subr.bf16.mxu1 %v7348_v0  ;;  %v13494_v0 = vld [vmem:[#allocation16_spill] sm:$0xff] }
 0x7dc   :  { %7351 = vmatpush3.bf16.msra.mxu1 %v7350_v43  ;;  %v13495_v43 = vand.u32 4294901760, %v11089_v39  ;;  %v13502_v39 = vand.u32 4294901760, %v11110_v21  ;;  %v13509_v21 = vand.u32 4294901760, %v11148_v31  ;;  %v13516_v31 = vand.u32 4294901760, %v11219_v33 }
 0x7dd   :  { %7353 = vmatprep.subr.bf16.mxu1 %v7352_v42  ;;  %v13496_v42 = vand.u32 4294901760, %v11092_v53  ;;  %v13503_v53 = vand.u32 4294901760, %v11112_v54  ;;  %v13510_v54 = vand.u32 4294901760, %v11150_v56  ;;  %v13517_v56 = vand.u32 4294901760, %v11225_v25 }
 0x7de   :  { %v13522_v25 = vand.u32 4294901760, %v11334_v57 }
 0x7e0   :  { %7355 = vmatpush3.bf16.msra.mxu1 %v7354_v24  ;;  %v7400_v24 = vpack.c.bf16 %v13496_v42, %v13495_v43  ;;  %v13505_v43 = vand.u32 4294901760, %v11132_v40  ;;  %v13512_v40 = vand.u32 4294901760, %v11172_v12  ;;  %v13519_v12 = vand.u32 4294901760, %v11261_v51 }
 0x7e1   :  { %7357 = vmatprep.subr.bf16.mxu1 %v7356_v46  ;;  %v13497_v46 = vand.u32 4294901760, %v11094_v59  ;;  %v7406_v59 = vpack.c.bf16 %v13503_v53, %v13502_v39  ;;  %v7426_v33 = vpack.c.bf16 %v13522_v25, %v4961_v45  ;;  %v13524_v51 = vand.u32 4294901760, %v11358_v17 }
 0x7e4   :  { %7359 = vmatpush3.bf16.msra.mxu1 %v7358_v23  ;;  %v13498_v23 = vand.u32 4294901760, %v11104_v11  ;;  %v13504_v11 = vand.u32 4294901760, %v11127_v62  ;;  %v13511_v62 = vand.u32 4294901760, %v11165_v2  ;;  %v13518_v2 = vand.u32 4294901760, %v11249_v60 }
 0x7e5   :  { %7361 = vmatprep.subr.bf16.mxu1 %v7360_v34  ;;  %v13523_v60 = vand.u32 4294901760, %v11339_v16 }
 0x7e6   :  { %v7402_v34 = vpack.c.bf16 %v13498_v23, %v13497_v46  ;;  %v7414_v23 = vpack.c.bf16 %v13511_v62, %v13510_v54  ;;  %v5669_v54 = vld [vmem:[%s11570_s5] ss:$0 sm:$0xff]  ;;  %s7546_s5 = scalar_lea.vmem %s5652_s16, 32 }
 0x7e7   :  { %v7428_v53 = vpack.c.bf16 %v13524_v51, %v13523_v60  ;;  %p7547_p8 = scmp.ne.s32.totalorder %s5652_s16, %s7546_s5  ;;  %p7552_p10 = scmp.lt.s32.totalorder %s7546_s5, %s7546_s5 }
 0x7e8   :  { %7363 = vmatpush3.bf16.msra.mxu1 %v7362_v52  ;;  %v13499_v52 = vand.u32 4294901760, %v11106_v3  ;;  %v7408_v3 = vpack.c.bf16 %v13505_v43, %v13504_v11 }
 0x7e9   :  { %7365 = vmatprep.subr.bf16.mxu1 %v7364_v1  ;;  %v13500_v1 = vand.u32 4294901760, %v11108_v63  ;;  %v13506_v63 = vand.u32 4294901760, %v11134_v8  ;;  %v13513_v8 = vand.u32 4294901760, %v11177_v50  ;;  %v13520_v50 = vand.u32 4294901760, %v11263_v30  ;;  %p7553_p11 = por %p7552_p10, %p7551_p9 }
 0x7ea   :  { %v7430_v30 = vpack.c.bf16 %v4982_v20, %v4975_v13 }
 0x7eb   :  { %p7554_p12 = pnand %p7553_p11, %p7547_p8 }
 0x7ec   :  { %7367 = vmatpush3.bf16.msra.mxu1 %v7366_v27  ;;  %v7404_v27 = vpack.c.bf16 %v13500_v1, %v13499_v52  ;;  %v7420_v1 = vpack.c.bf16 %v13517_v56, %v13516_v31 }
 0x7ed   :  { %7369 = vmatprep.subr.bf16.mxu1 %v11012_v10 }
 0x7ef   :  { %5239 = vmatmul.mubr.f32.vlgmr.msra.gmra.mrb[18].mxu1 %v11022_v15 }
 0x7f0   :  { %7371 = vmatpush3.bf16.msra.mxu1 %v11034_v38  ;;  %5343 = vmatprep.mubr.f32.mxu1 %v13482_v22  ;;  %v13501_v22 = vand.u32 4294901760, %v11022_v15  ;;  %v13507_v15 = vand.u32 4294901760, %v11136_v26  ;;  %v13514_v26 = vand.u32 4294901760, %v11179_v5  ;;  %v13521_v5 = vand.u32 4294901760, %v11290_v61 }
 0x7f1   :  { %7373 = vmatprep.subr.bf16.mxu1 %v11037_v36 }
 0x7f2   :  { %v7410_v42 = vpack.c.bf16 %v13507_v15, %v13506_v63 }
 0x7f4   :  { %7375 = vmatpush3.bf16.msra.mxu1 %v13483_v48 }
 0x7f5   :  { %7377 = vmatprep.subr.bf16.mxu1 %v13484_v58 }
 0x7f8   :  { %7379 = vmatpush3.bf16.msra.mxu1 %v13485_v6 }
 0x7f9   :  { %7381 = vmatprep.subr.bf16.mxu1 %v13486_v49 }
 0x7fc   :  { %7383 = vmatpush3.bf16.msra.mxu1 %v13487_v14 }
 0x7fd   :  { %7385 = vmatprep.subr.bf16.mxu1 %v13488_v29 }
 0x800   :  { %7387 = vmatpush3.bf16.msra.mxu1 %v13489_v9 }
 0x801   :  { %7389 = vmatprep.subr.bf16.mxu1 %v13490_v28 }
 0x804   :  { %7391 = vmatpush3.bf16.msra.mxu1 %v13491_v44 }
 0x805   :  { %7393 = vmatprep.subr.bf16.mxu1 %v13492_v18 }
 0x808   :  { %7395 = vmatpush3.bf16.msra.mxu1 %v13493_v32 }
 0x809   :  { %7397 = vmatprep.subr.bf16.mxu1 %v13494_v0 }
 0x80c   :  { %7399 = vmatpush3.bf16.msra.mxu1 %v11278_v4 }
 0x80d   :  { %7401 = vmatprep.subr.bf16.mxu1 %v7400_v24  ;;  %v13508_v24 = vand.u32 4294901760, %v11138_v41  ;;  %v13515_v41 = vand.u32 4294901760, %v11193_v35 }
 0x80f   :  { %5347 = vmatmul.mubr.f32.vlgmr.msra.gmra.mrb[20].mxu1 %v13501_v22  ;;  %v7412_v46 = vpack.c.bf16 %v13509_v21, %v13508_v24  ;;  %v7418_v52 = vpack.c.bf16 %v13515_v41, %v13514_v26  ;;  %v7424_v22 = vpack.c.bf16 %v13521_v5, %v13520_v50 }
 0x810   :  { %7403 = vmatpush3.bf16.msra.mxu1 %v7402_v34  ;;  %5513 = vmatprep.mubr.f32.mxu1 %v10967_v47  ;;  %v7416_v34 = vpack.c.bf16 %v13513_v8, %v13512_v40 }
 0x811   :  { %7405 = vmatprep.subr.bf16.mxu1 %v7404_v27  ;;  %v7422_v27 = vpack.c.bf16 %v13519_v12, %v13518_v2 }
 0x814   :  { %7407 = vmatpush3.bf16.msra.mxu1 %v7406_v59 }
 0x815   :  { %7409 = vmatprep.subr.bf16.mxu1 %v7408_v3 }
 0x818   :  { %7411 = vmatpush3.bf16.msra.mxu1 %v7410_v42 }
 0x819   :  { %7413 = vmatprep.subr.bf16.mxu1 %v7412_v46 }
 0x81c   :  { %7415 = vmatpush3.bf16.msra.mxu1 %v7414_v23 }
 0x81d   :  { %7417 = vmatprep.subr.bf16.mxu1 %v7416_v34 }
 0x820   :  { %7419 = vmatpush3.bf16.msra.mxu1 %v7418_v52 }
 0x821   :  { %7421 = vmatprep.subr.bf16.mxu1 %v7420_v1 }
 0x822   :  { %v4415_v35 = vpop.f32.mrb[4].mxu1 }
 0x823   :  { %v5971_v39 = vpop.f32.mrb[5].mxu1 }
 0x824   :  { %7423 = vmatpush3.bf16.msra.mxu1 %v7422_v27 }
 0x825   :  { %7425 = vmatprep.subr.bf16.mxu1 %v7424_v22 }
 0x828   :  { %7427 = vmatpush3.bf16.msra.mxu1 %v7426_v33 }
 0x829   :  { %7429 = vmatprep.subr.bf16.mxu1 %v7428_v53 }
 0x82a   :  { %v4304_v61 = vpop.f32.mrb[4].mxu0 }
 0x82b   :  { %v4416_v59 = vadd.f32 %v4415_v35, %v4304_v61  ;;  %v5952_v11 = vpop.f32.mrb[5].mxu0 }
 0x82c   :  { %7431 = vmatpush3.bf16.msra.mxu1 %v7430_v30 }
 0x82d   :  { %7433 = vmatprep.subr.bf16.mxu1 %v11012_v10 }
 0x82f   :  { %5515 = vmatmul.mubr.f32.vlgmr.msra.gmra.mrb[22].mxu1 %v11000_v7 }
 0x830   :  { %7435 = vmatpush3.bf16.msra.mxu1 %v11034_v38  ;;  %5617 = vmatprep.mubr.f32.mxu1 %v10967_v47 }
 0x831   :  { %7437 = vmatprep.subr.bf16.mxu1 %v11037_v36 }
 0x832   :  { %v4503_v55 = vpop.f32.mrb[6].mxu1 }
 0x833   :  { %v4504_v16 = vadd.f32 %v4503_v55, %v4416_v59  ;;  %v5990_v17 = vpop.f32.mrb[7].mxu1 }
 0x834   :  { %7439 = vmatpush3.bf16.msra.mxu1 %v13483_v48 }
 0x835   :  { %7441 = vmatprep.subr.bf16.mxu1 %v13484_v58 }
 0x838   :  { %7443 = vmatpush3.bf16.msra.mxu1 %v13485_v6 }
 0x839   :  { %7445 = vmatprep.subr.bf16.mxu1 %v13486_v49 }
 0x83c   :  { %7447 = vmatpush3.bf16.msra.mxu1 %v13487_v14 }
 0x83d   :  { %7449 = vmatprep.subr.bf16.mxu1 %v13488_v29 }
 0x840   :  { %7451 = vmatpush3.bf16.msra.mxu1 %v13489_v9 }
 0x841   :  { %7453 = vmatprep.subr.bf16.mxu1 %v13490_v28 }
 0x842   :  { %v4584_v47 = vpop.f32.mrb[8].mxu1 }
 0x843   :  { %v4585_v10 = vadd.f32 %v4584_v47, %v4504_v16  ;;  %v6009_v38 = vpop.f32.mrb[9].mxu1 }
 0x844   :  { %7455 = vmatpush3.bf16.msra.mxu1 %v13491_v44 }
 0x845   :  { %7457 = vmatprep.subr.bf16.mxu1 %v13492_v18 }
 0x848   :  { %7459 = vmatpush3.bf16.msra.mxu1 %v13493_v32 }
 0x849   :  { %7461 = vmatprep.subr.bf16.mxu1 %v13494_v0 }
 0x84c   :  { %7463 = vmatpush3.bf16.msra.mxu1 %v11278_v4 }
 0x84f   :  { %5619 = vmatmul.mubr.f32.vlgmr.msra.gmra.mrb[24].mxu1 %v11000_v7 }
 0x852   :  { %v4679_v36 = vpop.f32.mrb[10].mxu1 }
 0x853   :  { %v4680_v57 = vadd.f32 %v4679_v36, %v4585_v10  ;;  %v6028_v19 = vpop.f32.mrb[11].mxu1 }
 0x862   :  { %v4758_v45 = vpop.f32.mrb[12].mxu1 }
 0x863   :  { %v4759_v37 = vadd.f32 %v4758_v45, %v4680_v57  ;;  %v6047_v13 = vpop.f32.mrb[13].mxu1 }
 0x882   :  { %v5756_v20 = vpop.f32.mrb[14].mxu1 }
 0x883   :  { %v5757_v48 = vpop.f32.mrb[15].mxu1 }
 0x884   :  { %v5758_v58 = vadd.f32 %v5757_v48, %v5756_v20 }
 0x886   :  { %v4871_v6 = vadd.f32 %v5758_v58, %v4759_v37 }
 0x8a2   :  { %v5791_v49 = vpop.f32.mrb[16].mxu1 }
 0x8a3   :  { %v5792_v14 = vpop.f32.mrb[17].mxu1 }
 0x8a4   :  { %v5793_v29 = vadd.f32 %v5792_v14, %v5791_v49 }
 0x8a6   :  { %v5103_v9 = vadd.f32 %v5793_v29, %v4871_v6 }
 0x8c2   :  { %v5826_v28 = vpop.f32.mrb[18].mxu1 }
 0x8c3   :  { %v5827_v44 = vpop.f32.mrb[19].mxu1 }
 0x8c4   :  { %v5828_v18 = vadd.f32 %v5827_v44, %v5826_v28 }
 0x8c6   :  { %v5241_v4 = vadd.f32 %v5828_v18, %v5103_v9 }
 0x8e2   :  { %v5861_v32 = vpop.f32.mrb[20].mxu1 }
 0x8e3   :  { %v5862_v7 = vpop.f32.mrb[21].mxu1 }
 0x8e4   :  { %v5863_v0 = vadd.f32 %v5862_v7, %v5861_v32 }
 0x8e6   :  { %v5349_v43 = vadd.f32 %v5863_v0, %v5241_v4 }
 0x902   :  { %v5896_v3 = vpop.f32.mrb[22].mxu1 }
 0x903   :  { %v5897_v63 = vpop.f32.mrb[23].mxu1 }
 0x904   :  { %v5898_v15 = vadd.f32 %v5897_v63, %v5896_v3 }
 0x906   :  { %v5517_v42 = vadd.f32 %v5898_v15, %v5349_v43 }
 0x922   :  { %v5931_v24 = vpop.f32.mrb[24].mxu1 }
 0x923   :  { %v5932_v21 = vpop.f32.mrb[25].mxu1 }
 0x924   :  { %v5933_v46 = vadd.f32 %v5932_v21, %v5931_v24 }
 0x926   :  { %v5621_v62 = vadd.f32 %v5933_v46, %v5517_v42 }
 0x928   :  { %v5631_v23 = vadd.f32 %v5669_v54, %v5621_v62 }
 0x92a   :  { %v5633_v40 = vsel %vm5632_vm8, %v5631_v23, -inf }
 0x92b   :  { %5634 = vmax.xlane.f32.xlu1 %v5633_v40 }
 0x9b8   :  { %v5635_v8 = vpop.xlane.xlu1 %5634 }
 0x9b9   :  { %v5636_v34 = vsub.f32 %v5631_v23, %v5635_v8 }
 0x9bb   :  { %v5637_v26 = vmul.f32 1.442695, %v5636_v34 }
 0x9bd   :  { %7520 = vpow2.f32 %v5637_v26 }
 0x9c7   :  { %v7521_v41 = vpop.eup %7520 }
 0x9c8   :  { %v5639_v52 = vsel %vm5632_vm8, %v7521_v41, 0.0 }
 0x9c9   :  { %5640 = vadd.xlane.f32.xlu1 %v5639_v52 }
 0xa56   :  { %v5641_v31 = vpop.xlane.xlu1 %5640 }
 0xa57   :  { %7522 = vrcp.f32 %v5641_v31 }
 0xa61   :  { %v7523_v56 = vpop.eup %7522 }
 0xa62   :  { %v5643_v1 = vmul.f32 %v7523_v56, %v7521_v41 }
 0xa64   :  { %5644 = vst.msk [vmem:[#allocation5] sm:$0x3] %vm5632_vm8, %v5643_v1 }
 0xa65   :  { %7557 = shalt.err (!%p7554_p12)
}
 0xa66   :  { %s7558_s19 = scalar_lea.hbm %s11571_s6, 32 }
 0xa67   :  { %p7559_p13 = scmp.ne.s32.totalorder %s11571_s6, %s7558_s19  ;;  %p7562_p0 = scmp.lt.u32.totalorder %s7558_s19, %s11571_s6 }
 0xa69   :  { %p7564_p1 = pnand %p7562_p0, %p7559_p13 }
 0xa6b   :  { %7567 = shalt.err (!%p7564_p1)
}
 0xa6c   :  { %5654 = dma.vmem_to_hbm [thread:$0]  %s5652_s16, 32, %s11571_s6, [#allocation4]  }
 0xa6d   :  { %7570 = dma.done.wait [#allocation4], 32  }
 0xa6e   :  { %7571 = vsyncadd [#allocation4], 4294967264 }
 0xa6f   :  { %5658 = vsyncpa [#allocation3], 1 }
 0xa70   :  { %5659 = vsyncpa [#allocation4], 1 }

</bundles_post_ra>
